<compile_context>
chip_gen: v7x
topology: tpu7x:2x2x1
jax: 0.10.0
libtpu: 0.0.40
codegen_flags: <defaults>
</compile_context>

<pallas_src>
import functools

import jax
import jax.numpy as jnp
from jax import lax
from jax.experimental import pallas as pl
from jax.experimental.pallas import tpu as pltpu


# ----------------------------- small helpers ----------------------------- #
def _vmem_limit_bytes():
    """~85% of physical VMEM: ~108 MiB on v5e/v6e (128 MiB), ~54 MiB on v7x (64 MiB)."""
    try:
        info = pltpu.get_tpu_info()
        cap = getattr(info, "vmem_capacity_bytes", None)
        if cap:
            return int(cap * 0.85)
    except Exception:
        pass
    return None  # fall back to compiler default


def _pick_tile(n, candidates=(512, 256, 128)):
    """Largest lane-dense tile that divides n (falls back to n itself)."""
    for t in candidates:
        if n % t == 0:
            return t
    return n


# ----------------------- Kernel 1: fused-gate LSTM recurrence ----------------------- #
def lstm_kernel(emb_ref,   # (tc, B, E)  bf16 time-chunk of embeddings
                wih_ref,   # (E, 4H)     bf16 gate-concatenated input->hidden weights (i,f,g,o)
                whh_ref,   # (H, 4H)     bf16 gate-concatenated hidden->hidden weights
                b_ref,     # (1, 4H)     f32  b_ih + b_hh
                hs_ref,    # (tc, B, H)  bf16 output hidden states
                h_ref,     # scratch (B, H) f32 -- persists across grid steps
                c_ref):    # scratch (B, H) f32
    @pl.when(pl.program_id(0) == 0)
    def _():
        h_ref[...] = jnp.zeros_like(h_ref)
        c_ref[...] = jnp.zeros_like(c_ref)

    tc, B, E = emb_ref.shape
    H = h_ref.shape[1]

    # Hoisted input projection: ONE (tc*B, E) @ (E, 4H) matmul per chunk (M >= 64 rows),
    # fused bias folded in so no per-step bias broadcast in the hot loop.
    x_all = emb_ref[...].reshape(tc * B, E)                                   # bf16
    xproj = (jnp.dot(x_all, wih_ref[...], preferred_element_type=jnp.float32)
             + b_ref[...]).reshape(tc, B, 4 * H)                              # f32

    whh = whh_ref[...]                                                        # bf16, resident

    # Serial recurrence over the chunk (tc small & static -> full unroll, static indices).
    for t in range(tc):
        h_bf = h_ref[...].astype(jnp.bfloat16)
        gates = xproj[t] + jnp.dot(h_bf, whh, preferred_element_type=jnp.float32)  # (B, 4H) f32
        i_g = jax.nn.sigmoid(gates[:, 0 * H:1 * H])
        f_g = jax.nn.sigmoid(gates[:, 1 * H:2 * H])
        g_g = jnp.tanh(gates[:, 2 * H:3 * H])
        o_g = jax.nn.sigmoid(gates[:, 3 * H:4 * H])

        c_new = f_g * c_ref[...] + i_g * g_g
        h_new = o_g * jnp.tanh(c_new)

        c_ref[...] = c_new
        h_ref[...] = h_new
        hs_ref[t] = h_new.astype(hs_ref.dtype)


# -------------------- Kernel 2: tied output projection (tiled matmul) -------------------- #
def proj_kernel(hs_ref,     # (mt, H)  bf16
                wout_ref,   # (H, vt)  bf16 tied output weights (emb_table.T tile)
                bout_ref,   # (1, vt)  f32
                out_ref):   # (mt, vt) f32
    out_ref[...] = (jnp.dot(hs_ref[...], wout_ref[...],
                            preferred_element_type=jnp.float32)
                    + bout_ref[...]).astype(out_ref.dtype)


# ------------------------------ weight prep (hoisted, one-time) ------------------------------ #
def prepare_params(emb_table, w_ih, w_hh, b_ih, b_hh, out_bias):
    """One-time repack of PyTorch-layout weights into kernel layout (call outside jit).

    MXU operands are stored in bf16 (f32 accumulation in-kernel); biases / state stay f32.
    NOTE: wout snapshots the tied embedding table -- re-derive if the embedding is updated.
    """
    H = w_hh.shape[1]
    V = emb_table.shape[0]
    emb_bf = emb_table.astype(jnp.bfloat16)                  # (V, E) gather table (tied weight)
    wih_all = jnp.asarray(w_ih.T, jnp.bfloat16)              # (E, 4H), gates concat (i,f,g,o)
    whh_all = jnp.asarray(w_hh.T, jnp.bfloat16)              # (H, 4H)
    b_all = (b_ih + b_hh).reshape(1, 4 * H).astype(jnp.float32)
    wout = emb_bf.T                                          # (H, V)  weight tying
    bout = out_bias.reshape(1, V).astype(jnp.float32)
    return emb_bf, wih_all, whh_all, b_all, wout, bout


# ------------------------------------- JAX wrapper -------------------------------------- #
@functools.partial(jax.jit, static_argnames=("tc", "single_buffer_weights"))
def lm_lstm_forward(tokens, emb_bf, wih_all, whh_all, b_all, wout, bout, *,
                    tc=8, single_buffer_weights=True):
    """Forward pass of LM_LSTM (eval mode). Returns logits of shape (B, V, T)."""
    B, T = tokens.shape
    V, E = emb_bf.shape
    H = whh_all.shape[0]
    assert T % tc == 0, "T must be divisible by the time-chunk size"

    # Embedding lookup directly in time-major layout (no separate (B,T,E)->(T,B,E) pass).
    # Padding row of the table is zero, matching padding_idx semantics.
    emb_tbf = jnp.take(emb_bf, tokens.T, axis=0)             # (T, B, E) bf16

    vmem_limit = _vmem_limit_bytes()

    def resident_spec(shape, index_map):
        # Constant index_map -> no benefit from double buffering; single-buffer to save VMEM.
        if single_buffer_weights:
            return pl.BlockSpec(shape, index_map, pipeline_mode=pl.Buffered(1))
        return pl.BlockSpec(shape, index_map)

    # --- recurrent kernel: h_t for all t, chunked over time ---
    hs = pl.pallas_call(
        lstm_kernel,
        out_shape=jax.ShapeDtypeStruct((T, B, H), jnp.bfloat16),
        grid_spec=pltpu.PrefetchScalarGridSpec(
            num_scalar_prefetch=0,
            grid=(T // tc,),
            in_specs=[
                pl.BlockSpec((tc, B, E), lambda i: (i, 0, 0)),     # emb time-chunk
                resident_spec((E, 4 * H), lambda i: (0, 0)),       # Wih_all (resident)
                resident_spec((H, 4 * H), lambda i: (0, 0)),       # Whh_all (resident)
                resident_spec((1, 4 * H), lambda i: (0, 0)),       # fused bias
            ],
            out_specs=pl.BlockSpec((tc, B, H), lambda i: (i, 0, 0)),
            scratch_shapes=[
                pltpu.VMEM((B, H), jnp.float32),                   # h state
                pltpu.VMEM((B, H), jnp.float32),                   # c state
            ],
        ),
        compiler_params=pltpu.CompilerParams(
            # True recurrence: h/c live in scratch across grid steps -> must stay "arbitrary",
            # never parallel / core-parallel.
            dimension_semantics=("arbitrary",),
            vmem_limit_bytes=vmem_limit,
        ),
    )(emb_tbf, wih_all, whh_all, b_all)

    # --- projection kernel: vocab-outer grid so the tied weight streams from HBM once ---
    M = T * B
    hs_flat = hs.reshape(M, H)                               # free reshape (contiguous)
    mt = _pick_tile(M)
    vt = _pick_tile(V)
    assert M % mt == 0 and V % vt == 0

    logits_flat = pl.pallas_call(
        proj_kernel,
        out_shape=jax.ShapeDtypeStruct((M, V), jnp.float32),
        grid_spec=pltpu.PrefetchScalarGridSpec(
            num_scalar_prefetch=0,
            grid=(V // vt, M // mt),                          # vocab OUTER, M inner
            in_specs=[
                pl.BlockSpec((mt, H), lambda i, j: (j, 0)),   # hs tile (re-streamed, small)
                pl.BlockSpec((H, vt), lambda i, j: (0, i)),   # wout tile (loaded once per i)
                pl.BlockSpec((1, vt), lambda i, j: (0, i)),
            ],
            out_specs=pl.BlockSpec((mt, vt), lambda i, j: (j, i)),
        ),
        compiler_params=pltpu.CompilerParams(
            dimension_semantics=("parallel", "parallel"),
            vmem_limit_bytes=vmem_limit,
        ),
    )(hs_flat, wout, bout)

    # (T*B, V) -> (T, B, V) -> permute to (B, V, T) to match output.permute(0, 2, 1).
    # TODO(synk): drop this permute if the downstream consumer can take (B, T, V) / (T, B, V).
    logits_tbv = logits_flat.reshape(T, B, V)
    return jnp.transpose(logits_tbv, (1, 2, 0))


# --------------------------------- pure-JAX reference (f32) ---------------------------------- #
def lm_lstm_reference(tokens, emb_table, w_ih, w_hh, b_ih, b_hh, out_bias):
    B, T = tokens.shape
    H = w_hh.shape[1]
    emb = jnp.take(emb_table, tokens, axis=0)                 # (B, T, E)

    def step(carry, x_t):
        h, c = carry
        gates = x_t @ w_ih.T + b_ih + h @ w_hh.T + b_hh       # (B, 4H)
        i, f, g, o = jnp.split(gates, 4, axis=-1)
        c = jax.nn.sigmoid(f) * c + jax.nn.sigmoid(i) * jnp.tanh(g)
        h = jax.nn.sigmoid(o) * jnp.tanh(c)
        return (h, c), h

    h0 = jnp.zeros((B, H), jnp.float32)
    c0 = jnp.zeros((B, H), jnp.float32)
    _, hs = lax.scan(step, (h0, c0), jnp.transpose(emb, (1, 0, 2)))  # (T, B, H)
    lstm_out = jnp.transpose(hs, (1, 0, 2))                          # (B, T, H)
    logits = lstm_out @ emb_table.T + out_bias                       # tied weights
    return jnp.transpose(logits, (0, 2, 1))                          # (B, V, T)


# -------------------------------------- main -------------------------------------------- #
if __name__ == "__main__":
    B, T = 8, 32
    E = H = 128         # lane-dense hidden (H % 128 == 0); tying requires emb_size == hidden_size
    V = 256             # output_size (vocab); multiple of 128 -> lane-dense logits
    PAD = 0
    TC = 8              # time steps per grid iteration (re-tune per generation / VMEM budget)

    key = jax.random.PRNGKey(0)
    k_emb, k_wih, k_whh, k_bih, k_bhh, k_bo, k_tok = jax.random.split(key, 7)

    bound = 1.0 / jnp.sqrt(H)
    emb_table = jax.random.normal(k_emb, (V, E), jnp.float32) * 0.1
    emb_table = emb_table.at[PAD].set(0.0)                    # padding_idx row zeroed
    w_ih = jax.random.uniform(k_wih, (4 * H, E), jnp.float32, -bound, bound)
    w_hh = jax.random.uniform(k_whh, (4 * H, H), jnp.float32, -bound, bound)
    b_ih = jax.random.uniform(k_bih, (4 * H,), jnp.float32, -bound, bound)
    b_hh = jax.random.uniform(k_bhh, (4 * H,), jnp.float32, -bound, bound)
    out_bias = jax.random.uniform(k_bo, (V,), jnp.float32, -bound, bound)

    tokens = jax.random.randint(k_tok, (B, T), 0, V, jnp.int32)
    tokens = tokens.at[:, -1].set(PAD)                        # include some pad tokens

    # One-time weight repacking (hoisted out of the jitted forward path).
    params = prepare_params(emb_table, w_ih, w_hh, b_ih, b_hh, out_bias)

    def run(single_buffer):
        return jax.block_until_ready(
            lm_lstm_forward(tokens, *params, tc=TC, single_buffer_weights=single_buffer))

    try:
        out = run(True)
    except Exception:
        # pipeline_mode=pl.Buffered(1) unsupported on this jax build -> default double-buffered specs.
        out = run(False)

    ref = lm_lstm_reference(tokens, emb_table, w_ih, w_hh, b_ih, b_hh, out_bias)
    assert out.shape == (B, V, T), out.shape
    # bf16 MXU inputs (f32 accumulation / f32 gate math & state) -> loosened tolerance vs f32 ref.
    max_err = float(jnp.max(jnp.abs(out - ref)))
    assert jnp.allclose(out, ref, atol=5e-2, rtol=5e-2), f"mismatch vs reference, max_err={max_err}"

    print("KERNEL_OK")
</pallas_src>

<mosaic_0001>
module attributes {stable_mosaic.version = 11 : i64} {
  func.func @proj_kernel(%arg0: i32, %arg1: i32, %arg2: memref<256x128xbf16, #tpu.memory_space<vmem>>, %arg3: memref<128x256xbf16, #tpu.memory_space<vmem>>, %arg4: memref<1x256xf32, #tpu.memory_space<vmem>>, %arg5: memref<256x256xf32, #tpu.memory_space<vmem>>) attributes {dimension_semantics = [#tpu.dimension_semantics<parallel>, #tpu.dimension_semantics<parallel>], iteration_bounds = array<i64: 1, 1>, scalar_prefetch = 0 : i64, scratch_operands = 0 : i64, tpu.core_type = #tpu.core_type<tc>, window_params = [{transform_indices = @transform_0, window_bounds = array<i64: 256, 128>}, {transform_indices = @transform_1, window_bounds = array<i64: 128, 256>}, {transform_indices = @transform_2, window_bounds = array<i64: 1, 256>}, {transform_indices = @transform_3, window_bounds = array<i64: 256, 256>}]} {
    %c0 = arith.constant 0 : index
    %c0_0 = arith.constant 0 : index
    %0 = vector.load %arg2[%c0, %c0_0] : memref<256x128xbf16, #tpu.memory_space<vmem>>, vector<256x128xbf16>
    %c0_1 = arith.constant 0 : index
    %c0_2 = arith.constant 0 : index
    %1 = vector.load %arg3[%c0_1, %c0_2] : memref<128x256xbf16, #tpu.memory_space<vmem>>, vector<128x256xbf16>
    %cst = arith.constant dense<0.000000e+00> : vector<256x256xf32>
    %2 = tpu.matmul %0, %1, %cst {dimension_numbers = #tpu.dot_dimension_numbers<[1], [0], [0], [1], [0, 0, 1, 1], [], []>} : vector<256x128xbf16>, vector<128x256xbf16>, vector<256x256xf32> -> vector<256x256xf32>
    %c0_3 = arith.constant 0 : index
    %c0_4 = arith.constant 0 : index
    %3 = vector.load %arg4[%c0_3, %c0_4] : memref<1x256xf32, #tpu.memory_space<vmem>>, vector<1x256xf32>
    %4 = vector.broadcast %3 : vector<1x256xf32> to vector<256x256xf32>
    %5 = arith.addf %2, %4 : vector<256x256xf32>
    %c0_5 = arith.constant 0 : index
    %c0_6 = arith.constant 0 : index
    %6 = vector.load %arg5[%c0_5, %c0_6] : memref<256x256xf32, #tpu.memory_space<vmem>>, vector<256x256xf32>
    tpu.vector_store %arg5[%c0_5, %c0_6], %5 {strides = array<i32>} : memref<256x256xf32, #tpu.memory_space<vmem>>, vector<256x256xf32>,
    return
  }
  func.func @transform_0(%arg0: i32, %arg1: i32) -> (i32, i32) {
    %c0_i32 = arith.constant 0 : i32
    %c0_i32_0 = arith.constant 0 : i32
    return %arg1, %c0_i32 : i32, i32
  }
  func.func @transform_1(%arg0: i32, %arg1: i32) -> (i32, i32) {
    %c0_i32 = arith.constant 0 : i32
    %c0_i32_0 = arith.constant 0 : i32
    return %c0_i32, %arg0 : i32, i32
  }
  func.func @transform_2(%arg0: i32, %arg1: i32) -> (i32, i32) {
    %c0_i32 = arith.constant 0 : i32
    %c0_i32_0 = arith.constant 0 : i32
    return %c0_i32, %arg0 : i32, i32
  }
  func.func @transform_3(%arg0: i32, %arg1: i32) -> (i32, i32) {
    %c0_i32 = arith.constant 0 : i32
    return %arg1, %arg0 : i32, i32
  }
}

module attributes {stable_mosaic.version = 11 : i64} {
  func.func @lstm_kernel(%arg0: i32, %arg1: memref<8x8x128xbf16, #tpu.memory_space<vmem>>, %arg2: memref<128x512xbf16, #tpu.memory_space<vmem>>, %arg3: memref<128x512xbf16, #tpu.memory_space<vmem>>, %arg4: memref<1x512xf32, #tpu.memory_space<vmem>>, %arg5: memref<8x8x128xbf16, #tpu.memory_space<vmem>>, %arg6: memref<8x128xf32, #tpu.memory_space<vmem>>, %arg7: memref<8x128xf32, #tpu.memory_space<vmem>>) attributes {dimension_semantics = [#tpu.dimension_semantics<arbitrary>], iteration_bounds = array<i64: 4>, scalar_prefetch = 0 : i64, scratch_operands = 2 : i64, tpu.core_type = #tpu.core_type<tc>, window_params = [{transform_indices = @transform_0, window_bounds = array<i64: 8, 8, 128>}, {pipeline_mode = #tpu.pipeline_mode<synchronous>, transform_indices = @transform_1, window_bounds = array<i64: 128, 512>}, {pipeline_mode = #tpu.pipeline_mode<synchronous>, transform_indices = @transform_2, window_bounds = array<i64: 128, 512>}, {pipeline_mode = #tpu.pipeline_mode<synchronous>, transform_indices = @transform_3, window_bounds = array<i64: 1, 512>}, {transform_indices = @transform_4, window_bounds = array<i64: 8, 8, 128>}]} {
    %c0_i32 = arith.constant 0 : i32
    %0 = arith.cmpi eq, %arg0, %c0_i32 : i32
    %1 = arith.extui %0 : i1 to i32
    %c0_i32_0 = arith.constant 0 : i32
    %2 = arith.cmpi ne, %1, %c0_i32_0 : i32
    scf.if %2 {
      %cst_122 = arith.constant 0.000000e+00 : f32
      %316 = vector.broadcast %cst_122 : f32 to vector<8x128xf32>
      %c0_123 = arith.constant 0 : index
      %c0_124 = arith.constant 0 : index
      %317 = vector.load %arg6[%c0_123, %c0_124] : memref<8x128xf32, #tpu.memory_space<vmem>>, vector<8x128xf32>
      tpu.vector_store %arg6[%c0_123, %c0_124], %316 {strides = array<i32>} : memref<8x128xf32, #tpu.memory_space<vmem>>, vector<8x128xf32>,
      %cst_125 = arith.constant 0.000000e+00 : f32
      %318 = vector.broadcast %cst_125 : f32 to vector<8x128xf32>
      %c0_126 = arith.constant 0 : index
      %c0_127 = arith.constant 0 : index
      %319 = vector.load %arg7[%c0_126, %c0_127] : memref<8x128xf32, #tpu.memory_space<vmem>>, vector<8x128xf32>
      tpu.vector_store %arg7[%c0_126, %c0_127], %318 {strides = array<i32>} : memref<8x128xf32, #tpu.memory_space<vmem>>, vector<8x128xf32>,
    } else {
    }
    %c0 = arith.constant 0 : index
    %c0_1 = arith.constant 0 : index
    %c0_2 = arith.constant 0 : index
    %3 = vector.load %arg1[%c0, %c0_1, %c0_2] : memref<8x8x128xbf16, #tpu.memory_space<vmem>>, vector<8x8x128xbf16>
    %4 = vector.shape_cast %3 : vector<8x8x128xbf16> to vector<64x128xbf16>
    %c0_3 = arith.constant 0 : index
    %c0_4 = arith.constant 0 : index
    %5 = vector.load %arg2[%c0_3, %c0_4] : memref<128x512xbf16, #tpu.memory_space<vmem>>, vector<128x512xbf16>
    %cst = arith.constant dense<0.000000e+00> : vector<64x512xf32>
    %6 = tpu.matmul %4, %5, %cst {dimension_numbers = #tpu.dot_dimension_numbers<[1], [0], [0], [1], [0, 0, 1, 1], [], []>} : vector<64x128xbf16>, vector<128x512xbf16>, vector<64x512xf32> -> vector<64x512xf32>
    %c0_5 = arith.constant 0 : index
    %c0_6 = arith.constant 0 : index
    %7 = vector.load %arg4[%c0_5, %c0_6] : memref<1x512xf32, #tpu.memory_space<vmem>>, vector<1x512xf32>
    %8 = vector.broadcast %7 : vector<1x512xf32> to vector<64x512xf32>
    %9 = arith.addf %6, %8 : vector<64x512xf32>
    %10 = vector.shape_cast %9 : vector<64x512xf32> to vector<8x8x512xf32>
    %c0_7 = arith.constant 0 : index
    %c0_8 = arith.constant 0 : index
    %11 = vector.load %arg3[%c0_7, %c0_8] : memref<128x512xbf16, #tpu.memory_space<vmem>>, vector<128x512xbf16>
    %c0_9 = arith.constant 0 : index
    %c0_10 = arith.constant 0 : index
    %12 = vector.load %arg6[%c0_9, %c0_10] : memref<8x128xf32, #tpu.memory_space<vmem>>, vector<8x128xf32>
    %13 = arith.truncf %12 : vector<8x128xf32> to vector<8x128xbf16>
    %14 = vector.extract_strided_slice %10 {offsets = [0, 0, 0], sizes = [1, 8, 512], strides = [1, 1, 1]} : vector<8x8x512xf32> to vector<1x8x512xf32>
    %15 = vector.shape_cast %14 : vector<1x8x512xf32> to vector<8x512xf32>
    %cst_11 = arith.constant dense<0.000000e+00> : vector<8x512xf32>
    %16 = tpu.matmul %13, %11, %cst_11 {dimension_numbers = #tpu.dot_dimension_numbers<[1], [0], [0], [1], [0, 0, 1, 1], [], []>} : vector<8x128xbf16>, vector<128x512xbf16>, vector<8x512xf32> -> vector<8x512xf32>
    %17 = arith.addf %15, %16 : vector<8x512xf32>
    %18 = vector.extract_strided_slice %17 {offsets = [0, 0], sizes = [8, 128], strides = [1, 1]} : vector<8x512xf32> to vector<8x128xf32>
    %19 = arith.negf %18 : vector<8x128xf32>
    %20 = math.exp %19 : vector<8x128xf32>
    %cst_12 = arith.constant 1.000000e+00 : f32
    %21 = vector.broadcast %cst_12 : f32 to vector<8x128xf32>
    %22 = arith.addf %21, %20 : vector<8x128xf32>
    %23 = arith.divf %21, %22 : vector<8x128xf32>
    %24 = vector.extract_strided_slice %17 {offsets = [0, 128], sizes = [8, 128], strides = [1, 1]} : vector<8x512xf32> to vector<8x128xf32>
    %25 = arith.negf %24 : vector<8x128xf32>
    %26 = math.exp %25 : vector<8x128xf32>
    %cst_13 = arith.constant 1.000000e+00 : f32
    %27 = vector.broadcast %cst_13 : f32 to vector<8x128xf32>
    %28 = arith.addf %27, %26 : vector<8x128xf32>
    %29 = arith.divf %27, %28 : vector<8x128xf32>
    %30 = vector.extract_strided_slice %17 {offsets = [0, 256], sizes = [8, 128], strides = [1, 1]} : vector<8x512xf32> to vector<8x128xf32>
    %31 = math.tanh %30 : vector<8x128xf32>
    %32 = vector.extract_strided_slice %17 {offsets = [0, 384], sizes = [8, 128], strides = [1, 1]} : vector<8x512xf32> to vector<8x128xf32>
    %33 = arith.negf %32 : vector<8x128xf32>
    %34 = math.exp %33 : vector<8x128xf32>
    %cst_14 = arith.constant 1.000000e+00 : f32
    %35 = vector.broadcast %cst_14 : f32 to vector<8x128xf32>
    %36 = arith.addf %35, %34 : vector<8x128xf32>
    %37 = arith.divf %35, %36 : vector<8x128xf32>
    %c0_15 = arith.constant 0 : index
    %c0_16 = arith.constant 0 : index
    %38 = vector.load %arg7[%c0_15, %c0_16] : memref<8x128xf32, #tpu.memory_space<vmem>>, vector<8x128xf32>
    %39 = arith.mulf %29, %38 : vector<8x128xf32>
    %40 = arith.mulf %23, %31 : vector<8x128xf32>
    %41 = arith.addf %39, %40 : vector<8x128xf32>
    %42 = math.tanh %41 : vector<8x128xf32>
    %43 = arith.mulf %37, %42 : vector<8x128xf32>
    %c0_17 = arith.constant 0 : index
    %c0_18 = arith.constant 0 : index
    %44 = vector.load %arg7[%c0_17, %c0_18] : memref<8x128xf32, #tpu.memory_space<vmem>>, vector<8x128xf32>
    tpu.vector_store %arg7[%c0_17, %c0_18], %41 {strides = array<i32>} : memref<8x128xf32, #tpu.memory_space<vmem>>, vector<8x128xf32>,
    %c0_19 = arith.constant 0 : index
    %c0_20 = arith.constant 0 : index
    %45 = vector.load %arg6[%c0_19, %c0_20] : memref<8x128xf32, #tpu.memory_space<vmem>>, vector<8x128xf32>
    tpu.vector_store %arg6[%c0_19, %c0_20], %43 {strides = array<i32>} : memref<8x128xf32, #tpu.memory_space<vmem>>, vector<8x128xf32>,
    %46 = arith.truncf %43 : vector<8x128xf32> to vector<8x128xbf16>
    %c0_21 = arith.constant 0 : index
    %c0_22 = arith.constant 0 : index
    %c0_23 = arith.constant 0 : index
    %47 = vector.load %arg5[%c0_21, %c0_22, %c0_23] : memref<8x8x128xbf16, #tpu.memory_space<vmem>>, vector<1x8x128xbf16>
    %48 = vector.shape_cast %47 : vector<1x8x128xbf16> to vector<8x128xbf16>
    %49 = vector.shape_cast %46 : vector<8x128xbf16> to vector<1x8x128xbf16>
    tpu.vector_store %arg5[%c0_21, %c0_22, %c0_23], %49 {strides = array<i32>} : memref<8x8x128xbf16, #tpu.memory_space<vmem>>, vector<1x8x128xbf16>,
    %c0_24 = arith.constant 0 : index
    %c0_25 = arith.constant 0 : index
    %50 = vector.load %arg6[%c0_24, %c0_25] : memref<8x128xf32, #tpu.memory_space<vmem>>, vector<8x128xf32>
    %51 = arith.truncf %50 : vector<8x128xf32> to vector<8x128xbf16>
    %52 = vector.extract_strided_slice %10 {offsets = [1, 0, 0], sizes = [1, 8, 512], strides = [1, 1, 1]} : vector<8x8x512xf32> to vector<1x8x512xf32>
    %53 = vector.shape_cast %52 : vector<1x8x512xf32> to vector<8x512xf32>
    %cst_26 = arith.constant dense<0.000000e+00> : vector<8x512xf32>
    %54 = tpu.matmul %51, %11, %cst_26 {dimension_numbers = #tpu.dot_dimension_numbers<[1], [0], [0], [1], [0, 0, 1, 1], [], []>} : vector<8x128xbf16>, vector<128x512xbf16>, vector<8x512xf32> -> vector<8x512xf32>
    %55 = arith.addf %53, %54 : vector<8x512xf32>
    %56 = vector.extract_strided_slice %55 {offsets = [0, 0], sizes = [8, 128], strides = [1, 1]} : vector<8x512xf32> to vector<8x128xf32>
    %57 = arith.negf %56 : vector<8x128xf32>
    %58 = math.exp %57 : vector<8x128xf32>
    %cst_27 = arith.constant 1.000000e+00 : f32
    %59 = vector.broadcast %cst_27 : f32 to vector<8x128xf32>
    %60 = arith.addf %59, %58 : vector<8x128xf32>
    %61 = arith.divf %59, %60 : vector<8x128xf32>
    %62 = vector.extract_strided_slice %55 {offsets = [0, 128], sizes = [8, 128], strides = [1, 1]} : vector<8x512xf32> to vector<8x128xf32>
    %63 = arith.negf %62 : vector<8x128xf32>
    %64 = math.exp %63 : vector<8x128xf32>
    %cst_28 = arith.constant 1.000000e+00 : f32
    %65 = vector.broadcast %cst_28 : f32 to vector<8x128xf32>
    %66 = arith.addf %65, %64 : vector<8x128xf32>
    %67 = arith.divf %65, %66 : vector<8x128xf32>
    %68 = vector.extract_strided_slice %55 {offsets = [0, 256], sizes = [8, 128], strides = [1, 1]} : vector<8x512xf32> to vector<8x128xf32>
    %69 = math.tanh %68 : vector<8x128xf32>
    %70 = vector.extract_strided_slice %55 {offsets = [0, 384], sizes = [8, 128], strides = [1, 1]} : vector<8x512xf32> to vector<8x128xf32>
    %71 = arith.negf %70 : vector<8x128xf32>
    %72 = math.exp %71 : vector<8x128xf32>
    %cst_29 = arith.constant 1.000000e+00 : f32
    %73 = vector.broadcast %cst_29 : f32 to vector<8x128xf32>
    %74 = arith.addf %73, %72 : vector<8x128xf32>
    %75 = arith.divf %73, %74 : vector<8x128xf32>
    %c0_30 = arith.constant 0 : index
    %c0_31 = arith.constant 0 : index
    %76 = vector.load %arg7[%c0_30, %c0_31] : memref<8x128xf32, #tpu.memory_space<vmem>>, vector<8x128xf32>
    %77 = arith.mulf %67, %76 : vector<8x128xf32>
    %78 = arith.mulf %61, %69 : vector<8x128xf32>
    %79 = arith.addf %77, %78 : vector<8x128xf32>
    %80 = math.tanh %79 : vector<8x128xf32>
    %81 = arith.mulf %75, %80 : vector<8x128xf32>
    %c0_32 = arith.constant 0 : index
    %c0_33 = arith.constant 0 : index
    %82 = vector.load %arg7[%c0_32, %c0_33] : memref<8x128xf32, #tpu.memory_space<vmem>>, vector<8x128xf32>
    tpu.vector_store %arg7[%c0_32, %c0_33], %79 {strides = array<i32>} : memref<8x128xf32, #tpu.memory_space<vmem>>, vector<8x128xf32>,
    %c0_34 = arith.constant 0 : index
    %c0_35 = arith.constant 0 : index
    %83 = vector.load %arg6[%c0_34, %c0_35] : memref<8x128xf32, #tpu.memory_space<vmem>>, vector<8x128xf32>
    tpu.vector_store %arg6[%c0_34, %c0_35], %81 {strides = array<i32>} : memref<8x128xf32, #tpu.memory_space<vmem>>, vector<8x128xf32>,
    %84 = arith.truncf %81 : vector<8x128xf32> to vector<8x128xbf16>
    %c1 = arith.constant 1 : index
    %c0_36 = arith.constant 0 : index
    %c0_37 = arith.constant 0 : index
    %85 = vector.load %arg5[%c1, %c0_36, %c0_37] : memref<8x8x128xbf16, #tpu.memory_space<vmem>>, vector<1x8x128xbf16>
    %86 = vector.shape_cast %85 : vector<1x8x128xbf16> to vector<8x128xbf16>
    %87 = vector.shape_cast %84 : vector<8x128xbf16> to vector<1x8x128xbf16>
    tpu.vector_store %arg5[%c1, %c0_36, %c0_37], %87 {strides = array<i32>} : memref<8x8x128xbf16, #tpu.memory_space<vmem>>, vector<1x8x128xbf16>,
    %c0_38 = arith.constant 0 : index
    %c0_39 = arith.constant 0 : index
    %88 = vector.load %arg6[%c0_38, %c0_39] : memref<8x128xf32, #tpu.memory_space<vmem>>, vector<8x128xf32>
    %89 = arith.truncf %88 : vector<8x128xf32> to vector<8x128xbf16>
    %90 = vector.extract_strided_slice %10 {offsets = [2, 0, 0], sizes = [1, 8, 512], strides = [1, 1, 1]} : vector<8x8x512xf32> to vector<1x8x512xf32>
    %91 = vector.shape_cast %90 : vector<1x8x512xf32> to vector<8x512xf32>
    %cst_40 = arith.constant dense<0.000000e+00> : vector<8x512xf32>
    %92 = tpu.matmul %89, %11, %cst_40 {dimension_numbers = #tpu.dot_dimension_numbers<[1], [0], [0], [1], [0, 0, 1, 1], [], []>} : vector<8x128xbf16>, vector<128x512xbf16>, vector<8x512xf32> -> vector<8x512xf32>
    %93 = arith.addf %91, %92 : vector<8x512xf32>
    %94 = vector.extract_strided_slice %93 {offsets = [0, 0], sizes = [8, 128], strides = [1, 1]} : vector<8x512xf32> to vector<8x128xf32>
    %95 = arith.negf %94 : vector<8x128xf32>
    %96 = math.exp %95 : vector<8x128xf32>
    %cst_41 = arith.constant 1.000000e+00 : f32
    %97 = vector.broadcast %cst_41 : f32 to vector<8x128xf32>
    %98 = arith.addf %97, %96 : vector<8x128xf32>
    %99 = arith.divf %97, %98 : vector<8x128xf32>
    %100 = vector.extract_strided_slice %93 {offsets = [0, 128], sizes = [8, 128], strides = [1, 1]} : vector<8x512xf32> to vector<8x128xf32>
    %101 = arith.negf %100 : vector<8x128xf32>
    %102 = math.exp %101 : vector<8x128xf32>
    %cst_42 = arith.constant 1.000000e+00 : f32
    %103 = vector.broadcast %cst_42 : f32 to vector<8x128xf32>
    %104 = arith.addf %103, %102 : vector<8x128xf32>
    %105 = arith.divf %103, %104 : vector<8x128xf32>
    %106 = vector.extract_strided_slice %93 {offsets = [0, 256], sizes = [8, 128], strides = [1, 1]} : vector<8x512xf32> to vector<8x128xf32>
    %107 = math.tanh %106 : vector<8x128xf32>
    %108 = vector.extract_strided_slice %93 {offsets = [0, 384], sizes = [8, 128], strides = [1, 1]} : vector<8x512xf32> to vector<8x128xf32>
    %109 = arith.negf %108 : vector<8x128xf32>
    %110 = math.exp %109 : vector<8x128xf32>
    %cst_43 = arith.constant 1.000000e+00 : f32
    %111 = vector.broadcast %cst_43 : f32 to vector<8x128xf32>
    %112 = arith.addf %111, %110 : vector<8x128xf32>
    %113 = arith.divf %111, %112 : vector<8x128xf32>
    %c0_44 = arith.constant 0 : index
    %c0_45 = arith.constant 0 : index
    %114 = vector.load %arg7[%c0_44, %c0_45] : memref<8x128xf32, #tpu.memory_space<vmem>>, vector<8x128xf32>
    %115 = arith.mulf %105, %114 : vector<8x128xf32>
    %116 = arith.mulf %99, %107 : vector<8x128xf32>
    %117 = arith.addf %115, %116 : vector<8x128xf32>
    %118 = math.tanh %117 : vector<8x128xf32>
    %119 = arith.mulf %113, %118 : vector<8x128xf32>
    %c0_46 = arith.constant 0 : index
    %c0_47 = arith.constant 0 : index
    %120 = vector.load %arg7[%c0_46, %c0_47] : memref<8x128xf32, #tpu.memory_space<vmem>>, vector<8x128xf32>
    tpu.vector_store %arg7[%c0_46, %c0_47], %117 {strides = array<i32>} : memref<8x128xf32, #tpu.memory_space<vmem>>, vector<8x128xf32>,
    %c0_48 = arith.constant 0 : index
    %c0_49 = arith.constant 0 : index
    %121 = vector.load %arg6[%c0_48, %c0_49] : memref<8x128xf32, #tpu.memory_space<vmem>>, vector<8x128xf32>
    tpu.vector_store %arg6[%c0_48, %c0_49], %119 {strides = array<i32>} : memref<8x128xf32, #tpu.memory_space<vmem>>, vector<8x128xf32>,
    %122 = arith.truncf %119 : vector<8x128xf32> to vector<8x128xbf16>
    %c2 = arith.constant 2 : index
    %c0_50 = arith.constant 0 : index
    %c0_51 = arith.constant 0 : index
    %123 = vector.load %arg5[%c2, %c0_50, %c0_51] : memref<8x8x128xbf16, #tpu.memory_space<vmem>>, vector<1x8x128xbf16>
    %124 = vector.shape_cast %123 : vector<1x8x128xbf16> to vector<8x128xbf16>
    %125 = vector.shape_cast %122 : vector<8x128xbf16> to vector<1x8x128xbf16>
    tpu.vector_store %arg5[%c2, %c0_50, %c0_51], %125 {strides = array<i32>} : memref<8x8x128xbf16, #tpu.memory_space<vmem>>, vector<1x8x128xbf16>,
    %c0_52 = arith.constant 0 : index
    %c0_53 = arith.constant 0 : index
    %126 = vector.load %arg6[%c0_52, %c0_53] : memref<8x128xf32, #tpu.memory_space<vmem>>, vector<8x128xf32>
    %127 = arith.truncf %126 : vector<8x128xf32> to vector<8x128xbf16>
    %128 = vector.extract_strided_slice %10 {offsets = [3, 0, 0], sizes = [1, 8, 512], strides = [1, 1, 1]} : vector<8x8x512xf32> to vector<1x8x512xf32>
    %129 = vector.shape_cast %128 : vector<1x8x512xf32> to vector<8x512xf32>
    %cst_54 = arith.constant dense<0.000000e+00> : vector<8x512xf32>
    %130 = tpu.matmul %127, %11, %cst_54 {dimension_numbers = #tpu.dot_dimension_numbers<[1], [0], [0], [1], [0, 0, 1, 1], [], []>} : vector<8x128xbf16>, vector<128x512xbf16>, vector<8x512xf32> -> vector<8x512xf32>
    %131 = arith.addf %129, %130 : vector<8x512xf32>
    %132 = vector.extract_strided_slice %131 {offsets = [0, 0], sizes = [8, 128], strides = [1, 1]} : vector<8x512xf32> to vector<8x128xf32>
    %133 = arith.negf %132 : vector<8x128xf32>
    %134 = math.exp %133 : vector<8x128xf32>
    %cst_55 = arith.constant 1.000000e+00 : f32
    %135 = vector.broadcast %cst_55 : f32 to vector<8x128xf32>
    %136 = arith.addf %135, %134 : vector<8x128xf32>
    %137 = arith.divf %135, %136 : vector<8x128xf32>
    %138 = vector.extract_strided_slice %131 {offsets = [0, 128], sizes = [8, 128], strides = [1, 1]} : vector<8x512xf32> to vector<8x128xf32>
    %139 = arith.negf %138 : vector<8x128xf32>
    %140 = math.exp %139 : vector<8x128xf32>
    %cst_56 = arith.constant 1.000000e+00 : f32
    %141 = vector.broadcast %cst_56 : f32 to vector<8x128xf32>
    %142 = arith.addf %141, %140 : vector<8x128xf32>
    %143 = arith.divf %141, %142 : vector<8x128xf32>
    %144 = vector.extract_strided_slice %131 {offsets = [0, 256], sizes = [8, 128], strides = [1, 1]} : vector<8x512xf32> to vector<8x128xf32>
    %145 = math.tanh %144 : vector<8x128xf32>
    %146 = vector.extract_strided_slice %131 {offsets = [0, 384], sizes = [8, 128], strides = [1, 1]} : vector<8x512xf32> to vector<8x128xf32>
    %147 = arith.negf %146 : vector<8x128xf32>
    %148 = math.exp %147 : vector<8x128xf32>
    %cst_57 = arith.constant 1.000000e+00 : f32
    %149 = vector.broadcast %cst_57 : f32 to vector<8x128xf32>
    %150 = arith.addf %149, %148 : vector<8x128xf32>
    %151 = arith.divf %149, %150 : vector<8x128xf32>
    %c0_58 = arith.constant 0 : index
    %c0_59 = arith.constant 0 : index
    %152 = vector.load %arg7[%c0_58, %c0_59] : memref<8x128xf32, #tpu.memory_space<vmem>>, vector<8x128xf32>
    %153 = arith.mulf %143, %152 : vector<8x128xf32>
    %154 = arith.mulf %137, %145 : vector<8x128xf32>
    %155 = arith.addf %153, %154 : vector<8x128xf32>
    %156 = math.tanh %155 : vector<8x128xf32>
    %157 = arith.mulf %151, %156 : vector<8x128xf32>
    %c0_60 = arith.constant 0 : index
    %c0_61 = arith.constant 0 : index
    %158 = vector.load %arg7[%c0_60, %c0_61] : memref<8x128xf32, #tpu.memory_space<vmem>>, vector<8x128xf32>
    tpu.vector_store %arg7[%c0_60, %c0_61], %155 {strides = array<i32>} : memref<8x128xf32, #tpu.memory_space<vmem>>, vector<8x128xf32>,
    %c0_62 = arith.constant 0 : index
    %c0_63 = arith.constant 0 : index
    %159 = vector.load %arg6[%c0_62, %c0_63] : memref<8x128xf32, #tpu.memory_space<vmem>>, vector<8x128xf32>
    tpu.vector_store %arg6[%c0_62, %c0_63], %157 {strides = array<i32>} : memref<8x128xf32, #tpu.memory_space<vmem>>, vector<8x128xf32>,
    %160 = arith.truncf %157 : vector<8x128xf32> to vector<8x128xbf16>
    %c3 = arith.constant 3 : index
    %c0_64 = arith.constant 0 : index
    %c0_65 = arith.constant 0 : index
    %161 = vector.load %arg5[%c3, %c0_64, %c0_65] : memref<8x8x128xbf16, #tpu.memory_space<vmem>>, vector<1x8x128xbf16>
    %162 = vector.shape_cast %161 : vector<1x8x128xbf16> to vector<8x128xbf16>
    %163 = vector.shape_cast %160 : vector<8x128xbf16> to vector<1x8x128xbf16>
    tpu.vector_store %arg5[%c3, %c0_64, %c0_65], %163 {strides = array<i32>} : memref<8x8x128xbf16, #tpu.memory_space<vmem>>, vector<1x8x128xbf16>,
    %c0_66 = arith.constant 0 : index
    %c0_67 = arith.constant 0 : index
    %164 = vector.load %arg6[%c0_66, %c0_67] : memref<8x128xf32, #tpu.memory_space<vmem>>, vector<8x128xf32>
    %165 = arith.truncf %164 : vector<8x128xf32> to vector<8x128xbf16>
    %166 = vector.extract_strided_slice %10 {offsets = [4, 0, 0], sizes = [1, 8, 512], strides = [1, 1, 1]} : vector<8x8x512xf32> to vector<1x8x512xf32>
    %167 = vector.shape_cast %166 : vector<1x8x512xf32> to vector<8x512xf32>
    %cst_68 = arith.constant dense<0.000000e+00> : vector<8x512xf32>
    %168 = tpu.matmul %165, %11, %cst_68 {dimension_numbers = #tpu.dot_dimension_numbers<[1], [0], [0], [1], [0, 0, 1, 1], [], []>} : vector<8x128xbf16>, vector<128x512xbf16>, vector<8x512xf32> -> vector<8x512xf32>
    %169 = arith.addf %167, %168 : vector<8x512xf32>
    %170 = vector.extract_strided_slice %169 {offsets = [0, 0], sizes = [8, 128], strides = [1, 1]} : vector<8x512xf32> to vector<8x128xf32>
    %171 = arith.negf %170 : vector<8x128xf32>
    %172 = math.exp %171 : vector<8x128xf32>
    %cst_69 = arith.constant 1.000000e+00 : f32
    %173 = vector.broadcast %cst_69 : f32 to vector<8x128xf32>
    %174 = arith.addf %173, %172 : vector<8x128xf32>
    %175 = arith.divf %173, %174 : vector<8x128xf32>
    %176 = vector.extract_strided_slice %169 {offsets = [0, 128], sizes = [8, 128], strides = [1, 1]} : vector<8x512xf32> to vector<8x128xf32>
    %177 = arith.negf %176 : vector<8x128xf32>
    %178 = math.exp %177 : vector<8x128xf32>
    %cst_70 = arith.constant 1.000000e+00 : f32
    %179 = vector.broadcast %cst_70 : f32 to vector<8x128xf32>
    %180 = arith.addf %179, %178 : vector<8x128xf32>
    %181 = arith.divf %179, %180 : vector<8x128xf32>
    %182 = vector.extract_strided_slice %169 {offsets = [0, 256], sizes = [8, 128], strides = [1, 1]} : vector<8x512xf32> to vector<8x128xf32>
    %183 = math.tanh %182 : vector<8x128xf32>
    %184 = vector.extract_strided_slice %169 {offsets = [0, 384], sizes = [8, 128], strides = [1, 1]} : vector<8x512xf32> to vector<8x128xf32>
    %185 = arith.negf %184 : vector<8x128xf32>
    %186 = math.exp %185 : vector<8x128xf32>
    %cst_71 = arith.constant 1.000000e+00 : f32
    %187 = vector.broadcast %cst_71 : f32 to vector<8x128xf32>
    %188 = arith.addf %187, %186 : vector<8x128xf32>
    %189 = arith.divf %187, %188 : vector<8x128xf32>
    %c0_72 = arith.constant 0 : index
    %c0_73 = arith.constant 0 : index
    %190 = vector.load %arg7[%c0_72, %c0_73] : memref<8x128xf32, #tpu.memory_space<vmem>>, vector<8x128xf32>
    %191 = arith.mulf %181, %190 : vector<8x128xf32>
    %192 = arith.mulf %175, %183 : vector<8x128xf32>
    %193 = arith.addf %191, %192 : vector<8x128xf32>
    %194 = math.tanh %193 : vector<8x128xf32>
    %195 = arith.mulf %189, %194 : vector<8x128xf32>
    %c0_74 = arith.constant 0 : index
    %c0_75 = arith.constant 0 : index
    %196 = vector.load %arg7[%c0_74, %c0_75] : memref<8x128xf32, #tpu.memory_space<vmem>>, vector<8x128xf32>
    tpu.vector_store %arg7[%c0_74, %c0_75], %193 {strides = array<i32>} : memref<8x128xf32, #tpu.memory_space<vmem>>, vector<8x128xf32>,
    %c0_76 = arith.constant 0 : index
    %c0_77 = arith.constant 0 : index
    %197 = vector.load %arg6[%c0_76, %c0_77] : memref<8x128xf32, #tpu.memory_space<vmem>>, vector<8x128xf32>
    tpu.vector_store %arg6[%c0_76, %c0_77], %195 {strides = array<i32>} : memref<8x128xf32, #tpu.memory_space<vmem>>, vector<8x128xf32>,
    %198 = arith.truncf %195 : vector<8x128xf32> to vector<8x128xbf16>
    %c4 = arith.constant 4 : index
    %c0_78 = arith.constant 0 : index
    %c0_79 = arith.constant 0 : index
    %199 = vector.load %arg5[%c4, %c0_78, %c0_79] : memref<8x8x128xbf16, #tpu.memory_space<vmem>>, vector<1x8x128xbf16>
    %200 = vector.shape_cast %199 : vector<1x8x128xbf16> to vector<8x128xbf16>
    %201 = vector.shape_cast %198 : vector<8x128xbf16> to vector<1x8x128xbf16>
    tpu.vector_store %arg5[%c4, %c0_78, %c0_79], %201 {strides = array<i32>} : memref<8x8x128xbf16, #tpu.memory_space<vmem>>, vector<1x8x128xbf16>,
    %c0_80 = arith.constant 0 : index
    %c0_81 = arith.constant 0 : index
    %202 = vector.load %arg6[%c0_80, %c0_81] : memref<8x128xf32, #tpu.memory_space<vmem>>, vector<8x128xf32>
    %203 = arith.truncf %202 : vector<8x128xf32> to vector<8x128xbf16>
    %204 = vector.extract_strided_slice %10 {offsets = [5, 0, 0], sizes = [1, 8, 512], strides = [1, 1, 1]} : vector<8x8x512xf32> to vector<1x8x512xf32>
    %205 = vector.shape_cast %204 : vector<1x8x512xf32> to vector<8x512xf32>
    %cst_82 = arith.constant dense<0.000000e+00> : vector<8x512xf32>
    %206 = tpu.matmul %203, %11, %cst_82 {dimension_numbers = #tpu.dot_dimension_numbers<[1], [0], [0], [1], [0, 0, 1, 1], [], []>} : vector<8x128xbf16>, vector<128x512xbf16>, vector<8x512xf32> -> vector<8x512xf32>
    %207 = arith.addf %205, %206 : vector<8x512xf32>
    %208 = vector.extract_strided_slice %207 {offsets = [0, 0], sizes = [8, 128], strides = [1, 1]} : vector<8x512xf32> to vector<8x128xf32>
    %209 = arith.negf %208 : vector<8x128xf32>
    %210 = math.exp %209 : vector<8x128xf32>
    %cst_83 = arith.constant 1.000000e+00 : f32
    %211 = vector.broadcast %cst_83 : f32 to vector<8x128xf32>
    %212 = arith.addf %211, %210 : vector<8x128xf32>
    %213 = arith.divf %211, %212 : vector<8x128xf32>
    %214 = vector.extract_strided_slice %207 {offsets = [0, 128], sizes = [8, 128], strides = [1, 1]} : vector<8x512xf32> to vector<8x128xf32>
    %215 = arith.negf %214 : vector<8x128xf32>
    %216 = math.exp %215 : vector<8x128xf32>
    %cst_84 = arith.constant 1.000000e+00 : f32
    %217 = vector.broadcast %cst_84 : f32 to vector<8x128xf32>
    %218 = arith.addf %217, %216 : vector<8x128xf32>
    %219 = arith.divf %217, %218 : vector<8x128xf32>
    %220 = vector.extract_strided_slice %207 {offsets = [0, 256], sizes = [8, 128], strides = [1, 1]} : vector<8x512xf32> to vector<8x128xf32>
    %221 = math.tanh %220 : vector<8x128xf32>
    %222 = vector.extract_strided_slice %207 {offsets = [0, 384], sizes = [8, 128], strides = [1, 1]} : vector<8x512xf32> to vector<8x128xf32>
    %223 = arith.negf %222 : vector<8x128xf32>
    %224 = math.exp %223 : vector<8x128xf32>
    %cst_85 = arith.constant 1.000000e+00 : f32
    %225 = vector.broadcast %cst_85 : f32 to vector<8x128xf32>
    %226 = arith.addf %225, %224 : vector<8x128xf32>
    %227 = arith.divf %225, %226 : vector<8x128xf32>
    %c0_86 = arith.constant 0 : index
    %c0_87 = arith.constant 0 : index
    %228 = vector.load %arg7[%c0_86, %c0_87] : memref<8x128xf32, #tpu.memory_space<vmem>>, vector<8x128xf32>
    %229 = arith.mulf %219, %228 : vector<8x128xf32>
    %230 = arith.mulf %213, %221 : vector<8x128xf32>
    %231 = arith.addf %229, %230 : vector<8x128xf32>
    %232 = math.tanh %231 : vector<8x128xf32>
    %233 = arith.mulf %227, %232 : vector<8x128xf32>
    %c0_88 = arith.constant 0 : index
    %c0_89 = arith.constant 0 : index
    %234 = vector.load %arg7[%c0_88, %c0_89] : memref<8x128xf32, #tpu.memory_space<vmem>>, vector<8x128xf32>
    tpu.vector_store %arg7[%c0_88, %c0_89], %231 {strides = array<i32>} : memref<8x128xf32, #tpu.memory_space<vmem>>, vector<8x128xf32>,
    %c0_90 = arith.constant 0 : index
    %c0_91 = arith.constant 0 : index
    %235 = vector.load %arg6[%c0_90, %c0_91] : memref<8x128xf32, #tpu.memory_space<vmem>>, vector<8x128xf32>
    tpu.vector_store %arg6[%c0_90, %c0_91], %233 {strides = array<i32>} : memref<8x128xf32, #tpu.memory_space<vmem>>, vector<8x128xf32>,
    %236 = arith.truncf %233 : vector<8x128xf32> to vector<8x128xbf16>
    %c5 = arith.constant 5 : index
    %c0_92 = arith.constant 0 : index
    %c0_93 = arith.constant 0 : index
    %237 = vector.load %arg5[%c5, %c0_92, %c0_93] : memref<8x8x128xbf16, #tpu.memory_space<vmem>>, vector<1x8x128xbf16>
    %238 = vector.shape_cast %237 : vector<1x8x128xbf16> to vector<8x128xbf16>
    %239 = vector.shape_cast %236 : vector<8x128xbf16> to vector<1x8x128xbf16>
    tpu.vector_store %arg5[%c5, %c0_92, %c0_93], %239 {strides = array<i32>} : memref<8x8x128xbf16, #tpu.memory_space<vmem>>, vector<1x8x128xbf16>,
    %c0_94 = arith.constant 0 : index
    %c0_95 = arith.constant 0 : index
    %240 = vector.load %arg6[%c0_94, %c0_95] : memref<8x128xf32, #tpu.memory_space<vmem>>, vector<8x128xf32>
    %241 = arith.truncf %240 : vector<8x128xf32> to vector<8x128xbf16>
    %242 = vector.extract_strided_slice %10 {offsets = [6, 0, 0], sizes = [1, 8, 512], strides = [1, 1, 1]} : vector<8x8x512xf32> to vector<1x8x512xf32>
    %243 = vector.shape_cast %242 : vector<1x8x512xf32> to vector<8x512xf32>
    %cst_96 = arith.constant dense<0.000000e+00> : vector<8x512xf32>
    %244 = tpu.matmul %241, %11, %cst_96 {dimension_numbers = #tpu.dot_dimension_numbers<[1], [0], [0], [1], [0, 0, 1, 1], [], []>} : vector<8x128xbf16>, vector<128x512xbf16>, vector<8x512xf32> -> vector<8x512xf32>
    %245 = arith.addf %243, %244 : vector<8x512xf32>
    %246 = vector.extract_strided_slice %245 {offsets = [0, 0], sizes = [8, 128], strides = [1, 1]} : vector<8x512xf32> to vector<8x128xf32>
    %247 = arith.negf %246 : vector<8x128xf32>
    %248 = math.exp %247 : vector<8x128xf32>
    %cst_97 = arith.constant 1.000000e+00 : f32
    %249 = vector.broadcast %cst_97 : f32 to vector<8x128xf32>
    %250 = arith.addf %249, %248 : vector<8x128xf32>
    %251 = arith.divf %249, %250 : vector<8x128xf32>
    %252 = vector.extract_strided_slice %245 {offsets = [0, 128], sizes = [8, 128], strides = [1, 1]} : vector<8x512xf32> to vector<8x128xf32>
    %253 = arith.negf %252 : vector<8x128xf32>
    %254 = math.exp %253 : vector<8x128xf32>
    %cst_98 = arith.constant 1.000000e+00 : f32
    %255 = vector.broadcast %cst_98 : f32 to vector<8x128xf32>
    %256 = arith.addf %255, %254 : vector<8x128xf32>
    %257 = arith.divf %255, %256 : vector<8x128xf32>
    %258 = vector.extract_strided_slice %245 {offsets = [0, 256], sizes = [8, 128], strides = [1, 1]} : vector<8x512xf32> to vector<8x128xf32>
    %259 = math.tanh %258 : vector<8x128xf32>
    %260 = vector.extract_strided_slice %245 {offsets = [0, 384], sizes = [8, 128], strides = [1, 1]} : vector<8x512xf32> to vector<8x128xf32>
    %261 = arith.negf %260 : vector<8x128xf32>
    %262 = math.exp %261 : vector<8x128xf32>
    %cst_99 = arith.constant 1.000000e+00 : f32
    %263 = vector.broadcast %cst_99 : f32 to vector<8x128xf32>
    %264 = arith.addf %263, %262 : vector<8x128xf32>
    %265 = arith.divf %263, %264 : vector<8x128xf32>
    %c0_100 = arith.constant 0 : index
    %c0_101 = arith.constant 0 : index
    %266 = vector.load %arg7[%c0_100, %c0_101] : memref<8x128xf32, #tpu.memory_space<vmem>>, vector<8x128xf32>
    %267 = arith.mulf %257, %266 : vector<8x128xf32>
    %268 = arith.mulf %251, %259 : vector<8x128xf32>
    %269 = arith.addf %267, %268 : vector<8x128xf32>
    %270 = math.tanh %269 : vector<8x128xf32>
    %271 = arith.mulf %265, %270 : vector<8x128xf32>
    %c0_102 = arith.constant 0 : index
    %c0_103 = arith.constant 0 : index
    %272 = vector.load %arg7[%c0_102, %c0_103] : memref<8x128xf32, #tpu.memory_space<vmem>>, vector<8x128xf32>
    tpu.vector_store %arg7[%c0_102, %c0_103], %269 {strides = array<i32>} : memref<8x128xf32, #tpu.memory_space<vmem>>, vector<8x128xf32>,
    %c0_104 = arith.constant 0 : index
    %c0_105 = arith.constant 0 : index
    %273 = vector.load %arg6[%c0_104, %c0_105] : memref<8x128xf32, #tpu.memory_space<vmem>>, vector<8x128xf32>
    tpu.vector_store %arg6[%c0_104, %c0_105], %271 {strides = array<i32>} : memref<8x128xf32, #tpu.memory_space<vmem>>, vector<8x128xf32>,
    %274 = arith.truncf %271 : vector<8x128xf32> to vector<8x128xbf16>
    %c6 = arith.constant 6 : index
    %c0_106 = arith.constant 0 : index
    %c0_107 = arith.constant 0 : index
    %275 = vector.load %arg5[%c6, %c0_106, %c0_107] : memref<8x8x128xbf16, #tpu.memory_space<vmem>>, vector<1x8x128xbf16>
    %276 = vector.shape_cast %275 : vector<1x8x128xbf16> to vector<8x128xbf16>
    %277 = vector.shape_cast %274 : vector<8x128xbf16> to vector<1x8x128xbf16>
    tpu.vector_store %arg5[%c6, %c0_106, %c0_107], %277 {strides = array<i32>} : memref<8x8x128xbf16, #tpu.memory_space<vmem>>, vector<1x8x128xbf16>,
    %c0_108 = arith.constant 0 : index
    %c0_109 = arith.constant 0 : index
    %278 = vector.load %arg6[%c0_108, %c0_109] : memref<8x128xf32, #tpu.memory_space<vmem>>, vector<8x128xf32>
    %279 = arith.truncf %278 : vector<8x128xf32> to vector<8x128xbf16>
    %280 = vector.extract_strided_slice %10 {offsets = [7, 0, 0], sizes = [1, 8, 512], strides = [1, 1, 1]} : vector<8x8x512xf32> to vector<1x8x512xf32>
    %281 = vector.shape_cast %280 : vector<1x8x512xf32> to vector<8x512xf32>
    %cst_110 = arith.constant dense<0.000000e+00> : vector<8x512xf32>
    %282 = tpu.matmul %279, %11, %cst_110 {dimension_numbers = #tpu.dot_dimension_numbers<[1], [0], [0], [1], [0, 0, 1, 1], [], []>} : vector<8x128xbf16>, vector<128x512xbf16>, vector<8x512xf32> -> vector<8x512xf32>
    %283 = arith.addf %281, %282 : vector<8x512xf32>
    %284 = vector.extract_strided_slice %283 {offsets = [0, 0], sizes = [8, 128], strides = [1, 1]} : vector<8x512xf32> to vector<8x128xf32>
    %285 = arith.negf %284 : vector<8x128xf32>
    %286 = math.exp %285 : vector<8x128xf32>
    %cst_111 = arith.constant 1.000000e+00 : f32
    %287 = vector.broadcast %cst_111 : f32 to vector<8x128xf32>
    %288 = arith.addf %287, %286 : vector<8x128xf32>
    %289 = arith.divf %287, %288 : vector<8x128xf32>
    %290 = vector.extract_strided_slice %283 {offsets = [0, 128], sizes = [8, 128], strides = [1, 1]} : vector<8x512xf32> to vector<8x128xf32>
    %291 = arith.negf %290 : vector<8x128xf32>
    %292 = math.exp %291 : vector<8x128xf32>
    %cst_112 = arith.constant 1.000000e+00 : f32
    %293 = vector.broadcast %cst_112 : f32 to vector<8x128xf32>
    %294 = arith.addf %293, %292 : vector<8x128xf32>
    %295 = arith.divf %293, %294 : vector<8x128xf32>
    %296 = vector.extract_strided_slice %283 {offsets = [0, 256], sizes = [8, 128], strides = [1, 1]} : vector<8x512xf32> to vector<8x128xf32>
    %297 = math.tanh %296 : vector<8x128xf32>
    %298 = vector.extract_strided_slice %283 {offsets = [0, 384], sizes = [8, 128], strides = [1, 1]} : vector<8x512xf32> to vector<8x128xf32>
    %299 = arith.negf %298 : vector<8x128xf32>
    %300 = math.exp %299 : vector<8x128xf32>
    %cst_113 = arith.constant 1.000000e+00 : f32
    %301 = vector.broadcast %cst_113 : f32 to vector<8x128xf32>
    %302 = arith.addf %301, %300 : vector<8x128xf32>
    %303 = arith.divf %301, %302 : vector<8x128xf32>
    %c0_114 = arith.constant 0 : index
    %c0_115 = arith.constant 0 : index
    %304 = vector.load %arg7[%c0_114, %c0_115] : memref<8x128xf32, #tpu.memory_space<vmem>>, vector<8x128xf32>
    %305 = arith.mulf %295, %304 : vector<8x128xf32>
    %306 = arith.mulf %289, %297 : vector<8x128xf32>
    %307 = arith.addf %305, %306 : vector<8x128xf32>
    %308 = math.tanh %307 : vector<8x128xf32>
    %309 = arith.mulf %303, %308 : vector<8x128xf32>
    %c0_116 = arith.constant 0 : index
    %c0_117 = arith.constant 0 : index
    %310 = vector.load %arg7[%c0_116, %c0_117] : memref<8x128xf32, #tpu.memory_space<vmem>>, vector<8x128xf32>
    tpu.vector_store %arg7[%c0_116, %c0_117], %307 {strides = array<i32>} : memref<8x128xf32, #tpu.memory_space<vmem>>, vector<8x128xf32>,
    %c0_118 = arith.constant 0 : index
    %c0_119 = arith.constant 0 : index
    %311 = vector.load %arg6[%c0_118, %c0_119] : memref<8x128xf32, #tpu.memory_space<vmem>>, vector<8x128xf32>
    tpu.vector_store %arg6[%c0_118, %c0_119], %309 {strides = array<i32>} : memref<8x128xf32, #tpu.memory_space<vmem>>, vector<8x128xf32>,
    %312 = arith.truncf %309 : vector<8x128xf32> to vector<8x128xbf16>
    %c7 = arith.constant 7 : index
    %c0_120 = arith.constant 0 : index
    %c0_121 = arith.constant 0 : index
    %313 = vector.load %arg5[%c7, %c0_120, %c0_121] : memref<8x8x128xbf16, #tpu.memory_space<vmem>>, vector<1x8x128xbf16>
    %314 = vector.shape_cast %313 : vector<1x8x128xbf16> to vector<8x128xbf16>
    %315 = vector.shape_cast %312 : vector<8x128xbf16> to vector<1x8x128xbf16>
    tpu.vector_store %arg5[%c7, %c0_120, %c0_121], %315 {strides = array<i32>} : memref<8x8x128xbf16, #tpu.memory_space<vmem>>, vector<1x8x128xbf16>,
    return
  }
  func.func @transform_0(%arg0: i32) -> (i32, i32, i32) {
    %c0_i32 = arith.constant 0 : i32
    %c0_i32_0 = arith.constant 0 : i32
    %c0_i32_1 = arith.constant 0 : i32
    return %arg0, %c0_i32, %c0_i32_0 : i32, i32, i32
  }
  func.func @transform_1(%arg0: i32) -> (i32, i32) {
    %c0_i32 = arith.constant 0 : i32
    %c0_i32_0 = arith.constant 0 : i32
    %c0_i32_1 = arith.constant 0 : i32
    return %c0_i32, %c0_i32_0 : i32, i32
  }
  func.func @transform_2(%arg0: i32) -> (i32, i32) {
    %c0_i32 = arith.constant 0 : i32
    %c0_i32_0 = arith.constant 0 : i32
    %c0_i32_1 = arith.constant 0 : i32
    return %c0_i32, %c0_i32_0 : i32, i32
  }
  func.func @transform_3(%arg0: i32) -> (i32, i32) {
    %c0_i32 = arith.constant 0 : i32
    %c0_i32_0 = arith.constant 0 : i32
    %c0_i32_1 = arith.constant 0 : i32
    return %c0_i32, %c0_i32_0 : i32, i32
  }
  func.func @transform_4(%arg0: i32) -> (i32, i32, i32) {
    %c0_i32 = arith.constant 0 : i32
    %c0_i32_0 = arith.constant 0 : i32
    %c0_i32_1 = arith.constant 0 : i32
    return %arg0, %c0_i32, %c0_i32_0 : i32, i32, i32
  }
}

module attributes {stable_mosaic.version = 11 : i64} {
  func.func @proj_kernel(%arg0: i32, %arg1: i32, %arg2: memref<256x128xbf16, #tpu.memory_space<vmem>>, %arg3: memref<128x256xbf16, #tpu.memory_space<vmem>>, %arg4: memref<1x256xf32, #tpu.memory_space<vmem>>, %arg5: memref<256x256xf32, #tpu.memory_space<vmem>>) attributes {dimension_semantics = [#tpu.dimension_semantics<parallel>, #tpu.dimension_semantics<parallel>], iteration_bounds = array<i64: 1, 1>, scalar_prefetch = 0 : i64, scratch_operands = 0 : i64, tpu.core_type = #tpu.core_type<tc>, window_params = [{transform_indices = @transform_0, window_bounds = array<i64: 256, 128>}, {transform_indices = @transform_1, window_bounds = array<i64: 128, 256>}, {transform_indices = @transform_2, window_bounds = array<i64: 1, 256>}, {transform_indices = @transform_3, window_bounds = array<i64: 256, 256>}]} {
    %c0 = arith.constant 0 : index
    %c0_0 = arith.constant 0 : index
    %0 = vector.load %arg2[%c0, %c0_0] : memref<256x128xbf16, #tpu.memory_space<vmem>>, vector<256x128xbf16>
    %c0_1 = arith.constant 0 : index
    %c0_2 = arith.constant 0 : index
    %1 = vector.load %arg3[%c0_1, %c0_2] : memref<128x256xbf16, #tpu.memory_space<vmem>>, vector<128x256xbf16>
    %cst = arith.constant dense<0.000000e+00> : vector<256x256xf32>
    %2 = tpu.matmul %0, %1, %cst {dimension_numbers = #tpu.dot_dimension_numbers<[1], [0], [0], [1], [0, 0, 1, 1], [], []>} : vector<256x128xbf16>, vector<128x256xbf16>, vector<256x256xf32> -> vector<256x256xf32>
    %c0_3 = arith.constant 0 : index
    %c0_4 = arith.constant 0 : index
    %3 = vector.load %arg4[%c0_3, %c0_4] : memref<1x256xf32, #tpu.memory_space<vmem>>, vector<1x256xf32>
    %4 = vector.broadcast %3 : vector<1x256xf32> to vector<256x256xf32>
    %5 = arith.addf %2, %4 : vector<256x256xf32>
    %c0_5 = arith.constant 0 : index
    %c0_6 = arith.constant 0 : index
    %6 = vector.load %arg5[%c0_5, %c0_6] : memref<256x256xf32, #tpu.memory_space<vmem>>, vector<256x256xf32>
    tpu.vector_store %arg5[%c0_5, %c0_6], %5 {strides = array<i32>} : memref<256x256xf32, #tpu.memory_space<vmem>>, vector<256x256xf32>,
    return
  }
  func.func @transform_0(%arg0: i32, %arg1: i32) -> (i32, i32) {
    %c0_i32 = arith.constant 0 : i32
    %c0_i32_0 = arith.constant 0 : i32
    return %arg1, %c0_i32 : i32, i32
  }
  func.func @transform_1(%arg0: i32, %arg1: i32) -> (i32, i32) {
    %c0_i32 = arith.constant 0 : i32
    %c0_i32_0 = arith.constant 0 : i32
    return %c0_i32, %arg0 : i32, i32
  }
  func.func @transform_2(%arg0: i32, %arg1: i32) -> (i32, i32) {
    %c0_i32 = arith.constant 0 : i32
    %c0_i32_0 = arith.constant 0 : i32
    return %c0_i32, %arg0 : i32, i32
  }
  func.func @transform_3(%arg0: i32, %arg1: i32) -> (i32, i32) {
    %c0_i32 = arith.constant 0 : i32
    return %arg1, %arg0 : i32, i32
  }
}

module attributes {stable_mosaic.version = 11 : i64} {
  func.func @lstm_kernel(%arg0: i32, %arg1: memref<8x8x128xbf16, #tpu.memory_space<vmem>>, %arg2: memref<128x512xbf16, #tpu.memory_space<vmem>>, %arg3: memref<128x512xbf16, #tpu.memory_space<vmem>>, %arg4: memref<1x512xf32, #tpu.memory_space<vmem>>, %arg5: memref<8x8x128xbf16, #tpu.memory_space<vmem>>, %arg6: memref<8x128xf32, #tpu.memory_space<vmem>>, %arg7: memref<8x128xf32, #tpu.memory_space<vmem>>) attributes {dimension_semantics = [#tpu.dimension_semantics<arbitrary>], iteration_bounds = array<i64: 4>, scalar_prefetch = 0 : i64, scratch_operands = 2 : i64, tpu.core_type = #tpu.core_type<tc>, window_params = [{transform_indices = @transform_0, window_bounds = array<i64: 8, 8, 128>}, {pipeline_mode = #tpu.pipeline_mode<synchronous>, transform_indices = @transform_1, window_bounds = array<i64: 128, 512>}, {pipeline_mode = #tpu.pipeline_mode<synchronous>, transform_indices = @transform_2, window_bounds = array<i64: 128, 512>}, {pipeline_mode = #tpu.pipeline_mode<synchronous>, transform_indices = @transform_3, window_bounds = array<i64: 1, 512>}, {transform_indices = @transform_4, window_bounds = array<i64: 8, 8, 128>}]} {
    %c0_i32 = arith.constant 0 : i32
    %0 = arith.cmpi eq, %arg0, %c0_i32 : i32
    %1 = arith.extui %0 : i1 to i32
    %c0_i32_0 = arith.constant 0 : i32
    %2 = arith.cmpi ne, %1, %c0_i32_0 : i32
    scf.if %2 {
      %cst_122 = arith.constant 0.000000e+00 : f32
      %316 = vector.broadcast %cst_122 : f32 to vector<8x128xf32>
      %c0_123 = arith.constant 0 : index
      %c0_124 = arith.constant 0 : index
      %317 = vector.load %arg6[%c0_123, %c0_124] : memref<8x128xf32, #tpu.memory_space<vmem>>, vector<8x128xf32>
      tpu.vector_store %arg6[%c0_123, %c0_124], %316 {strides = array<i32>} : memref<8x128xf32, #tpu.memory_space<vmem>>, vector<8x128xf32>,
      %cst_125 = arith.constant 0.000000e+00 : f32
      %318 = vector.broadcast %cst_125 : f32 to vector<8x128xf32>
      %c0_126 = arith.constant 0 : index
      %c0_127 = arith.constant 0 : index
      %319 = vector.load %arg7[%c0_126, %c0_127] : memref<8x128xf32, #tpu.memory_space<vmem>>, vector<8x128xf32>
      tpu.vector_store %arg7[%c0_126, %c0_127], %318 {strides = array<i32>} : memref<8x128xf32, #tpu.memory_space<vmem>>, vector<8x128xf32>,
    } else {
    }
    %c0 = arith.constant 0 : index
    %c0_1 = arith.constant 0 : index
    %c0_2 = arith.constant 0 : index
    %3 = vector.load %arg1[%c0, %c0_1, %c0_2] : memref<8x8x128xbf16, #tpu.memory_space<vmem>>, vector<8x8x128xbf16>
    %4 = vector.shape_cast %3 : vector<8x8x128xbf16> to vector<64x128xbf16>
    %c0_3 = arith.constant 0 : index
    %c0_4 = arith.constant 0 : index
    %5 = vector.load %arg2[%c0_3, %c0_4] : memref<128x512xbf16, #tpu.memory_space<vmem>>, vector<128x512xbf16>
    %cst = arith.constant dense<0.000000e+00> : vector<64x512xf32>
    %6 = tpu.matmul %4, %5, %cst {dimension_numbers = #tpu.dot_dimension_numbers<[1], [0], [0], [1], [0, 0, 1, 1], [], []>} : vector<64x128xbf16>, vector<128x512xbf16>, vector<64x512xf32> -> vector<64x512xf32>
    %c0_5 = arith.constant 0 : index
    %c0_6 = arith.constant 0 : index
    %7 = vector.load %arg4[%c0_5, %c0_6] : memref<1x512xf32, #tpu.memory_space<vmem>>, vector<1x512xf32>
    %8 = vector.broadcast %7 : vector<1x512xf32> to vector<64x512xf32>
    %9 = arith.addf %6, %8 : vector<64x512xf32>
    %10 = vector.shape_cast %9 : vector<64x512xf32> to vector<8x8x512xf32>
    %c0_7 = arith.constant 0 : index
    %c0_8 = arith.constant 0 : index
    %11 = vector.load %arg3[%c0_7, %c0_8] : memref<128x512xbf16, #tpu.memory_space<vmem>>, vector<128x512xbf16>
    %c0_9 = arith.constant 0 : index
    %c0_10 = arith.constant 0 : index
    %12 = vector.load %arg6[%c0_9, %c0_10] : memref<8x128xf32, #tpu.memory_space<vmem>>, vector<8x128xf32>
    %13 = arith.truncf %12 : vector<8x128xf32> to vector<8x128xbf16>
    %14 = vector.extract_strided_slice %10 {offsets = [0, 0, 0], sizes = [1, 8, 512], strides = [1, 1, 1]} : vector<8x8x512xf32> to vector<1x8x512xf32>
    %15 = vector.shape_cast %14 : vector<1x8x512xf32> to vector<8x512xf32>
    %cst_11 = arith.constant dense<0.000000e+00> : vector<8x512xf32>
    %16 = tpu.matmul %13, %11, %cst_11 {dimension_numbers = #tpu.dot_dimension_numbers<[1], [0], [0], [1], [0, 0, 1, 1], [], []>} : vector<8x128xbf16>, vector<128x512xbf16>, vector<8x512xf32> -> vector<8x512xf32>
    %17 = arith.addf %15, %16 : vector<8x512xf32>
    %18 = vector.extract_strided_slice %17 {offsets = [0, 0], sizes = [8, 128], strides = [1, 1]} : vector<8x512xf32> to vector<8x128xf32>
    %19 = arith.negf %18 : vector<8x128xf32>
    %20 = math.exp %19 : vector<8x128xf32>
    %cst_12 = arith.constant 1.000000e+00 : f32
    %21 = vector.broadcast %cst_12 : f32 to vector<8x128xf32>
    %22 = arith.addf %21, %20 : vector<8x128xf32>
    %23 = arith.divf %21, %22 : vector<8x128xf32>
    %24 = vector.extract_strided_slice %17 {offsets = [0, 128], sizes = [8, 128], strides = [1, 1]} : vector<8x512xf32> to vector<8x128xf32>
    %25 = arith.negf %24 : vector<8x128xf32>
    %26 = math.exp %25 : vector<8x128xf32>
    %cst_13 = arith.constant 1.000000e+00 : f32
    %27 = vector.broadcast %cst_13 : f32 to vector<8x128xf32>
    %28 = arith.addf %27, %26 : vector<8x128xf32>
    %29 = arith.divf %27, %28 : vector<8x128xf32>
    %30 = vector.extract_strided_slice %17 {offsets = [0, 256], sizes = [8, 128], strides = [1, 1]} : vector<8x512xf32> to vector<8x128xf32>
    %31 = math.tanh %30 : vector<8x128xf32>
    %32 = vector.extract_strided_slice %17 {offsets = [0, 384], sizes = [8, 128], strides = [1, 1]} : vector<8x512xf32> to vector<8x128xf32>
    %33 = arith.negf %32 : vector<8x128xf32>
    %34 = math.exp %33 : vector<8x128xf32>
    %cst_14 = arith.constant 1.000000e+00 : f32
    %35 = vector.broadcast %cst_14 : f32 to vector<8x128xf32>
    %36 = arith.addf %35, %34 : vector<8x128xf32>
    %37 = arith.divf %35, %36 : vector<8x128xf32>
    %c0_15 = arith.constant 0 : index
    %c0_16 = arith.constant 0 : index
    %38 = vector.load %arg7[%c0_15, %c0_16] : memref<8x128xf32, #tpu.memory_space<vmem>>, vector<8x128xf32>
    %39 = arith.mulf %29, %38 : vector<8x128xf32>
    %40 = arith.mulf %23, %31 : vector<8x128xf32>
    %41 = arith.addf %39, %40 : vector<8x128xf32>
    %42 = math.tanh %41 : vector<8x128xf32>
    %43 = arith.mulf %37, %42 : vector<8x128xf32>
    %c0_17 = arith.constant 0 : index
    %c0_18 = arith.constant 0 : index
    %44 = vector.load %arg7[%c0_17, %c0_18] : memref<8x128xf32, #tpu.memory_space<vmem>>, vector<8x128xf32>
    tpu.vector_store %arg7[%c0_17, %c0_18], %41 {strides = array<i32>} : memref<8x128xf32, #tpu.memory_space<vmem>>, vector<8x128xf32>,
    %c0_19 = arith.constant 0 : index
    %c0_20 = arith.constant 0 : index
    %45 = vector.load %arg6[%c0_19, %c0_20] : memref<8x128xf32, #tpu.memory_space<vmem>>, vector<8x128xf32>
    tpu.vector_store %arg6[%c0_19, %c0_20], %43 {strides = array<i32>} : memref<8x128xf32, #tpu.memory_space<vmem>>, vector<8x128xf32>,
    %46 = arith.truncf %43 : vector<8x128xf32> to vector<8x128xbf16>
    %c0_21 = arith.constant 0 : index
    %c0_22 = arith.constant 0 : index
    %c0_23 = arith.constant 0 : index
    %47 = vector.load %arg5[%c0_21, %c0_22, %c0_23] : memref<8x8x128xbf16, #tpu.memory_space<vmem>>, vector<1x8x128xbf16>
    %48 = vector.shape_cast %47 : vector<1x8x128xbf16> to vector<8x128xbf16>
    %49 = vector.shape_cast %46 : vector<8x128xbf16> to vector<1x8x128xbf16>
    tpu.vector_store %arg5[%c0_21, %c0_22, %c0_23], %49 {strides = array<i32>} : memref<8x8x128xbf16, #tpu.memory_space<vmem>>, vector<1x8x128xbf16>,
    %c0_24 = arith.constant 0 : index
    %c0_25 = arith.constant 0 : index
    %50 = vector.load %arg6[%c0_24, %c0_25] : memref<8x128xf32, #tpu.memory_space<vmem>>, vector<8x128xf32>
    %51 = arith.truncf %50 : vector<8x128xf32> to vector<8x128xbf16>
    %52 = vector.extract_strided_slice %10 {offsets = [1, 0, 0], sizes = [1, 8, 512], strides = [1, 1, 1]} : vector<8x8x512xf32> to vector<1x8x512xf32>
    %53 = vector.shape_cast %52 : vector<1x8x512xf32> to vector<8x512xf32>
    %cst_26 = arith.constant dense<0.000000e+00> : vector<8x512xf32>
    %54 = tpu.matmul %51, %11, %cst_26 {dimension_numbers = #tpu.dot_dimension_numbers<[1], [0], [0], [1], [0, 0, 1, 1], [], []>} : vector<8x128xbf16>, vector<128x512xbf16>, vector<8x512xf32> -> vector<8x512xf32>
    %55 = arith.addf %53, %54 : vector<8x512xf32>
    %56 = vector.extract_strided_slice %55 {offsets = [0, 0], sizes = [8, 128], strides = [1, 1]} : vector<8x512xf32> to vector<8x128xf32>
    %57 = arith.negf %56 : vector<8x128xf32>
    %58 = math.exp %57 : vector<8x128xf32>
    %cst_27 = arith.constant 1.000000e+00 : f32
    %59 = vector.broadcast %cst_27 : f32 to vector<8x128xf32>
    %60 = arith.addf %59, %58 : vector<8x128xf32>
    %61 = arith.divf %59, %60 : vector<8x128xf32>
    %62 = vector.extract_strided_slice %55 {offsets = [0, 128], sizes = [8, 128], strides = [1, 1]} : vector<8x512xf32> to vector<8x128xf32>
    %63 = arith.negf %62 : vector<8x128xf32>
    %64 = math.exp %63 : vector<8x128xf32>
    %cst_28 = arith.constant 1.000000e+00 : f32
    %65 = vector.broadcast %cst_28 : f32 to vector<8x128xf32>
    %66 = arith.addf %65, %64 : vector<8x128xf32>
    %67 = arith.divf %65, %66 : vector<8x128xf32>
    %68 = vector.extract_strided_slice %55 {offsets = [0, 256], sizes = [8, 128], strides = [1, 1]} : vector<8x512xf32> to vector<8x128xf32>
    %69 = math.tanh %68 : vector<8x128xf32>
    %70 = vector.extract_strided_slice %55 {offsets = [0, 384], sizes = [8, 128], strides = [1, 1]} : vector<8x512xf32> to vector<8x128xf32>
    %71 = arith.negf %70 : vector<8x128xf32>
    %72 = math.exp %71 : vector<8x128xf32>
    %cst_29 = arith.constant 1.000000e+00 : f32
    %73 = vector.broadcast %cst_29 : f32 to vector<8x128xf32>
    %74 = arith.addf %73, %72 : vector<8x128xf32>
    %75 = arith.divf %73, %74 : vector<8x128xf32>
    %c0_30 = arith.constant 0 : index
    %c0_31 = arith.constant 0 : index
    %76 = vector.load %arg7[%c0_30, %c0_31] : memref<8x128xf32, #tpu.memory_space<vmem>>, vector<8x128xf32>
    %77 = arith.mulf %67, %76 : vector<8x128xf32>
    %78 = arith.mulf %61, %69 : vector<8x128xf32>
    %79 = arith.addf %77, %78 : vector<8x128xf32>
    %80 = math.tanh %79 : vector<8x128xf32>
    %81 = arith.mulf %75, %80 : vector<8x128xf32>
    %c0_32 = arith.constant 0 : index
    %c0_33 = arith.constant 0 : index
    %82 = vector.load %arg7[%c0_32, %c0_33] : memref<8x128xf32, #tpu.memory_space<vmem>>, vector<8x128xf32>
    tpu.vector_store %arg7[%c0_32, %c0_33], %79 {strides = array<i32>} : memref<8x128xf32, #tpu.memory_space<vmem>>, vector<8x128xf32>,
    %c0_34 = arith.constant 0 : index
    %c0_35 = arith.constant 0 : index
    %83 = vector.load %arg6[%c0_34, %c0_35] : memref<8x128xf32, #tpu.memory_space<vmem>>, vector<8x128xf32>
    tpu.vector_store %arg6[%c0_34, %c0_35], %81 {strides = array<i32>} : memref<8x128xf32, #tpu.memory_space<vmem>>, vector<8x128xf32>,
    %84 = arith.truncf %81 : vector<8x128xf32> to vector<8x128xbf16>
    %c1 = arith.constant 1 : index
    %c0_36 = arith.constant 0 : index
    %c0_37 = arith.constant 0 : index
    %85 = vector.load %arg5[%c1, %c0_36, %c0_37] : memref<8x8x128xbf16, #tpu.memory_space<vmem>>, vector<1x8x128xbf16>
    %86 = vector.shape_cast %85 : vector<1x8x128xbf16> to vector<8x128xbf16>
    %87 = vector.shape_cast %84 : vector<8x128xbf16> to vector<1x8x128xbf16>
    tpu.vector_store %arg5[%c1, %c0_36, %c0_37], %87 {strides = array<i32>} : memref<8x8x128xbf16, #tpu.memory_space<vmem>>, vector<1x8x128xbf16>,
    %c0_38 = arith.constant 0 : index
    %c0_39 = arith.constant 0 : index
    %88 = vector.load %arg6[%c0_38, %c0_39] : memref<8x128xf32, #tpu.memory_space<vmem>>, vector<8x128xf32>
    %89 = arith.truncf %88 : vector<8x128xf32> to vector<8x128xbf16>
    %90 = vector.extract_strided_slice %10 {offsets = [2, 0, 0], sizes = [1, 8, 512], strides = [1, 1, 1]} : vector<8x8x512xf32> to vector<1x8x512xf32>
    %91 = vector.shape_cast %90 : vector<1x8x512xf32> to vector<8x512xf32>
    %cst_40 = arith.constant dense<0.000000e+00> : vector<8x512xf32>
    %92 = tpu.matmul %89, %11, %cst_40 {dimension_numbers = #tpu.dot_dimension_numbers<[1], [0], [0], [1], [0, 0, 1, 1], [], []>} : vector<8x128xbf16>, vector<128x512xbf16>, vector<8x512xf32> -> vector<8x512xf32>
    %93 = arith.addf %91, %92 : vector<8x512xf32>
    %94 = vector.extract_strided_slice %93 {offsets = [0, 0], sizes = [8, 128], strides = [1, 1]} : vector<8x512xf32> to vector<8x128xf32>
    %95 = arith.negf %94 : vector<8x128xf32>
    %96 = math.exp %95 : vector<8x128xf32>
    %cst_41 = arith.constant 1.000000e+00 : f32
    %97 = vector.broadcast %cst_41 : f32 to vector<8x128xf32>
    %98 = arith.addf %97, %96 : vector<8x128xf32>
    %99 = arith.divf %97, %98 : vector<8x128xf32>
    %100 = vector.extract_strided_slice %93 {offsets = [0, 128], sizes = [8, 128], strides = [1, 1]} : vector<8x512xf32> to vector<8x128xf32>
    %101 = arith.negf %100 : vector<8x128xf32>
    %102 = math.exp %101 : vector<8x128xf32>
    %cst_42 = arith.constant 1.000000e+00 : f32
    %103 = vector.broadcast %cst_42 : f32 to vector<8x128xf32>
    %104 = arith.addf %103, %102 : vector<8x128xf32>
    %105 = arith.divf %103, %104 : vector<8x128xf32>
    %106 = vector.extract_strided_slice %93 {offsets = [0, 256], sizes = [8, 128], strides = [1, 1]} : vector<8x512xf32> to vector<8x128xf32>
    %107 = math.tanh %106 : vector<8x128xf32>
    %108 = vector.extract_strided_slice %93 {offsets = [0, 384], sizes = [8, 128], strides = [1, 1]} : vector<8x512xf32> to vector<8x128xf32>
    %109 = arith.negf %108 : vector<8x128xf32>
    %110 = math.exp %109 : vector<8x128xf32>
    %cst_43 = arith.constant 1.000000e+00 : f32
    %111 = vector.broadcast %cst_43 : f32 to vector<8x128xf32>
    %112 = arith.addf %111, %110 : vector<8x128xf32>
    %113 = arith.divf %111, %112 : vector<8x128xf32>
    %c0_44 = arith.constant 0 : index
    %c0_45 = arith.constant 0 : index
    %114 = vector.load %arg7[%c0_44, %c0_45] : memref<8x128xf32, #tpu.memory_space<vmem>>, vector<8x128xf32>
    %115 = arith.mulf %105, %114 : vector<8x128xf32>
    %116 = arith.mulf %99, %107 : vector<8x128xf32>
    %117 = arith.addf %115, %116 : vector<8x128xf32>
    %118 = math.tanh %117 : vector<8x128xf32>
    %119 = arith.mulf %113, %118 : vector<8x128xf32>
    %c0_46 = arith.constant 0 : index
    %c0_47 = arith.constant 0 : index
    %120 = vector.load %arg7[%c0_46, %c0_47] : memref<8x128xf32, #tpu.memory_space<vmem>>, vector<8x128xf32>
    tpu.vector_store %arg7[%c0_46, %c0_47], %117 {strides = array<i32>} : memref<8x128xf32, #tpu.memory_space<vmem>>, vector<8x128xf32>,
    %c0_48 = arith.constant 0 : index
    %c0_49 = arith.constant 0 : index
    %121 = vector.load %arg6[%c0_48, %c0_49] : memref<8x128xf32, #tpu.memory_space<vmem>>, vector<8x128xf32>
    tpu.vector_store %arg6[%c0_48, %c0_49], %119 {strides = array<i32>} : memref<8x128xf32, #tpu.memory_space<vmem>>, vector<8x128xf32>,
    %122 = arith.truncf %119 : vector<8x128xf32> to vector<8x128xbf16>
    %c2 = arith.constant 2 : index
    %c0_50 = arith.constant 0 : index
    %c0_51 = arith.constant 0 : index
    %123 = vector.load %arg5[%c2, %c0_50, %c0_51] : memref<8x8x128xbf16, #tpu.memory_space<vmem>>, vector<1x8x128xbf16>
    %124 = vector.shape_cast %123 : vector<1x8x128xbf16> to vector<8x128xbf16>
    %125 = vector.shape_cast %122 : vector<8x128xbf16> to vector<1x8x128xbf16>
    tpu.vector_store %arg5[%c2, %c0_50, %c0_51], %125 {strides = array<i32>} : memref<8x8x128xbf16, #tpu.memory_space<vmem>>, vector<1x8x128xbf16>,
    %c0_52 = arith.constant 0 : index
    %c0_53 = arith.constant 0 : index
    %126 = vector.load %arg6[%c0_52, %c0_53] : memref<8x128xf32, #tpu.memory_space<vmem>>, vector<8x128xf32>
    %127 = arith.truncf %126 : vector<8x128xf32> to vector<8x128xbf16>
    %128 = vector.extract_strided_slice %10 {offsets = [3, 0, 0], sizes = [1, 8, 512], strides = [1, 1, 1]} : vector<8x8x512xf32> to vector<1x8x512xf32>
    %129 = vector.shape_cast %128 : vector<1x8x512xf32> to vector<8x512xf32>
    %cst_54 = arith.constant dense<0.000000e+00> : vector<8x512xf32>
    %130 = tpu.matmul %127, %11, %cst_54 {dimension_numbers = #tpu.dot_dimension_numbers<[1], [0], [0], [1], [0, 0, 1, 1], [], []>} : vector<8x128xbf16>, vector<128x512xbf16>, vector<8x512xf32> -> vector<8x512xf32>
    %131 = arith.addf %129, %130 : vector<8x512xf32>
    %132 = vector.extract_strided_slice %131 {offsets = [0, 0], sizes = [8, 128], strides = [1, 1]} : vector<8x512xf32> to vector<8x128xf32>
    %133 = arith.negf %132 : vector<8x128xf32>
    %134 = math.exp %133 : vector<8x128xf32>
    %cst_55 = arith.constant 1.000000e+00 : f32
    %135 = vector.broadcast %cst_55 : f32 to vector<8x128xf32>
    %136 = arith.addf %135, %134 : vector<8x128xf32>
    %137 = arith.divf %135, %136 : vector<8x128xf32>
    %138 = vector.extract_strided_slice %131 {offsets = [0, 128], sizes = [8, 128], strides = [1, 1]} : vector<8x512xf32> to vector<8x128xf32>
    %139 = arith.negf %138 : vector<8x128xf32>
    %140 = math.exp %139 : vector<8x128xf32>
    %cst_56 = arith.constant 1.000000e+00 : f32
    %141 = vector.broadcast %cst_56 : f32 to vector<8x128xf32>
    %142 = arith.addf %141, %140 : vector<8x128xf32>
    %143 = arith.divf %141, %142 : vector<8x128xf32>
    %144 = vector.extract_strided_slice %131 {offsets = [0, 256], sizes = [8, 128], strides = [1, 1]} : vector<8x512xf32> to vector<8x128xf32>
    %145 = math.tanh %144 : vector<8x128xf32>
    %146 = vector.extract_strided_slice %131 {offsets = [0, 384], sizes = [8, 128], strides = [1, 1]} : vector<8x512xf32> to vector<8x128xf32>
    %147 = arith.negf %146 : vector<8x128xf32>
    %148 = math.exp %147 : vector<8x128xf32>
    %cst_57 = arith.constant 1.000000e+00 : f32
    %149 = vector.broadcast %cst_57 : f32 to vector<8x128xf32>
    %150 = arith.addf %149, %148 : vector<8x128xf32>
    %151 = arith.divf %149, %150 : vector<8x128xf32>
    %c0_58 = arith.constant 0 : index
    %c0_59 = arith.constant 0 : index
    %152 = vector.load %arg7[%c0_58, %c0_59] : memref<8x128xf32, #tpu.memory_space<vmem>>, vector<8x128xf32>
    %153 = arith.mulf %143, %152 : vector<8x128xf32>
    %154 = arith.mulf %137, %145 : vector<8x128xf32>
    %155 = arith.addf %153, %154 : vector<8x128xf32>
    %156 = math.tanh %155 : vector<8x128xf32>
    %157 = arith.mulf %151, %156 : vector<8x128xf32>
    %c0_60 = arith.constant 0 : index
    %c0_61 = arith.constant 0 : index
    %158 = vector.load %arg7[%c0_60, %c0_61] : memref<8x128xf32, #tpu.memory_space<vmem>>, vector<8x128xf32>
    tpu.vector_store %arg7[%c0_60, %c0_61], %155 {strides = array<i32>} : memref<8x128xf32, #tpu.memory_space<vmem>>, vector<8x128xf32>,
    %c0_62 = arith.constant 0 : index
    %c0_63 = arith.constant 0 : index
    %159 = vector.load %arg6[%c0_62, %c0_63] : memref<8x128xf32, #tpu.memory_space<vmem>>, vector<8x128xf32>
    tpu.vector_store %arg6[%c0_62, %c0_63], %157 {strides = array<i32>} : memref<8x128xf32, #tpu.memory_space<vmem>>, vector<8x128xf32>,
    %160 = arith.truncf %157 : vector<8x128xf32> to vector<8x128xbf16>
    %c3 = arith.constant 3 : index
    %c0_64 = arith.constant 0 : index
    %c0_65 = arith.constant 0 : index
    %161 = vector.load %arg5[%c3, %c0_64, %c0_65] : memref<8x8x128xbf16, #tpu.memory_space<vmem>>, vector<1x8x128xbf16>
    %162 = vector.shape_cast %161 : vector<1x8x128xbf16> to vector<8x128xbf16>
    %163 = vector.shape_cast %160 : vector<8x128xbf16> to vector<1x8x128xbf16>
    tpu.vector_store %arg5[%c3, %c0_64, %c0_65], %163 {strides = array<i32>} : memref<8x8x128xbf16, #tpu.memory_space<vmem>>, vector<1x8x128xbf16>,
    %c0_66 = arith.constant 0 : index
    %c0_67 = arith.constant 0 : index
    %164 = vector.load %arg6[%c0_66, %c0_67] : memref<8x128xf32, #tpu.memory_space<vmem>>, vector<8x128xf32>
    %165 = arith.truncf %164 : vector<8x128xf32> to vector<8x128xbf16>
    %166 = vector.extract_strided_slice %10 {offsets = [4, 0, 0], sizes = [1, 8, 512], strides = [1, 1, 1]} : vector<8x8x512xf32> to vector<1x8x512xf32>
    %167 = vector.shape_cast %166 : vector<1x8x512xf32> to vector<8x512xf32>
    %cst_68 = arith.constant dense<0.000000e+00> : vector<8x512xf32>
    %168 = tpu.matmul %165, %11, %cst_68 {dimension_numbers = #tpu.dot_dimension_numbers<[1], [0], [0], [1], [0, 0, 1, 1], [], []>} : vector<8x128xbf16>, vector<128x512xbf16>, vector<8x512xf32> -> vector<8x512xf32>
    %169 = arith.addf %167, %168 : vector<8x512xf32>
    %170 = vector.extract_strided_slice %169 {offsets = [0, 0], sizes = [8, 128], strides = [1, 1]} : vector<8x512xf32> to vector<8x128xf32>
    %171 = arith.negf %170 : vector<8x128xf32>
    %172 = math.exp %171 : vector<8x128xf32>
    %cst_69 = arith.constant 1.000000e+00 : f32
    %173 = vector.broadcast %cst_69 : f32 to vector<8x128xf32>
    %174 = arith.addf %173, %172 : vector<8x128xf32>
    %175 = arith.divf %173, %174 : vector<8x128xf32>
    %176 = vector.extract_strided_slice %169 {offsets = [0, 128], sizes = [8, 128], strides = [1, 1]} : vector<8x512xf32> to vector<8x128xf32>
    %177 = arith.negf %176 : vector<8x128xf32>
    %178 = math.exp %177 : vector<8x128xf32>
    %cst_70 = arith.constant 1.000000e+00 : f32
    %179 = vector.broadcast %cst_70 : f32 to vector<8x128xf32>
    %180 = arith.addf %179, %178 : vector<8x128xf32>
    %181 = arith.divf %179, %180 : vector<8x128xf32>
    %182 = vector.extract_strided_slice %169 {offsets = [0, 256], sizes = [8, 128], strides = [1, 1]} : vector<8x512xf32> to vector<8x128xf32>
    %183 = math.tanh %182 : vector<8x128xf32>
    %184 = vector.extract_strided_slice %169 {offsets = [0, 384], sizes = [8, 128], strides = [1, 1]} : vector<8x512xf32> to vector<8x128xf32>
    %185 = arith.negf %184 : vector<8x128xf32>
    %186 = math.exp %185 : vector<8x128xf32>
    %cst_71 = arith.constant 1.000000e+00 : f32
    %187 = vector.broadcast %cst_71 : f32 to vector<8x128xf32>
    %188 = arith.addf %187, %186 : vector<8x128xf32>
    %189 = arith.divf %187, %188 : vector<8x128xf32>
    %c0_72 = arith.constant 0 : index
    %c0_73 = arith.constant 0 : index
    %190 = vector.load %arg7[%c0_72, %c0_73] : memref<8x128xf32, #tpu.memory_space<vmem>>, vector<8x128xf32>
    %191 = arith.mulf %181, %190 : vector<8x128xf32>
    %192 = arith.mulf %175, %183 : vector<8x128xf32>
    %193 = arith.addf %191, %192 : vector<8x128xf32>
    %194 = math.tanh %193 : vector<8x128xf32>
    %195 = arith.mulf %189, %194 : vector<8x128xf32>
    %c0_74 = arith.constant 0 : index
    %c0_75 = arith.constant 0 : index
    %196 = vector.load %arg7[%c0_74, %c0_75] : memref<8x128xf32, #tpu.memory_space<vmem>>, vector<8x128xf32>
    tpu.vector_store %arg7[%c0_74, %c0_75], %193 {strides = array<i32>} : memref<8x128xf32, #tpu.memory_space<vmem>>, vector<8x128xf32>,
    %c0_76 = arith.constant 0 : index
    %c0_77 = arith.constant 0 : index
    %197 = vector.load %arg6[%c0_76, %c0_77] : memref<8x128xf32, #tpu.memory_space<vmem>>, vector<8x128xf32>
    tpu.vector_store %arg6[%c0_76, %c0_77], %195 {strides = array<i32>} : memref<8x128xf32, #tpu.memory_space<vmem>>, vector<8x128xf32>,
    %198 = arith.truncf %195 : vector<8x128xf32> to vector<8x128xbf16>
    %c4 = arith.constant 4 : index
    %c0_78 = arith.constant 0 : index
    %c0_79 = arith.constant 0 : index
    %199 = vector.load %arg5[%c4, %c0_78, %c0_79] : memref<8x8x128xbf16, #tpu.memory_space<vmem>>, vector<1x8x128xbf16>
    %200 = vector.shape_cast %199 : vector<1x8x128xbf16> to vector<8x128xbf16>
    %201 = vector.shape_cast %198 : vector<8x128xbf16> to vector<1x8x128xbf16>
    tpu.vector_store %arg5[%c4, %c0_78, %c0_79], %201 {strides = array<i32>} : memref<8x8x128xbf16, #tpu.memory_space<vmem>>, vector<1x8x128xbf16>,
    %c0_80 = arith.constant 0 : index
    %c0_81 = arith.constant 0 : index
    %202 = vector.load %arg6[%c0_80, %c0_81] : memref<8x128xf32, #tpu.memory_space<vmem>>, vector<8x128xf32>
    %203 = arith.truncf %202 : vector<8x128xf32> to vector<8x128xbf16>
    %204 = vector.extract_strided_slice %10 {offsets = [5, 0, 0], sizes = [1, 8, 512], strides = [1, 1, 1]} : vector<8x8x512xf32> to vector<1x8x512xf32>
    %205 = vector.shape_cast %204 : vector<1x8x512xf32> to vector<8x512xf32>
    %cst_82 = arith.constant dense<0.000000e+00> : vector<8x512xf32>
    %206 = tpu.matmul %203, %11, %cst_82 {dimension_numbers = #tpu.dot_dimension_numbers<[1], [0], [0], [1], [0, 0, 1, 1], [], []>} : vector<8x128xbf16>, vector<128x512xbf16>, vector<8x512xf32> -> vector<8x512xf32>
    %207 = arith.addf %205, %206 : vector<8x512xf32>
    %208 = vector.extract_strided_slice %207 {offsets = [0, 0], sizes = [8, 128], strides = [1, 1]} : vector<8x512xf32> to vector<8x128xf32>
    %209 = arith.negf %208 : vector<8x128xf32>
    %210 = math.exp %209 : vector<8x128xf32>
    %cst_83 = arith.constant 1.000000e+00 : f32
    %211 = vector.broadcast %cst_83 : f32 to vector<8x128xf32>
    %212 = arith.addf %211, %210 : vector<8x128xf32>
    %213 = arith.divf %211, %212 : vector<8x128xf32>
    %214 = vector.extract_strided_slice %207 {offsets = [0, 128], sizes = [8, 128], strides = [1, 1]} : vector<8x512xf32> to vector<8x128xf32>
    %215 = arith.negf %214 : vector<8x128xf32>
    %216 = math.exp %215 : vector<8x128xf32>
    %cst_84 = arith.constant 1.000000e+00 : f32
    %217 = vector.broadcast %cst_84 : f32 to vector<8x128xf32>
    %218 = arith.addf %217, %216 : vector<8x128xf32>
    %219 = arith.divf %217, %218 : vector<8x128xf32>
    %220 = vector.extract_strided_slice %207 {offsets = [0, 256], sizes = [8, 128], strides = [1, 1]} : vector<8x512xf32> to vector<8x128xf32>
    %221 = math.tanh %220 : vector<8x128xf32>
    %222 = vector.extract_strided_slice %207 {offsets = [0, 384], sizes = [8, 128], strides = [1, 1]} : vector<8x512xf32> to vector<8x128xf32>
    %223 = arith.negf %222 : vector<8x128xf32>
    %224 = math.exp %223 : vector<8x128xf32>
    %cst_85 = arith.constant 1.000000e+00 : f32
    %225 = vector.broadcast %cst_85 : f32 to vector<8x128xf32>
    %226 = arith.addf %225, %224 : vector<8x128xf32>
    %227 = arith.divf %225, %226 : vector<8x128xf32>
    %c0_86 = arith.constant 0 : index
    %c0_87 = arith.constant 0 : index
    %228 = vector.load %arg7[%c0_86, %c0_87] : memref<8x128xf32, #tpu.memory_space<vmem>>, vector<8x128xf32>
    %229 = arith.mulf %219, %228 : vector<8x128xf32>
    %230 = arith.mulf %213, %221 : vector<8x128xf32>
    %231 = arith.addf %229, %230 : vector<8x128xf32>
    %232 = math.tanh %231 : vector<8x128xf32>
    %233 = arith.mulf %227, %232 : vector<8x128xf32>
    %c0_88 = arith.constant 0 : index
    %c0_89 = arith.constant 0 : index
    %234 = vector.load %arg7[%c0_88, %c0_89] : memref<8x128xf32, #tpu.memory_space<vmem>>, vector<8x128xf32>
    tpu.vector_store %arg7[%c0_88, %c0_89], %231 {strides = array<i32>} : memref<8x128xf32, #tpu.memory_space<vmem>>, vector<8x128xf32>,
    %c0_90 = arith.constant 0 : index
    %c0_91 = arith.constant 0 : index
    %235 = vector.load %arg6[%c0_90, %c0_91] : memref<8x128xf32, #tpu.memory_space<vmem>>, vector<8x128xf32>
    tpu.vector_store %arg6[%c0_90, %c0_91], %233 {strides = array<i32>} : memref<8x128xf32, #tpu.memory_space<vmem>>, vector<8x128xf32>,
    %236 = arith.truncf %233 : vector<8x128xf32> to vector<8x128xbf16>
    %c5 = arith.constant 5 : index
    %c0_92 = arith.constant 0 : index
    %c0_93 = arith.constant 0 : index
    %237 = vector.load %arg5[%c5, %c0_92, %c0_93] : memref<8x8x128xbf16, #tpu.memory_space<vmem>>, vector<1x8x128xbf16>
    %238 = vector.shape_cast %237 : vector<1x8x128xbf16> to vector<8x128xbf16>
    %239 = vector.shape_cast %236 : vector<8x128xbf16> to vector<1x8x128xbf16>
    tpu.vector_store %arg5[%c5, %c0_92, %c0_93], %239 {strides = array<i32>} : memref<8x8x128xbf16, #tpu.memory_space<vmem>>, vector<1x8x128xbf16>,
    %c0_94 = arith.constant 0 : index
    %c0_95 = arith.constant 0 : index
    %240 = vector.load %arg6[%c0_94, %c0_95] : memref<8x128xf32, #tpu.memory_space<vmem>>, vector<8x128xf32>
    %241 = arith.truncf %240 : vector<8x128xf32> to vector<8x128xbf16>
    %242 = vector.extract_strided_slice %10 {offsets = [6, 0, 0], sizes = [1, 8, 512], strides = [1, 1, 1]} : vector<8x8x512xf32> to vector<1x8x512xf32>
    %243 = vector.shape_cast %242 : vector<1x8x512xf32> to vector<8x512xf32>
    %cst_96 = arith.constant dense<0.000000e+00> : vector<8x512xf32>
    %244 = tpu.matmul %241, %11, %cst_96 {dimension_numbers = #tpu.dot_dimension_numbers<[1], [0], [0], [1], [0, 0, 1, 1], [], []>} : vector<8x128xbf16>, vector<128x512xbf16>, vector<8x512xf32> -> vector<8x512xf32>
    %245 = arith.addf %243, %244 : vector<8x512xf32>
    %246 = vector.extract_strided_slice %245 {offsets = [0, 0], sizes = [8, 128], strides = [1, 1]} : vector<8x512xf32> to vector<8x128xf32>
    %247 = arith.negf %246 : vector<8x128xf32>
    %248 = math.exp %247 : vector<8x128xf32>
    %cst_97 = arith.constant 1.000000e+00 : f32
    %249 = vector.broadcast %cst_97 : f32 to vector<8x128xf32>
    %250 = arith.addf %249, %248 : vector<8x128xf32>
    %251 = arith.divf %249, %250 : vector<8x128xf32>
    %252 = vector.extract_strided_slice %245 {offsets = [0, 128], sizes = [8, 128], strides = [1, 1]} : vector<8x512xf32> to vector<8x128xf32>
    %253 = arith.negf %252 : vector<8x128xf32>
    %254 = math.exp %253 : vector<8x128xf32>
    %cst_98 = arith.constant 1.000000e+00 : f32
    %255 = vector.broadcast %cst_98 : f32 to vector<8x128xf32>
    %256 = arith.addf %255, %254 : vector<8x128xf32>
    %257 = arith.divf %255, %256 : vector<8x128xf32>
    %258 = vector.extract_strided_slice %245 {offsets = [0, 256], sizes = [8, 128], strides = [1, 1]} : vector<8x512xf32> to vector<8x128xf32>
    %259 = math.tanh %258 : vector<8x128xf32>
    %260 = vector.extract_strided_slice %245 {offsets = [0, 384], sizes = [8, 128], strides = [1, 1]} : vector<8x512xf32> to vector<8x128xf32>
    %261 = arith.negf %260 : vector<8x128xf32>
    %262 = math.exp %261 : vector<8x128xf32>
    %cst_99 = arith.constant 1.000000e+00 : f32
    %263 = vector.broadcast %cst_99 : f32 to vector<8x128xf32>
    %264 = arith.addf %263, %262 : vector<8x128xf32>
    %265 = arith.divf %263, %264 : vector<8x128xf32>
    %c0_100 = arith.constant 0 : index
    %c0_101 = arith.constant 0 : index
    %266 = vector.load %arg7[%c0_100, %c0_101] : memref<8x128xf32, #tpu.memory_space<vmem>>, vector<8x128xf32>
    %267 = arith.mulf %257, %266 : vector<8x128xf32>
    %268 = arith.mulf %251, %259 : vector<8x128xf32>
    %269 = arith.addf %267, %268 : vector<8x128xf32>
    %270 = math.tanh %269 : vector<8x128xf32>
    %271 = arith.mulf %265, %270 : vector<8x128xf32>
    %c0_102 = arith.constant 0 : index
    %c0_103 = arith.constant 0 : index
    %272 = vector.load %arg7[%c0_102, %c0_103] : memref<8x128xf32, #tpu.memory_space<vmem>>, vector<8x128xf32>
    tpu.vector_store %arg7[%c0_102, %c0_103], %269 {strides = array<i32>} : memref<8x128xf32, #tpu.memory_space<vmem>>, vector<8x128xf32>,
    %c0_104 = arith.constant 0 : index
    %c0_105 = arith.constant 0 : index
    %273 = vector.load %arg6[%c0_104, %c0_105] : memref<8x128xf32, #tpu.memory_space<vmem>>, vector<8x128xf32>
    tpu.vector_store %arg6[%c0_104, %c0_105], %271 {strides = array<i32>} : memref<8x128xf32, #tpu.memory_space<vmem>>, vector<8x128xf32>,
    %274 = arith.truncf %271 : vector<8x128xf32> to vector<8x128xbf16>
    %c6 = arith.constant 6 : index
    %c0_106 = arith.constant 0 : index
    %c0_107 = arith.constant 0 : index
    %275 = vector.load %arg5[%c6, %c0_106, %c0_107] : memref<8x8x128xbf16, #tpu.memory_space<vmem>>, vector<1x8x128xbf16>
    %276 = vector.shape_cast %275 : vector<1x8x128xbf16> to vector<8x128xbf16>
    %277 = vector.shape_cast %274 : vector<8x128xbf16> to vector<1x8x128xbf16>
    tpu.vector_store %arg5[%c6, %c0_106, %c0_107], %277 {strides = array<i32>} : memref<8x8x128xbf16, #tpu.memory_space<vmem>>, vector<1x8x128xbf16>,
    %c0_108 = arith.constant 0 : index
    %c0_109 = arith.constant 0 : index
    %278 = vector.load %arg6[%c0_108, %c0_109] : memref<8x128xf32, #tpu.memory_space<vmem>>, vector<8x128xf32>
    %279 = arith.truncf %278 : vector<8x128xf32> to vector<8x128xbf16>
    %280 = vector.extract_strided_slice %10 {offsets = [7, 0, 0], sizes = [1, 8, 512], strides = [1, 1, 1]} : vector<8x8x512xf32> to vector<1x8x512xf32>
    %281 = vector.shape_cast %280 : vector<1x8x512xf32> to vector<8x512xf32>
    %cst_110 = arith.constant dense<0.000000e+00> : vector<8x512xf32>
    %282 = tpu.matmul %279, %11, %cst_110 {dimension_numbers = #tpu.dot_dimension_numbers<[1], [0], [0], [1], [0, 0, 1, 1], [], []>} : vector<8x128xbf16>, vector<128x512xbf16>, vector<8x512xf32> -> vector<8x512xf32>
    %283 = arith.addf %281, %282 : vector<8x512xf32>
    %284 = vector.extract_strided_slice %283 {offsets = [0, 0], sizes = [8, 128], strides = [1, 1]} : vector<8x512xf32> to vector<8x128xf32>
    %285 = arith.negf %284 : vector<8x128xf32>
    %286 = math.exp %285 : vector<8x128xf32>
    %cst_111 = arith.constant 1.000000e+00 : f32
    %287 = vector.broadcast %cst_111 : f32 to vector<8x128xf32>
    %288 = arith.addf %287, %286 : vector<8x128xf32>
    %289 = arith.divf %287, %288 : vector<8x128xf32>
    %290 = vector.extract_strided_slice %283 {offsets = [0, 128], sizes = [8, 128], strides = [1, 1]} : vector<8x512xf32> to vector<8x128xf32>
    %291 = arith.negf %290 : vector<8x128xf32>
    %292 = math.exp %291 : vector<8x128xf32>
    %cst_112 = arith.constant 1.000000e+00 : f32
    %293 = vector.broadcast %cst_112 : f32 to vector<8x128xf32>
    %294 = arith.addf %293, %292 : vector<8x128xf32>
    %295 = arith.divf %293, %294 : vector<8x128xf32>
    %296 = vector.extract_strided_slice %283 {offsets = [0, 256], sizes = [8, 128], strides = [1, 1]} : vector<8x512xf32> to vector<8x128xf32>
    %297 = math.tanh %296 : vector<8x128xf32>
    %298 = vector.extract_strided_slice %283 {offsets = [0, 384], sizes = [8, 128], strides = [1, 1]} : vector<8x512xf32> to vector<8x128xf32>
    %299 = arith.negf %298 : vector<8x128xf32>
    %300 = math.exp %299 : vector<8x128xf32>
    %cst_113 = arith.constant 1.000000e+00 : f32
    %301 = vector.broadcast %cst_113 : f32 to vector<8x128xf32>
    %302 = arith.addf %301, %300 : vector<8x128xf32>
    %303 = arith.divf %301, %302 : vector<8x128xf32>
    %c0_114 = arith.constant 0 : index
    %c0_115 = arith.constant 0 : index
    %304 = vector.load %arg7[%c0_114, %c0_115] : memref<8x128xf32, #tpu.memory_space<vmem>>, vector<8x128xf32>
    %305 = arith.mulf %295, %304 : vector<8x128xf32>
    %306 = arith.mulf %289, %297 : vector<8x128xf32>
    %307 = arith.addf %305, %306 : vector<8x128xf32>
    %308 = math.tanh %307 : vector<8x128xf32>
    %309 = arith.mulf %303, %308 : vector<8x128xf32>
    %c0_116 = arith.constant 0 : index
    %c0_117 = arith.constant 0 : index
    %310 = vector.load %arg7[%c0_116, %c0_117] : memref<8x128xf32, #tpu.memory_space<vmem>>, vector<8x128xf32>
    tpu.vector_store %arg7[%c0_116, %c0_117], %307 {strides = array<i32>} : memref<8x128xf32, #tpu.memory_space<vmem>>, vector<8x128xf32>,
    %c0_118 = arith.constant 0 : index
    %c0_119 = arith.constant 0 : index
    %311 = vector.load %arg6[%c0_118, %c0_119] : memref<8x128xf32, #tpu.memory_space<vmem>>, vector<8x128xf32>
    tpu.vector_store %arg6[%c0_118, %c0_119], %309 {strides = array<i32>} : memref<8x128xf32, #tpu.memory_space<vmem>>, vector<8x128xf32>,
    %312 = arith.truncf %309 : vector<8x128xf32> to vector<8x128xbf16>
    %c7 = arith.constant 7 : index
    %c0_120 = arith.constant 0 : index
    %c0_121 = arith.constant 0 : index
    %313 = vector.load %arg5[%c7, %c0_120, %c0_121] : memref<8x8x128xbf16, #tpu.memory_space<vmem>>, vector<1x8x128xbf16>
    %314 = vector.shape_cast %313 : vector<1x8x128xbf16> to vector<8x128xbf16>
    %315 = vector.shape_cast %312 : vector<8x128xbf16> to vector<1x8x128xbf16>
    tpu.vector_store %arg5[%c7, %c0_120, %c0_121], %315 {strides = array<i32>} : memref<8x8x128xbf16, #tpu.memory_space<vmem>>, vector<1x8x128xbf16>,
    return
  }
  func.func @transform_0(%arg0: i32) -> (i32, i32, i32) {
    %c0_i32 = arith.constant 0 : i32
    %c0_i32_0 = arith.constant 0 : i32
    %c0_i32_1 = arith.constant 0 : i32
    return %arg0, %c0_i32, %c0_i32_0 : i32, i32, i32
  }
  func.func @transform_1(%arg0: i32) -> (i32, i32) {
    %c0_i32 = arith.constant 0 : i32
    %c0_i32_0 = arith.constant 0 : i32
    %c0_i32_1 = arith.constant 0 : i32
    return %c0_i32, %c0_i32_0 : i32, i32
  }
  func.func @transform_2(%arg0: i32) -> (i32, i32) {
    %c0_i32 = arith.constant 0 : i32
    %c0_i32_0 = arith.constant 0 : i32
    %c0_i32_1 = arith.constant 0 : i32
    return %c0_i32, %c0_i32_0 : i32, i32
  }
  func.func @transform_3(%arg0: i32) -> (i32, i32) {
    %c0_i32 = arith.constant 0 : i32
    %c0_i32_0 = arith.constant 0 : i32
    %c0_i32_1 = arith.constant 0 : i32
    return %c0_i32, %c0_i32_0 : i32, i32
  }
  func.func @transform_4(%arg0: i32) -> (i32, i32, i32) {
    %c0_i32 = arith.constant 0 : i32
    %c0_i32_0 = arith.constant 0 : i32
    %c0_i32_1 = arith.constant 0 : i32
    return %arg0, %c0_i32, %c0_i32_0 : i32, i32, i32
  }
}

</mosaic_0001>

<bundles_post_ra>
// kernel: lm_lstm_forward.3
= control target key start
LH: loop header
LB: loop body
LE: loop exit
PB: predicated region body
PF: predicated region fallthrough
CT: control target
= control target key end

     0   :  { %v601_v1 = vmov 0   ;;  %v65_v33 = vlaneseq  ;;  %s997_s1 = inlined_call_operand.vmem [shape: bf16[128,256], index: 1, kind: input, shape index: {}]   ;;  %s998_s0 = inlined_call_operand.vmem [shape: bf16[256,128], index: 0, kind: input, shape index: {}]   ;;  %s999_s2 = inlined_call_operand.vmem [shape: f32[1,256], index: 2, kind: input, shape index: {}]   ;;  %s1000_s3 = inlined_call_operand.vmem [shape: f32[256,256], index: 3, kind: output, shape index: {}]  }
   0x1   :  { %v561_v0 = vld [vmem:[%s997_s1 + $0x4] ss:$8 sps:$4 sm:$0xff]   ;;  %283 = vmatprep.mubr.bf16.mxu0 %v601_v1  ;;  %363 = vmatprep.mubr.bf16.mxu1 %v601_v1  ;;  %v563_v2 = vld [vmem:[%s997_s1] ss:$8 sps:$4 sm:$0xff]   ;;  %v564_v3 = vld [vmem:[%s997_s1 + $0x14] ss:$8 sps:$4 sm:$0xff]  }
   0x2   :  { %251 = vmatprep.subr.bf16.mxu0 %v561_v0  ;;  %544 = vmatprep.subr.bf16.mxu1 %v561_v0  ;;  %v566_v4 = vld [vmem:[%s997_s1 + $0x10] ss:$8 sps:$4 sm:$0xff]   ;;  %v567_v5 = vld [vmem:[%s997_s1 + $0x24] ss:$8 sps:$4 sm:$0xff]   ;;  %v569_v6 = vld [vmem:[%s997_s1 + $0x20] ss:$8 sps:$4 sm:$0xff]  }
   0x3   :  { %252 = vmatpush1.bf16.msra.mxu0 %v563_v2  ;;  %552 = vmatpush1.bf16.msra.mxu1 %v563_v2  ;;  %v570_v7 = vld [vmem:[%s997_s1 + $0x34] ss:$8 sps:$4 sm:$0xff]   ;;  %v572_v8 = vld [vmem:[%s997_s1 + $0x30] ss:$8 sps:$4 sm:$0xff]   ;;  %v573_v9 = vld [vmem:[%s997_s1 + $0x44] ss:$8 sps:$4 sm:$0xff]  }
   0x4   :  { %253 = vmatprep.subr.bf16.mxu0 %v564_v3  ;;  %545 = vmatprep.subr.bf16.mxu1 %v564_v3  ;;  %v575_v10 = vld [vmem:[%s997_s1 + $0x40] ss:$8 sps:$4 sm:$0xff]   ;;  %v576_v11 = vld [vmem:[%s997_s1 + $0x54] ss:$8 sps:$4 sm:$0xff]   ;;  %v578_v12 = vld [vmem:[%s997_s1 + $0x50] ss:$8 sps:$4 sm:$0xff]  }
   0x5   :  { %v579_v13 = vld [vmem:[%s997_s1 + $0x64] ss:$8 sps:$4 sm:$0xff]   ;;  %v581_v14 = vld [vmem:[%s997_s1 + $0x60] ss:$8 sps:$4 sm:$0xff]   ;;  %v582_v15 = vld [vmem:[%s997_s1 + $0x74] ss:$8 sps:$4 sm:$0xff]  }
   0x6   :  { %v584_v16 = vld [vmem:[%s997_s1 + $0x70] ss:$8 sps:$4 sm:$0xff]   ;;  %v585_v17 = vld [vmem:[%s998_s0] sm:$0xff]   ;;  %v587_v19 = vld [vmem:[%s998_s0 + $0x8] sm:$0xff]   ;;  %v66_v34 = vshrl.u32 %v65_v33, 7 }
   0x7   :  { %254 = vmatpush1.bf16.msra.mxu0 %v566_v4  ;;  %553 = vmatpush1.bf16.msra.mxu1 %v566_v4  ;;  %v586_v18 = vld [vmem:[%s998_s0 + $0x40] sm:$0xff]   ;;  %v588_v20 = vld [vmem:[%s998_s0 + $0x48] sm:$0xff]   ;;  %v589_v21 = vld [vmem:[%s998_s0 + $0x10] sm:$0xff]  }
   0x8   :  { %255 = vmatprep.subr.bf16.mxu0 %v567_v5  ;;  %546 = vmatprep.subr.bf16.mxu1 %v567_v5  ;;  %v590_v22 = vld [vmem:[%s998_s0 + $0x50] sm:$0xff]   ;;  %v591_v23 = vld [vmem:[%s998_s0 + $0x18] sm:$0xff]   ;;  %v593_v25 = vld [vmem:[%s998_s0 + $0x20] sm:$0xff]   ;;  %v67_v35 = vsub.s32 0, %v66_v34  ;;  %v71_v37 = vsub.s32 1, %v66_v34 }
   0x9   :  { %v592_v24 = vld [vmem:[%s998_s0 + $0x58] sm:$0xff]   ;;  %v594_v26 = vld [vmem:[%s998_s0 + $0x60] sm:$0xff]   ;;  %v595_v27 = vld [vmem:[%s998_s0 + $0x28] sm:$0xff]  }
   0xa   :  { %v596_v28 = vld [vmem:[%s998_s0 + $0x68] sm:$0xff]   ;;  %v597_v29 = vld [vmem:[%s998_s0 + $0x30] sm:$0xff]   ;;  %v599_v31 = vld [vmem:[%s998_s0 + $0x38] sm:$0xff]  }
   0xb   :  { %256 = vmatpush1.bf16.msra.mxu0 %v569_v6  ;;  %554 = vmatpush1.bf16.msra.mxu1 %v569_v6  ;;  %v598_v30 = vld [vmem:[%s998_s0 + $0x70] sm:$0xff]   ;;  %v600_v32 = vld [vmem:[%s998_s0 + $0x78] sm:$0xff]   ;;  %v63_v36 = vld [vmem:[%s999_s2] sm:$0x3] }
   0xc   :  { %257 = vmatprep.subr.bf16.mxu0 %v570_v7  ;;  %547 = vmatprep.subr.bf16.mxu1 %v570_v7  ;;  %v737_v38 = vrot.slane %v63_v36, %v67_v35  ;;  %v739_v39 = vrot.slane %v63_v36, %v71_v37 }
   0xf   :  { %258 = vmatpush1.bf16.msra.mxu0 %v572_v8  ;;  %555 = vmatpush1.bf16.msra.mxu1 %v572_v8 }
  0x10   :  { %259 = vmatprep.subr.bf16.mxu0 %v573_v9  ;;  %548 = vmatprep.subr.bf16.mxu1 %v573_v9 }
  0x13   :  { %260 = vmatpush1.bf16.msra.mxu0 %v575_v10  ;;  %556 = vmatpush1.bf16.msra.mxu1 %v575_v10 }
  0x14   :  { %261 = vmatprep.subr.bf16.mxu0 %v576_v11  ;;  %549 = vmatprep.subr.bf16.mxu1 %v576_v11 }
  0x17   :  { %262 = vmatpush1.bf16.msra.mxu0 %v578_v12  ;;  %557 = vmatpush1.bf16.msra.mxu1 %v578_v12 }
  0x18   :  { %263 = vmatprep.subr.bf16.mxu0 %v579_v13  ;;  %550 = vmatprep.subr.bf16.mxu1 %v579_v13 }
  0x1b   :  { %264 = vmatpush1.bf16.msra.mxu0 %v581_v14  ;;  %558 = vmatpush1.bf16.msra.mxu1 %v581_v14 }
  0x1c   :  { %265 = vmatprep.subr.bf16.mxu0 %v582_v15  ;;  %551 = vmatprep.subr.bf16.mxu1 %v582_v15 }
  0x1f   :  { %266 = vmatpush1.bf16.msra.mxu0 %v584_v16  ;;  %559 = vmatpush1.bf16.msra.mxu1 %v584_v16 }
  0x22   :  { %284 = vmatmul.mubr.bf16.vlgmr.msra.gmra.mrb[0].mxu0 %v585_v17  ;;  %364 = vmatmul.mubr.bf16.vlgmr.msra.gmra.mrb[0].mxu1 %v586_v18 }
  0x23   :  { %293 = vmatprep.mubr.bf16.mxu0 %v601_v1  ;;  %373 = vmatprep.mubr.bf16.mxu1 %v601_v1 }
  0x2a   :  { %294 = vmatmul.mubr.bf16.gmra.mrb[4].mxu0 %v587_v19  ;;  %374 = vmatmul.mubr.bf16.gmra.mrb[4].mxu1 %v588_v20 }
  0x2b   :  { %303 = vmatprep.mubr.bf16.mxu0 %v601_v1  ;;  %383 = vmatprep.mubr.bf16.mxu1 %v601_v1 }
  0x32   :  { %304 = vmatmul.mubr.bf16.gmra.mrb[8].mxu0 %v589_v21  ;;  %384 = vmatmul.mubr.bf16.gmra.mrb[8].mxu1 %v590_v22 }
  0x33   :  { %313 = vmatprep.mubr.bf16.mxu0 %v601_v1  ;;  %393 = vmatprep.mubr.bf16.mxu1 %v601_v1 }
  0x3a   :  { %314 = vmatmul.mubr.bf16.gmra.mrb[12].mxu0 %v591_v23  ;;  %394 = vmatmul.mubr.bf16.gmra.mrb[12].mxu1 %v592_v24 }
  0x3b   :  { %323 = vmatprep.mubr.bf16.mxu0 %v601_v1  ;;  %403 = vmatprep.mubr.bf16.mxu1 %v601_v1 }
  0x42   :  { %324 = vmatmul.mubr.bf16.gmra.mrb[16].mxu0 %v593_v25  ;;  %404 = vmatmul.mubr.bf16.gmra.mrb[16].mxu1 %v594_v26 }
  0x43   :  { %333 = vmatprep.mubr.bf16.mxu0 %v601_v1  ;;  %413 = vmatprep.mubr.bf16.mxu1 %v601_v1 }
  0x4a   :  { %334 = vmatmul.mubr.bf16.gmra.mrb[20].mxu0 %v595_v27  ;;  %414 = vmatmul.mubr.bf16.gmra.mrb[20].mxu1 %v596_v28 }
  0x4b   :  { %343 = vmatprep.mubr.bf16.mxu0 %v601_v1  ;;  %423 = vmatprep.mubr.bf16.mxu1 %v601_v1 }
  0x52   :  { %344 = vmatmul.mubr.bf16.gmra.mrb[24].mxu0 %v597_v29  ;;  %424 = vmatmul.mubr.bf16.gmra.mrb[24].mxu1 %v598_v30 }
  0x53   :  { %353 = vmatprep.mubr.bf16.mxu0 %v601_v1  ;;  %433 = vmatprep.mubr.bf16.mxu1 %v601_v1 }
  0x5a   :  { %354 = vmatmul.mubr.bf16.gmra.mrb[28].mxu0 %v599_v31  ;;  %434 = vmatmul.mubr.bf16.gmra.mrb[28].mxu1 %v600_v32 }
  0xf5   :  { %v285_v40 = vpop.f32.mrb[0].mxu0  ;;  %v365_v41 = vpop.f32.mrb[0].mxu1 }
  0xf6   :  { %v286_v42 = vadd.f32 %v285_v40, %v737_v38  ;;  %v366_v43 = vadd.f32 %v365_v41, %v737_v38  ;;  %v287_v44 = vpop.f32.mrb[1].mxu0  ;;  %v367_v45 = vpop.f32.mrb[1].mxu1 }
  0xf7   :  { %v288_v46 = vadd.f32 %v287_v44, %v739_v39  ;;  %v368_v47 = vadd.f32 %v367_v45, %v739_v39  ;;  %v289_v48 = vpop.f32.mrb[2].mxu0  ;;  %v369_v49 = vpop.f32.mrb[2].mxu1 }
  0xf8   :  { %444 = vst [vmem:[%s1000_s3] sm:$0xff] %v286_v42  ;;  %476 = vst [vmem:[%s1000_s3 + $0x100] sm:$0xff] %v366_v43  ;;  %v290_v50 = vadd.f32 %v289_v48, %v737_v38  ;;  %v370_v51 = vadd.f32 %v369_v49, %v737_v38  ;;  %v291_v52 = vpop.f32.mrb[3].mxu0  ;;  %v371_v53 = vpop.f32.mrb[3].mxu1 }
  0xf9   :  { %445 = vst [vmem:[%s1000_s3 + $0x8] sm:$0xff] %v288_v46  ;;  %477 = vst [vmem:[%s1000_s3 + $0x108] sm:$0xff] %v368_v47  ;;  %v292_v54 = vadd.f32 %v291_v52, %v739_v39  ;;  %v372_v55 = vadd.f32 %v371_v53, %v739_v39 }
  0xfa   :  { %446 = vst [vmem:[%s1000_s3 + $0x10] sm:$0xff] %v290_v50  ;;  %478 = vst [vmem:[%s1000_s3 + $0x110] sm:$0xff] %v370_v51 }
  0xfb   :  { %447 = vst [vmem:[%s1000_s3 + $0x18] sm:$0xff] %v292_v54  ;;  %479 = vst [vmem:[%s1000_s3 + $0x118] sm:$0xff] %v372_v55 }
  0xfd   :  { %v295_v56 = vpop.f32.mrb[4].mxu0  ;;  %v375_v57 = vpop.f32.mrb[4].mxu1 }
  0xfe   :  { %v296_v58 = vadd.f32 %v295_v56, %v737_v38  ;;  %v376_v59 = vadd.f32 %v375_v57, %v737_v38  ;;  %v297_v60 = vpop.f32.mrb[5].mxu0  ;;  %v377_v61 = vpop.f32.mrb[5].mxu1 }
  0xff   :  { %v298_v62 = vadd.f32 %v297_v60, %v739_v39  ;;  %v378_v63 = vadd.f32 %v377_v61, %v739_v39  ;;  %v299_v0 = vpop.f32.mrb[6].mxu0  ;;  %v379_v1 = vpop.f32.mrb[6].mxu1 }
 0x100   :  { %448 = vst [vmem:[%s1000_s3 + $0x20] sm:$0xff] %v296_v58  ;;  %480 = vst [vmem:[%s1000_s3 + $0x120] sm:$0xff] %v376_v59  ;;  %v300_v2 = vadd.f32 %v299_v0, %v737_v38  ;;  %v380_v3 = vadd.f32 %v379_v1, %v737_v38  ;;  %v301_v4 = vpop.f32.mrb[7].mxu0  ;;  %v381_v5 = vpop.f32.mrb[7].mxu1 }
 0x101   :  { %449 = vst [vmem:[%s1000_s3 + $0x28] sm:$0xff] %v298_v62  ;;  %481 = vst [vmem:[%s1000_s3 + $0x128] sm:$0xff] %v378_v63  ;;  %v302_v6 = vadd.f32 %v301_v4, %v739_v39  ;;  %v382_v7 = vadd.f32 %v381_v5, %v739_v39 }
 0x102   :  { %450 = vst [vmem:[%s1000_s3 + $0x30] sm:$0xff] %v300_v2  ;;  %482 = vst [vmem:[%s1000_s3 + $0x130] sm:$0xff] %v380_v3 }
 0x103   :  { %451 = vst [vmem:[%s1000_s3 + $0x38] sm:$0xff] %v302_v6  ;;  %483 = vst [vmem:[%s1000_s3 + $0x138] sm:$0xff] %v382_v7 }
 0x105   :  { %v305_v8 = vpop.f32.mrb[8].mxu0  ;;  %v385_v9 = vpop.f32.mrb[8].mxu1 }
 0x106   :  { %v306_v10 = vadd.f32 %v305_v8, %v737_v38  ;;  %v386_v11 = vadd.f32 %v385_v9, %v737_v38  ;;  %v307_v12 = vpop.f32.mrb[9].mxu0  ;;  %v387_v13 = vpop.f32.mrb[9].mxu1 }
 0x107   :  { %v308_v14 = vadd.f32 %v307_v12, %v739_v39  ;;  %v388_v15 = vadd.f32 %v387_v13, %v739_v39  ;;  %v309_v16 = vpop.f32.mrb[10].mxu0  ;;  %v389_v17 = vpop.f32.mrb[10].mxu1 }
 0x108   :  { %452 = vst [vmem:[%s1000_s3 + $0x40] sm:$0xff] %v306_v10  ;;  %484 = vst [vmem:[%s1000_s3 + $0x140] sm:$0xff] %v386_v11  ;;  %v310_v18 = vadd.f32 %v309_v16, %v737_v38  ;;  %v390_v19 = vadd.f32 %v389_v17, %v737_v38  ;;  %v311_v20 = vpop.f32.mrb[11].mxu0  ;;  %v391_v21 = vpop.f32.mrb[11].mxu1 }
 0x109   :  { %453 = vst [vmem:[%s1000_s3 + $0x48] sm:$0xff] %v308_v14  ;;  %485 = vst [vmem:[%s1000_s3 + $0x148] sm:$0xff] %v388_v15  ;;  %v312_v22 = vadd.f32 %v311_v20, %v739_v39  ;;  %v392_v23 = vadd.f32 %v391_v21, %v739_v39 }
 0x10a   :  { %454 = vst [vmem:[%s1000_s3 + $0x50] sm:$0xff] %v310_v18  ;;  %486 = vst [vmem:[%s1000_s3 + $0x150] sm:$0xff] %v390_v19 }
 0x10b   :  { %455 = vst [vmem:[%s1000_s3 + $0x58] sm:$0xff] %v312_v22  ;;  %487 = vst [vmem:[%s1000_s3 + $0x158] sm:$0xff] %v392_v23 }
 0x10d   :  { %v315_v24 = vpop.f32.mrb[12].mxu0  ;;  %v395_v25 = vpop.f32.mrb[12].mxu1 }
 0x10e   :  { %v316_v26 = vadd.f32 %v315_v24, %v737_v38  ;;  %v396_v27 = vadd.f32 %v395_v25, %v737_v38  ;;  %v317_v28 = vpop.f32.mrb[13].mxu0  ;;  %v397_v29 = vpop.f32.mrb[13].mxu1 }
 0x10f   :  { %v318_v30 = vadd.f32 %v317_v28, %v739_v39  ;;  %v398_v31 = vadd.f32 %v397_v29, %v739_v39  ;;  %v319_v32 = vpop.f32.mrb[14].mxu0  ;;  %v399_v33 = vpop.f32.mrb[14].mxu1 }
 0x110   :  { %456 = vst [vmem:[%s1000_s3 + $0x60] sm:$0xff] %v316_v26  ;;  %488 = vst [vmem:[%s1000_s3 + $0x160] sm:$0xff] %v396_v27  ;;  %v320_v34 = vadd.f32 %v319_v32, %v737_v38  ;;  %v400_v35 = vadd.f32 %v399_v33, %v737_v38  ;;  %v321_v36 = vpop.f32.mrb[15].mxu0  ;;  %v401_v37 = vpop.f32.mrb[15].mxu1 }
 0x111   :  { %457 = vst [vmem:[%s1000_s3 + $0x68] sm:$0xff] %v318_v30  ;;  %489 = vst [vmem:[%s1000_s3 + $0x168] sm:$0xff] %v398_v31  ;;  %v322_v40 = vadd.f32 %v321_v36, %v739_v39  ;;  %v402_v41 = vadd.f32 %v401_v37, %v739_v39 }
 0x112   :  { %458 = vst [vmem:[%s1000_s3 + $0x70] sm:$0xff] %v320_v34  ;;  %490 = vst [vmem:[%s1000_s3 + $0x170] sm:$0xff] %v400_v35 }
 0x113   :  { %459 = vst [vmem:[%s1000_s3 + $0x78] sm:$0xff] %v322_v40  ;;  %491 = vst [vmem:[%s1000_s3 + $0x178] sm:$0xff] %v402_v41 }
 0x115   :  { %v325_v42 = vpop.f32.mrb[16].mxu0  ;;  %v405_v43 = vpop.f32.mrb[16].mxu1 }
 0x116   :  { %v326_v44 = vadd.f32 %v325_v42, %v737_v38  ;;  %v406_v45 = vadd.f32 %v405_v43, %v737_v38  ;;  %v327_v46 = vpop.f32.mrb[17].mxu0  ;;  %v407_v47 = vpop.f32.mrb[17].mxu1 }
 0x117   :  { %v328_v48 = vadd.f32 %v327_v46, %v739_v39  ;;  %v408_v49 = vadd.f32 %v407_v47, %v739_v39  ;;  %v329_v50 = vpop.f32.mrb[18].mxu0  ;;  %v409_v51 = vpop.f32.mrb[18].mxu1 }
 0x118   :  { %460 = vst [vmem:[%s1000_s3 + $0x80] sm:$0xff] %v326_v44  ;;  %492 = vst [vmem:[%s1000_s3 + $0x180] sm:$0xff] %v406_v45  ;;  %v330_v52 = vadd.f32 %v329_v50, %v737_v38  ;;  %v410_v53 = vadd.f32 %v409_v51, %v737_v38  ;;  %v331_v54 = vpop.f32.mrb[19].mxu0  ;;  %v411_v55 = vpop.f32.mrb[19].mxu1 }
 0x119   :  { %461 = vst [vmem:[%s1000_s3 + $0x88] sm:$0xff] %v328_v48  ;;  %493 = vst [vmem:[%s1000_s3 + $0x188] sm:$0xff] %v408_v49  ;;  %v332_v56 = vadd.f32 %v331_v54, %v739_v39  ;;  %v412_v57 = vadd.f32 %v411_v55, %v739_v39 }
 0x11a   :  { %462 = vst [vmem:[%s1000_s3 + $0x90] sm:$0xff] %v330_v52  ;;  %494 = vst [vmem:[%s1000_s3 + $0x190] sm:$0xff] %v410_v53 }
 0x11b   :  { %463 = vst [vmem:[%s1000_s3 + $0x98] sm:$0xff] %v332_v56  ;;  %495 = vst [vmem:[%s1000_s3 + $0x198] sm:$0xff] %v412_v57 }
 0x11d   :  { %v335_v58 = vpop.f32.mrb[20].mxu0  ;;  %v415_v59 = vpop.f32.mrb[20].mxu1 }
 0x11e   :  { %v336_v60 = vadd.f32 %v335_v58, %v737_v38  ;;  %v416_v61 = vadd.f32 %v415_v59, %v737_v38  ;;  %v337_v62 = vpop.f32.mrb[21].mxu0  ;;  %v417_v63 = vpop.f32.mrb[21].mxu1 }
 0x11f   :  { %v338_v0 = vadd.f32 %v337_v62, %v739_v39  ;;  %v418_v1 = vadd.f32 %v417_v63, %v739_v39  ;;  %v339_v2 = vpop.f32.mrb[22].mxu0  ;;  %v419_v3 = vpop.f32.mrb[22].mxu1 }
 0x120   :  { %464 = vst [vmem:[%s1000_s3 + $0xa0] sm:$0xff] %v336_v60  ;;  %496 = vst [vmem:[%s1000_s3 + $0x1a0] sm:$0xff] %v416_v61  ;;  %v340_v4 = vadd.f32 %v339_v2, %v737_v38  ;;  %v420_v5 = vadd.f32 %v419_v3, %v737_v38  ;;  %v341_v6 = vpop.f32.mrb[23].mxu0  ;;  %v421_v7 = vpop.f32.mrb[23].mxu1 }
 0x121   :  { %465 = vst [vmem:[%s1000_s3 + $0xa8] sm:$0xff] %v338_v0  ;;  %497 = vst [vmem:[%s1000_s3 + $0x1a8] sm:$0xff] %v418_v1  ;;  %v342_v8 = vadd.f32 %v341_v6, %v739_v39  ;;  %v422_v9 = vadd.f32 %v421_v7, %v739_v39 }
 0x122   :  { %466 = vst [vmem:[%s1000_s3 + $0xb0] sm:$0xff] %v340_v4  ;;  %498 = vst [vmem:[%s1000_s3 + $0x1b0] sm:$0xff] %v420_v5 }
 0x123   :  { %467 = vst [vmem:[%s1000_s3 + $0xb8] sm:$0xff] %v342_v8  ;;  %499 = vst [vmem:[%s1000_s3 + $0x1b8] sm:$0xff] %v422_v9 }
 0x125   :  { %v345_v10 = vpop.f32.mrb[24].mxu0  ;;  %v425_v11 = vpop.f32.mrb[24].mxu1 }
 0x126   :  { %v346_v12 = vadd.f32 %v345_v10, %v737_v38  ;;  %v426_v13 = vadd.f32 %v425_v11, %v737_v38  ;;  %v347_v14 = vpop.f32.mrb[25].mxu0  ;;  %v427_v15 = vpop.f32.mrb[25].mxu1 }
 0x127   :  { %v348_v16 = vadd.f32 %v347_v14, %v739_v39  ;;  %v428_v17 = vadd.f32 %v427_v15, %v739_v39  ;;  %v349_v18 = vpop.f32.mrb[26].mxu0  ;;  %v429_v19 = vpop.f32.mrb[26].mxu1 }
 0x128   :  { %468 = vst [vmem:[%s1000_s3 + $0xc0] sm:$0xff] %v346_v12  ;;  %500 = vst [vmem:[%s1000_s3 + $0x1c0] sm:$0xff] %v426_v13  ;;  %v350_v20 = vadd.f32 %v349_v18, %v737_v38  ;;  %v430_v21 = vadd.f32 %v429_v19, %v737_v38  ;;  %v351_v22 = vpop.f32.mrb[27].mxu0  ;;  %v431_v23 = vpop.f32.mrb[27].mxu1 }
 0x129   :  { %469 = vst [vmem:[%s1000_s3 + $0xc8] sm:$0xff] %v348_v16  ;;  %501 = vst [vmem:[%s1000_s3 + $0x1c8] sm:$0xff] %v428_v17  ;;  %v352_v24 = vadd.f32 %v351_v22, %v739_v39  ;;  %v432_v25 = vadd.f32 %v431_v23, %v739_v39 }
 0x12a   :  { %470 = vst [vmem:[%s1000_s3 + $0xd0] sm:$0xff] %v350_v20  ;;  %502 = vst [vmem:[%s1000_s3 + $0x1d0] sm:$0xff] %v430_v21 }
 0x12b   :  { %471 = vst [vmem:[%s1000_s3 + $0xd8] sm:$0xff] %v352_v24  ;;  %503 = vst [vmem:[%s1000_s3 + $0x1d8] sm:$0xff] %v432_v25 }
 0x12d   :  { %v355_v26 = vpop.f32.mrb[28].mxu0  ;;  %v435_v27 = vpop.f32.mrb[28].mxu1 }
 0x12e   :  { %v356_v28 = vadd.f32 %v355_v26, %v737_v38  ;;  %v436_v29 = vadd.f32 %v435_v27, %v737_v38  ;;  %v357_v30 = vpop.f32.mrb[29].mxu0  ;;  %v437_v31 = vpop.f32.mrb[29].mxu1 }
 0x12f   :  { %v358_v32 = vadd.f32 %v357_v30, %v739_v39  ;;  %v438_v33 = vadd.f32 %v437_v31, %v739_v39  ;;  %v359_v34 = vpop.f32.mrb[30].mxu0  ;;  %v439_v35 = vpop.f32.mrb[30].mxu1 }
 0x130   :  { %472 = vst [vmem:[%s1000_s3 + $0xe0] sm:$0xff] %v356_v28  ;;  %504 = vst [vmem:[%s1000_s3 + $0x1e0] sm:$0xff] %v436_v29  ;;  %v360_v36 = vadd.f32 %v359_v34, %v737_v38  ;;  %v440_v37 = vadd.f32 %v439_v35, %v737_v38  ;;  %v361_v40 = vpop.f32.mrb[31].mxu0  ;;  %v441_v41 = vpop.f32.mrb[31].mxu1 }
 0x131   :  { %473 = vst [vmem:[%s1000_s3 + $0xe8] sm:$0xff] %v358_v32  ;;  %505 = vst [vmem:[%s1000_s3 + $0x1e8] sm:$0xff] %v438_v33  ;;  %v362_v42 = vadd.f32 %v361_v40, %v739_v39  ;;  %v442_v43 = vadd.f32 %v441_v41, %v739_v39 }
 0x132   :  { %474 = vst [vmem:[%s1000_s3 + $0xf0] sm:$0xff] %v360_v36  ;;  %506 = vst [vmem:[%s1000_s3 + $0x1f0] sm:$0xff] %v440_v37 }
 0x133   :  { %475 = vst [vmem:[%s1000_s3 + $0xf8] sm:$0xff] %v362_v42  ;;  %507 = vst [vmem:[%s1000_s3 + $0x1f8] sm:$0xff] %v442_v43 }

// kernel: lm_lstm_forward.2
= control target key start
LH: loop header
LB: loop body
LE: loop exit
PB: predicated region body
PF: predicated region fallthrough
CT: control target
= control target key end

     0   :  { %s2207_s15 = smov 0   ;;  %s3049_s0 = inlined_call_operand.vmem [shape: bf16[32,8,128], index: 0, kind: input, shape index: {}]   ;;  %s3050_s1 = inlined_call_operand.vmem [shape: bf16[128,512], index: 1, kind: input, shape index: {}]   ;;  %s3051_s2 = inlined_call_operand.vmem [shape: bf16[128,512], index: 2, kind: input, shape index: {}]   ;;  %s3052_s3 = inlined_call_operand.vmem [shape: f32[1,512], index: 3, kind: input, shape index: {}]   ;;  %s3053_s4 = inlined_call_operand.vmem [shape: bf16[32,8,128], index: 4, kind: output, shape index: {}]  }
   0x1 LB: > { %s1791_s16 = sadd.s32 4294967295, %s2178_s15   ;;  %p1795_p0 = scmp.ge.s32.totalorder %s2178_s15, 1  ;;  %s2178_s15 = sphi %s2207_s15, %s14_s15  }
   0x2   : > { %p163_p1 = scmp.lt.s32.totalorder %s2178_s15, 5 }
   0x4   : > { %p164_p2 = pnand %p1795_p0, %p163_p1 }
   0x6   : > { %167 = sbr.rel (%p164_p2) target bundleno = 2169 (0x879), region = 36 }
   0xd   : > { %s1796_s17 = sshll.u32 %s1791_s16, 3  ;;  %p1800_p4 = scmp.ne.s32.totalorder %s1791_s16, 0 }
   0xe   : > { %p190_p3 = scmp.lt.s32.totalorder %s1796_s17, 31  ;;  %v2180_v0 = vmov (!%p1800_p4), 0.0  }
   0xf   : > { %205 = sbr.rel (%p1800_p4) target bundleno = 22 (0x16), region = 40  ;;  %206 = vst [vmem:[#allocation2] sm:$0xff] (!%p1800_p4), %v2180_v0  ;;  %207 = vst [vmem:[#allocation3] sm:$0xff] (!%p1800_p4), %v2180_v0 }
  0x10   : > { %s3100_s17 = smov (!%p190_p3, %s1796_s17), 31 }
  0x11   : > { %s1797_s18 = sshll.u32 %s3100_s17, 2 }
  0x12   : > { %s2218_s21 = scalar_lea.vmem %s3049_s0, %s1797_s18  ;;  %s2223_s24 = scalar_lea.vmem %s3053_s4, %s1797_s18 }
  0x16 PF: > { %v1912_v1 = vld [vmem:[%s3050_s1 + $0x4] ss:$16 sps:$4 sm:$0xff]   ;;  %v1914_v2 = vld [vmem:[%s3050_s1 + $0xc] ss:$16 sps:$4 sm:$0xff]   ;;  %v3054_v3 = vmov 0  }
  0x17   : > { %486 = vmatprep.mubr.bf16.mxu0 %v3054_v3  ;;  %559 = vmatprep.mubr.bf16.mxu1 %v3054_v3  ;;  %v1916_v4 = vld [vmem:[%s3050_s1] ss:$16 sps:$4 sm:$0xff]   ;;  %v1917_v5 = vld [vmem:[%s3050_s1 + $0x8] ss:$16 sps:$4 sm:$0xff]   ;;  %v1918_v6 = vld [vmem:[%s3050_s1 + $0x24] ss:$16 sps:$4 sm:$0xff]  }
  0x18   : > { %454 = vmatprep.subr.bf16.mxu0 %v1912_v1  ;;  %527 = vmatprep.subr.bf16.mxu1 %v1914_v2  ;;  %v1920_v7 = vld [vmem:[%s3050_s1 + $0x2c] ss:$16 sps:$4 sm:$0xff]   ;;  %v1922_v8 = vld [vmem:[%s3050_s1 + $0x20] ss:$16 sps:$4 sm:$0xff]   ;;  %v1923_v9 = vld [vmem:[%s3050_s1 + $0x28] ss:$16 sps:$4 sm:$0xff]  }
  0x19   : > { %455 = vmatpush1.bf16.msra.mxu0 %v1916_v4  ;;  %528 = vmatpush1.bf16.msra.mxu1 %v1917_v5  ;;  %v1924_v10 = vld [vmem:[%s3050_s1 + $0x44] ss:$16 sps:$4 sm:$0xff]   ;;  %v1926_v11 = vld [vmem:[%s3050_s1 + $0x4c] ss:$16 sps:$4 sm:$0xff]   ;;  %v1928_v12 = vld [vmem:[%s3050_s1 + $0x40] ss:$16 sps:$4 sm:$0xff]  }
  0x1a   : > { %456 = vmatprep.subr.bf16.mxu0 %v1918_v6  ;;  %529 = vmatprep.subr.bf16.mxu1 %v1920_v7  ;;  %v1929_v13 = vld [vmem:[%s3050_s1 + $0x48] ss:$16 sps:$4 sm:$0xff]   ;;  %v1930_v14 = vld [vmem:[%s3050_s1 + $0x64] ss:$16 sps:$4 sm:$0xff]   ;;  %v1932_v15 = vld [vmem:[%s3050_s1 + $0x6c] ss:$16 sps:$4 sm:$0xff]  }
  0x1b   : > { %v1934_v16 = vld [vmem:[%s3050_s1 + $0x60] ss:$16 sps:$4 sm:$0xff]   ;;  %v1935_v17 = vld [vmem:[%s3050_s1 + $0x68] ss:$16 sps:$4 sm:$0xff]   ;;  %v1936_v18 = vld [vmem:[%s3050_s1 + $0x84] ss:$16 sps:$4 sm:$0xff]  }
  0x1c   : > { %v1938_v19 = vld [vmem:[%s3050_s1 + $0x8c] ss:$16 sps:$4 sm:$0xff]   ;;  %v1940_v20 = vld [vmem:[%s3050_s1 + $0x80] ss:$16 sps:$4 sm:$0xff]   ;;  %v1941_v21 = vld [vmem:[%s3050_s1 + $0x88] ss:$16 sps:$4 sm:$0xff]  }
  0x1d   : > { %457 = vmatpush1.bf16.msra.mxu0 %v1922_v8  ;;  %530 = vmatpush1.bf16.msra.mxu1 %v1923_v9  ;;  %v1942_v22 = vld [vmem:[%s3050_s1 + $0xa4] ss:$16 sps:$4 sm:$0xff]   ;;  %v1944_v23 = vld [vmem:[%s3050_s1 + $0xac] ss:$16 sps:$4 sm:$0xff]   ;;  %v1946_v24 = vld [vmem:[%s3050_s1 + $0xa0] ss:$16 sps:$4 sm:$0xff]   ;;  %v250_v9 = vlaneseq }
  0x1e   : > { %458 = vmatprep.subr.bf16.mxu0 %v1924_v10  ;;  %531 = vmatprep.subr.bf16.mxu1 %v1926_v11  ;;  %v1947_v25 = vld [vmem:[%s3050_s1 + $0xa8] ss:$16 sps:$4 sm:$0xff]   ;;  %v1948_v26 = vld [vmem:[%s3050_s1 + $0xc4] ss:$16 sps:$4 sm:$0xff]   ;;  %v1950_v27 = vld [vmem:[%s3050_s1 + $0xcc] ss:$16 sps:$4 sm:$0xff]  }
  0x1f   : > { %v1952_v28 = vld [vmem:[%s3050_s1 + $0xc0] ss:$16 sps:$4 sm:$0xff]   ;;  %v1953_v29 = vld [vmem:[%s3050_s1 + $0xc8] ss:$16 sps:$4 sm:$0xff]   ;;  %v1954_v30 = vld [vmem:[%s3050_s1 + $0xe4] ss:$16 sps:$4 sm:$0xff]  }
  0x20   : > { %v1956_v31 = vld [vmem:[%s3050_s1 + $0xec] ss:$16 sps:$4 sm:$0xff]   ;;  %v1958_v32 = vld [vmem:[%s3050_s1 + $0xe0] ss:$16 sps:$4 sm:$0xff]   ;;  %v1959_v33 = vld [vmem:[%s3050_s1 + $0xe8] ss:$16 sps:$4 sm:$0xff]  }
  0x21   : > { %459 = vmatpush1.bf16.msra.mxu0 %v1928_v12  ;;  %532 = vmatpush1.bf16.msra.mxu1 %v1929_v13  ;;  %v2326_v34 = vld [vmem:[%s3051_s2 + $0x4] ss:$16 sps:$4 sm:$0xff]   ;;  %v2331_v35 = vld [vmem:[%s3051_s2 + $0xc] ss:$16 sps:$4 sm:$0xff]   ;;  %v2337_v37 = vld [vmem:[%s3051_s2] ss:$16 sps:$4 sm:$0xff]  }
  0x22   : > { %460 = vmatprep.subr.bf16.mxu0 %v1930_v14  ;;  %533 = vmatprep.subr.bf16.mxu1 %v1932_v15  ;;  %v1960_v36 = vld [vmem:[%s2218_s21] sm:$0xff]   ;;  %v2342_v38 = vld [vmem:[%s3051_s2 + $0x8] ss:$16 sps:$4 sm:$0xff]   ;;  %v2354_v40 = vld [vmem:[%s3051_s2 + $0x2c] ss:$16 sps:$4 sm:$0xff]   ;;  %v251_v10 = vshrl.u32 %v250_v9, 7 }
  0x23   : > { %v2349_v39 = vld [vmem:[%s3051_s2 + $0x24] ss:$16 sps:$4 sm:$0xff]   ;;  %v2359_v41 = vld [vmem:[%s3051_s2 + $0x20] ss:$16 sps:$4 sm:$0xff]   ;;  %v2366_v42 = vld [vmem:[%s3051_s2 + $0x28] ss:$16 sps:$4 sm:$0xff]  }
  0x24   : > { %v2373_v43 = vld [vmem:[%s3051_s2 + $0x44] ss:$16 sps:$4 sm:$0xff]   ;;  %v2378_v44 = vld [vmem:[%s3051_s2 + $0x4c] ss:$16 sps:$4 sm:$0xff]   ;;  %v2386_v46 = vld [vmem:[%s3051_s2 + $0x40] ss:$16 sps:$4 sm:$0xff]  }
  0x25   : > { %461 = vmatpush1.bf16.msra.mxu0 %v1934_v16  ;;  %534 = vmatpush1.bf16.msra.mxu1 %v1935_v17  ;;  %v1973_v45 = vld [vmem:[%s2218_s21 + $0x8] sm:$0xff]   ;;  %v2398_v48 = vld [vmem:[%s3051_s2 + $0x64] ss:$16 sps:$4 sm:$0xff]   ;;  %v2410_v50 = vld [vmem:[%s3051_s2 + $0x60] ss:$16 sps:$4 sm:$0xff]   ;;  %v260_v11 = vsub.s32 2, %v251_v10 }
  0x26   : > { %462 = vmatprep.subr.bf16.mxu0 %v1936_v18  ;;  %535 = vmatprep.subr.bf16.mxu1 %v1938_v19  ;;  %v2391_v47 = vld [vmem:[%s3051_s2 + $0x48] ss:$16 sps:$4 sm:$0xff]   ;;  %v2405_v49 = vld [vmem:[%s3051_s2 + $0x6c] ss:$16 sps:$4 sm:$0xff]   ;;  %v2422_v52 = vld [vmem:[%s3051_s2 + $0x84] ss:$16 sps:$4 sm:$0xff]  }
  0x27   : > { %v2415_v51 = vld [vmem:[%s3051_s2 + $0x68] ss:$16 sps:$4 sm:$0xff]   ;;  %v2429_v53 = vld [vmem:[%s3051_s2 + $0x8c] ss:$16 sps:$4 sm:$0xff]   ;;  %v1986_v54 = vld [vmem:[%s2218_s21 + $0x10] sm:$0xff]   ;;  %v264_v12 = vsub.s32 3, %v251_v10 }
  0x28   : > { %v2439_v55 = vld [vmem:[%s3051_s2 + $0x80] ss:$16 sps:$4 sm:$0xff]   ;;  %v2444_v56 = vld [vmem:[%s3051_s2 + $0x88] ss:$16 sps:$4 sm:$0xff]   ;;  %v2451_v57 = vld [vmem:[%s3051_s2 + $0xa4] ss:$16 sps:$4 sm:$0xff]  }
  0x29   : > { %463 = vmatpush1.bf16.msra.mxu0 %v1940_v20  ;;  %536 = vmatpush1.bf16.msra.mxu1 %v1941_v21  ;;  %v2456_v58 = vld [vmem:[%s3051_s2 + $0xac] ss:$16 sps:$4 sm:$0xff]   ;;  %v2463_v59 = vld [vmem:[%s3051_s2 + $0xa0] ss:$16 sps:$4 sm:$0xff]   ;;  %v2468_v60 = vld [vmem:[%s3051_s2 + $0xa8] ss:$16 sps:$4 sm:$0xff]  }
  0x2a   : > { %464 = vmatprep.subr.bf16.mxu0 %v1942_v22  ;;  %537 = vmatprep.subr.bf16.mxu1 %v1944_v23  ;;  %v2475_v61 = vld [vmem:[%s3051_s2 + $0xc4] ss:$16 sps:$4 sm:$0xff]   ;;  %v2480_v62 = vld [vmem:[%s3051_s2 + $0xcc] ss:$16 sps:$4 sm:$0xff]   ;;  %v2490_v0 = vld [vmem:[%s3051_s2 + $0xc0] ss:$16 sps:$4 sm:$0xff]  }
  0x2b   : > { %v1999_v63 = vld [vmem:[%s2218_s21 + $0x18] sm:$0xff]   ;;  %v2502_v2 = vld [vmem:[%s3051_s2 + $0xe4] ss:$16 sps:$4 sm:$0xff]   ;;  %v2514_v5 = vld [vmem:[%s3051_s2 + $0xe0] ss:$16 sps:$4 sm:$0xff]   ;;  %v252_v13 = vsub.s32 0, %v251_v10 }
  0x2c   : > { %v2495_v1 = vld [vmem:[%s3051_s2 + $0xc8] ss:$16 sps:$4 sm:$0xff]   ;;  %v2507_v4 = vld [vmem:[%s3051_s2 + $0xec] ss:$16 sps:$4 sm:$0xff]   ;;  %v632_v7 = vld [vmem:[#allocation2] sm:$0xff]  ;;  %v256_v15 = vsub.s32 1, %v251_v10 }
  0x2d   : > { %465 = vmatpush1.bf16.msra.mxu0 %v1946_v24  ;;  %538 = vmatpush1.bf16.msra.mxu1 %v1947_v25  ;;  %v2519_v6 = vld [vmem:[%s3051_s2 + $0xe8] ss:$16 sps:$4 sm:$0xff]   ;;  %v633_v8 = vpack.c.bf16 %v632_v7, %v632_v7  ;;  %v248_v14 = vld [vmem:[%s3052_s3] sm:$0xf] }
  0x2e   : > { %466 = vmatprep.subr.bf16.mxu0 %v1948_v26  ;;  %539 = vmatprep.subr.bf16.mxu1 %v1950_v27  ;;  %v2566_v16 = vrot.slane %v248_v14, %v260_v11  ;;  %v2572_v19 = vrot.slane %v248_v14, %v264_v12  ;;  %v253_v20 = vrot.slane %v248_v14, %v252_v13 }
  0x2f   : > { %v257_v23 = vrot.slane %v248_v14, %v256_v15 }
  0x31   : > { %467 = vmatpush1.bf16.msra.mxu0 %v1952_v28  ;;  %540 = vmatpush1.bf16.msra.mxu1 %v1953_v29 }
  0x32   : > { %468 = vmatprep.subr.bf16.mxu0 %v1954_v30  ;;  %541 = vmatprep.subr.bf16.mxu1 %v1956_v31 }
  0x35   : > { %469 = vmatpush1.bf16.msra.mxu0 %v1958_v32  ;;  %542 = vmatpush1.bf16.msra.mxu1 %v1959_v33 }
  0x36   : > { %794 = vmatprep.subr.bf16.mxu0 %v2326_v34  ;;  %835 = vmatprep.subr.bf16.mxu1 %v2331_v35 }
  0x38   : > { %487 = vmatmul.mubr.bf16.vlgmr.msra.gmra.mrb[0].mxu0 %v1960_v36  ;;  %560 = vmatmul.mubr.bf16.vlgmr.msra.gmra.mrb[0].mxu1 %v1960_v36 }
  0x39   : > { %795 = vmatpush1.bf16.msra.mxu0 %v2337_v37  ;;  %836 = vmatpush1.bf16.msra.mxu1 %v2342_v38 }
  0x3a   : > { %796 = vmatprep.subr.bf16.mxu0 %v2349_v39  ;;  %837 = vmatprep.subr.bf16.mxu1 %v2354_v40 }
  0x3b   : > { %496 = vmatprep.mubr.bf16.mxu0 %v3054_v3  ;;  %569 = vmatprep.mubr.bf16.mxu1 %v3054_v3 }
  0x3d   : > { %797 = vmatpush1.bf16.msra.mxu0 %v2359_v41  ;;  %838 = vmatpush1.bf16.msra.mxu1 %v2366_v42 }
  0x3e   : > { %798 = vmatprep.subr.bf16.mxu0 %v2373_v43  ;;  %839 = vmatprep.subr.bf16.mxu1 %v2378_v44 }
  0x40   : > { %497 = vmatmul.mubr.bf16.gmra.mrb[4].mxu0 %v1973_v45  ;;  %570 = vmatmul.mubr.bf16.gmra.mrb[4].mxu1 %v1973_v45 }
  0x41   : > { %799 = vmatpush1.bf16.msra.mxu0 %v2386_v46  ;;  %840 = vmatpush1.bf16.msra.mxu1 %v2391_v47 }
  0x42   : > { %800 = vmatprep.subr.bf16.mxu0 %v2398_v48  ;;  %841 = vmatprep.subr.bf16.mxu1 %v2405_v49 }
  0x43   : > { %506 = vmatprep.mubr.bf16.mxu0 %v3054_v3  ;;  %579 = vmatprep.mubr.bf16.mxu1 %v3054_v3 }
  0x45   : > { %801 = vmatpush1.bf16.msra.mxu0 %v2410_v50  ;;  %842 = vmatpush1.bf16.msra.mxu1 %v2415_v51 }
  0x46   : > { %802 = vmatprep.subr.bf16.mxu0 %v2422_v52  ;;  %843 = vmatprep.subr.bf16.mxu1 %v2429_v53 }
  0x48   : > { %507 = vmatmul.mubr.bf16.gmra.mrb[8].mxu0 %v1986_v54  ;;  %580 = vmatmul.mubr.bf16.gmra.mrb[8].mxu1 %v1986_v54 }
  0x49   : > { %803 = vmatpush1.bf16.msra.mxu0 %v2439_v55  ;;  %844 = vmatpush1.bf16.msra.mxu1 %v2444_v56 }
  0x4a   : > { %804 = vmatprep.subr.bf16.mxu0 %v2451_v57  ;;  %845 = vmatprep.subr.bf16.mxu1 %v2456_v58 }
  0x4b   : > { %516 = vmatprep.mubr.bf16.mxu0 %v3054_v3  ;;  %589 = vmatprep.mubr.bf16.mxu1 %v3054_v3 }
  0x4d   : > { %805 = vmatpush1.bf16.msra.mxu0 %v2463_v59  ;;  %846 = vmatpush1.bf16.msra.mxu1 %v2468_v60 }
  0x4e   : > { %806 = vmatprep.subr.bf16.mxu0 %v2475_v61  ;;  %847 = vmatprep.subr.bf16.mxu1 %v2480_v62 }
  0x50   : > { %517 = vmatmul.mubr.bf16.gmra.mrb[12].mxu0 %v1999_v63  ;;  %590 = vmatmul.mubr.bf16.gmra.mrb[12].mxu1 %v1999_v63 }
  0x51   : > { %807 = vmatpush1.bf16.msra.mxu0 %v2490_v0  ;;  %848 = vmatpush1.bf16.msra.mxu1 %v2495_v1 }
  0x52   : > { %808 = vmatprep.subr.bf16.mxu0 %v2502_v2  ;;  %849 = vmatprep.subr.bf16.mxu1 %v2507_v4 }
  0x53   : > { %826 = vmatprep.mubr.bf16.mxu0 %v3054_v3  ;;  %867 = vmatprep.mubr.bf16.mxu1 %v3054_v3 }
  0x55   : > { %809 = vmatpush1.bf16.msra.mxu0 %v2514_v5  ;;  %850 = vmatpush1.bf16.msra.mxu1 %v2519_v6 }
  0x56   : > { %911 = vmatprep.subr.bf16.mxu0 %v2326_v34  ;;  %952 = vmatprep.subr.bf16.mxu1 %v2331_v35 }
  0x58   : > { %827 = vmatmul.mubr.bf16.vlgmr.msra.gmra.mrb[16].mxu0 %v633_v8  ;;  %868 = vmatmul.mubr.bf16.vlgmr.msra.gmra.mrb[16].mxu1 %v633_v8 }
  0x59   : > { %912 = vmatpush1.bf16.msra.mxu0 %v2337_v37  ;;  %953 = vmatpush1.bf16.msra.mxu1 %v2342_v38 }
  0x5a   : > { %913 = vmatprep.subr.bf16.mxu0 %v2349_v39  ;;  %954 = vmatprep.subr.bf16.mxu1 %v2354_v40 }
  0x5b   : > { %943 = vmatprep.mubr.bf16.mxu0 %v3054_v3  ;;  %984 = vmatprep.mubr.bf16.mxu1 %v3054_v3 }
  0x5d   : > { %914 = vmatpush1.bf16.msra.mxu0 %v2359_v41  ;;  %955 = vmatpush1.bf16.msra.mxu1 %v2366_v42 }
  0x5e   : > { %915 = vmatprep.subr.bf16.mxu0 %v2373_v43  ;;  %956 = vmatprep.subr.bf16.mxu1 %v2378_v44 }
  0x61   : > { %916 = vmatpush1.bf16.msra.mxu0 %v2386_v46  ;;  %957 = vmatpush1.bf16.msra.mxu1 %v2391_v47 }
  0x62   : > { %917 = vmatprep.subr.bf16.mxu0 %v2398_v48  ;;  %958 = vmatprep.subr.bf16.mxu1 %v2405_v49 }
  0x65   : > { %918 = vmatpush1.bf16.msra.mxu0 %v2410_v50  ;;  %959 = vmatpush1.bf16.msra.mxu1 %v2415_v51 }
  0x66   : > { %919 = vmatprep.subr.bf16.mxu0 %v2422_v52  ;;  %960 = vmatprep.subr.bf16.mxu1 %v2429_v53 }
  0x69   : > { %920 = vmatpush1.bf16.msra.mxu0 %v2439_v55  ;;  %961 = vmatpush1.bf16.msra.mxu1 %v2444_v56 }
  0x6a   : > { %921 = vmatprep.subr.bf16.mxu0 %v2451_v57  ;;  %962 = vmatprep.subr.bf16.mxu1 %v2456_v58 }
  0x6d   : > { %922 = vmatpush1.bf16.msra.mxu0 %v2463_v59  ;;  %963 = vmatpush1.bf16.msra.mxu1 %v2468_v60 }
  0x6e   : > { %923 = vmatprep.subr.bf16.mxu0 %v2475_v61  ;;  %964 = vmatprep.subr.bf16.mxu1 %v2480_v62 }
  0x71   : > { %924 = vmatpush1.bf16.msra.mxu0 %v2490_v0  ;;  %965 = vmatpush1.bf16.msra.mxu1 %v2495_v1 }
  0x72   : > { %925 = vmatprep.subr.bf16.mxu0 %v2502_v2  ;;  %966 = vmatprep.subr.bf16.mxu1 %v2507_v4 }
  0x75   : > { %926 = vmatpush1.bf16.msra.mxu0 %v2514_v5  ;;  %967 = vmatpush1.bf16.msra.mxu1 %v2519_v6 }
  0x76   : > { %1029 = vmatprep.subr.bf16.mxu0 %v2326_v34  ;;  %1070 = vmatprep.subr.bf16.mxu1 %v2331_v35 }
 0x10b   : > { %v2568_v17 = vpop.f32.mrb[0].mxu0  ;;  %v2570_v18 = vpop.f32.mrb[0].mxu1 }
 0x10c   : > { %v490_v21 = vpop.f32.mrb[1].mxu0  ;;  %v563_v22 = vpop.f32.mrb[1].mxu1 }
 0x10d   : > { %v492_v24 = vpop.f32.mrb[2].mxu0  ;;  %v565_v25 = vpop.f32.mrb[2].mxu1 }
 0x10e   : > { %v2574_v26 = vadd.f32 %v492_v24, %v253_v20  ;;  %v494_v27 = vpop.f32.mrb[3].mxu0  ;;  %v2577_v28 = vadd.f32 %v565_v25, %v2566_v16  ;;  %v567_v29 = vpop.f32.mrb[3].mxu1 }
 0x10f   : > { %v2579_v30 = vadd.f32 %v494_v27, %v257_v23  ;;  %v2582_v31 = vadd.f32 %v567_v29, %v2572_v19 }
 0x113   : > { %v498_v32 = vpop.f32.mrb[4].mxu0  ;;  %v571_v33 = vpop.f32.mrb[4].mxu1 }
 0x114   : > { %v2584_v36 = vadd.f32 %v498_v32, %v253_v20  ;;  %v500_v45 = vpop.f32.mrb[5].mxu0  ;;  %v2587_v54 = vadd.f32 %v571_v33, %v2566_v16  ;;  %v573_v63 = vpop.f32.mrb[5].mxu1 }
 0x115   : > { %v2589_v7 = vadd.f32 %v500_v45, %v257_v23  ;;  %v502_v8 = vpop.f32.mrb[6].mxu0  ;;  %v2592_v9 = vadd.f32 %v573_v63, %v2572_v19  ;;  %v575_v10 = vpop.f32.mrb[6].mxu1 }
 0x116   : > { %v2594_v11 = vadd.f32 %v502_v8, %v253_v20  ;;  %v504_v12 = vpop.f32.mrb[7].mxu0  ;;  %v2597_v13 = vadd.f32 %v575_v10, %v2566_v16  ;;  %v577_v14 = vpop.f32.mrb[7].mxu1 }
 0x117   : > { %3056 = vst [vmem:[#allocation4_spill] sm:$0xff] %v2592_v9  ;;  %v2599_v15 = vadd.f32 %v504_v12, %v257_v23  ;;  %v2602_v24 = vadd.f32 %v577_v14, %v2572_v19 }
 0x118   : > { %3057 = vst [vmem:[#allocation5_spill] sm:$0xff] %v2594_v11  ;;  %3058 = vst [vmem:[#allocation6_spill] sm:$0xff] %v2597_v13 }
 0x119   : > { %3059 = vst [vmem:[#allocation7_spill] sm:$0xff] %v2599_v15  ;;  %3060 = vst [vmem:[#allocation8_spill] sm:$0xff] %v2602_v24 }
 0x11b   : > { %v508_v25 = vpop.f32.mrb[8].mxu0  ;;  %v581_v27 = vpop.f32.mrb[8].mxu1 }
 0x11c   : > { %v2604_v29 = vadd.f32 %v508_v25, %v253_v20  ;;  %v510_v32 = vpop.f32.mrb[9].mxu0  ;;  %v2607_v33 = vadd.f32 %v581_v27, %v2566_v16  ;;  %v583_v45 = vpop.f32.mrb[9].mxu1 }
 0x11d   : > { %v2609_v63 = vadd.f32 %v510_v32, %v257_v23  ;;  %v512_v8 = vpop.f32.mrb[10].mxu0  ;;  %v2612_v10 = vadd.f32 %v583_v45, %v2572_v19  ;;  %v585_v12 = vpop.f32.mrb[10].mxu1 }
 0x11e   : > { %3061 = vst [vmem:[#allocation9_spill] sm:$0xff] %v2604_v29  ;;  %3062 = vst [vmem:[#allocation10_spill] sm:$0xff] %v2607_v33  ;;  %v2614_v3 = vadd.f32 %v512_v8, %v253_v20  ;;  %v514_v14 = vpop.f32.mrb[11].mxu0  ;;  %v2617_v24 = vadd.f32 %v585_v12, %v2566_v16  ;;  %v587_v25 = vpop.f32.mrb[11].mxu1 }
 0x11f   : > { %3063 = vst [vmem:[#allocation11_spill] sm:$0xff] %v2609_v63  ;;  %3064 = vst [vmem:[#allocation12_spill] sm:$0xff] %v2612_v10  ;;  %v2619_v29 = vadd.f32 %v514_v14, %v257_v23  ;;  %v2622_v27 = vadd.f32 %v587_v25, %v2572_v19 }
 0x120   : > { %3065 = vst [vmem:[#allocation13_spill] sm:$0xff] %v2614_v3  ;;  %3066 = vst [vmem:[#allocation14_spill] sm:$0xff] %v2617_v24 }
 0x121   : > { %3067 = vst [vmem:[#allocation15_spill] sm:$0xff] %v2619_v29  ;;  %3068 = vst [vmem:[#allocation16_spill] sm:$0xff] %v2622_v27 }
 0x123   : > { %v518_v33 = vpop.f32.mrb[12].mxu0  ;;  %v591_v32 = vpop.f32.mrb[12].mxu1 }
 0x124   : > { %v2624_v63 = vadd.f32 %v518_v33, %v253_v20  ;;  %v520_v15 = vpop.f32.mrb[13].mxu0  ;;  %v2627_v45 = vadd.f32 %v591_v32, %v2566_v16  ;;  %v593_v8 = vpop.f32.mrb[13].mxu1 }
 0x125   : > { %v2629_v3 = vadd.f32 %v520_v15, %v257_v23  ;;  %v522_v10 = vpop.f32.mrb[14].mxu0  ;;  %v2632_v12 = vadd.f32 %v593_v8, %v2572_v19  ;;  %v595_v14 = vpop.f32.mrb[14].mxu1  ;;  %v489_v15 = vadd.f32 %v2568_v17, %v253_v20  ;;  %v491_v8 = vadd.f32 %v490_v21, %v257_v23 }
 0x126   : > { %3069 = vst [vmem:[#allocation17_spill] sm:$0xff] %v2624_v63  ;;  %3070 = vst [vmem:[#allocation18_spill] sm:$0xff] %v2627_v45  ;;  %v2634_v29 = vadd.f32 %v522_v10, %v253_v20  ;;  %v524_v25 = vpop.f32.mrb[15].mxu0  ;;  %v2637_v27 = vadd.f32 %v595_v14, %v2566_v16  ;;  %v597_v33 = vpop.f32.mrb[15].mxu1 }
 0x127   : > { %3071 = vst [vmem:[#allocation19_spill] sm:$0xff] %v2629_v3  ;;  %3072 = vst [vmem:[#allocation20_spill] sm:$0xff] %v2632_v12  ;;  %v2639_v63 = vadd.f32 %v524_v25, %v257_v23  ;;  %v2642_v32 = vadd.f32 %v597_v33, %v2572_v19  ;;  %v562_v3 = vadd.f32 %v2570_v18, %v2566_v16  ;;  %v899_v23 = vld [vmem:[#allocation3] sm:$0xff] }
 0x128   : > { %3073 = vst [vmem:[#allocation21_spill] sm:$0xff] %v2634_v29  ;;  %3074 = vst [vmem:[#allocation22_spill] sm:$0xff] %v2637_v27  ;;  %v564_v12 = vadd.f32 %v563_v22, %v2572_v19 }
 0x129   : > { %3075 = vst [vmem:[#allocation23_spill] sm:$0xff] %v2639_v63  ;;  %3076 = vst [vmem:[#allocation24_spill] sm:$0xff] %v2642_v32 }
 0x12b   : > { %v828_v10 = vpop.f32.mrb[16].mxu0  ;;  %v869_v29 = vpop.f32.mrb[16].mxu1 }
 0x12c   : > { %v876_v45 = vadd.f32 %v828_v10, %v489_v15  ;;  %v878_v24 = vadd.f32 %v869_v29, %v562_v3  ;;  %v830_v14 = vpop.f32.mrb[17].mxu0  ;;  %v871_v27 = vpop.f32.mrb[17].mxu1  ;;  %v3077_v15 = vmov 0  }
 0x12d   : > { %v877_v13 = vadd.f32 %v830_v14, %v491_v8  ;;  %v879_v25 = vadd.f32 %v871_v27, %v564_v12  ;;  %v832_v63 = vpop.f32.mrb[18].mxu0  ;;  %v873_v11 = vpop.f32.mrb[18].mxu1 }
 0x12e   : > { %v1869_v33 = vmul.f32 -1.442695, %v876_v45  ;;  %v833_v32 = vpop.f32.mrb[19].mxu0  ;;  %v874_v9 = vpop.f32.mrb[19].mxu1 }
 0x12f   : > { %v1870_v17 = vmul.f32 -1.442695, %v877_v13  ;;  %v1871_v16 = vmul.f32 -1.442695, %v879_v25 }
 0x130   : > { %2012 = vpow2.f32 %v1869_v33 }
 0x131   : > { %2014 = vpow2.f32 %v1870_v17 }
 0x132   : > { %2016 = vpow2.f32 %v1871_v16 }
 0x133   : > { %2018 = vtanh.f32 %v878_v24 }
 0x13a   : > { %v2013_v18 = vpop.eup %2012 }
 0x13b   : > { %v2015_v20 = vpop.eup %2014  ;;  %v883_v19 = vadd.f32 1.0, %v2013_v18 }
 0x13c   : > { %v889_v21 = vadd.f32 1.0, %v2015_v20  ;;  %v2017_v3 = vpop.eup %2016 }
 0x13d   : > { %2020 = vrcp.f32 %v883_v19  ;;  %v2019_v22 = vpop.eup %2018  ;;  %v896_v9 = vadd.f32 1.0, %v2017_v3 }
 0x13e   : > { %2022 = vrcp.f32 %v889_v21 }
 0x13f   : > { %2024 = vrcp.f32 %v896_v9 }
 0x147   : > { %v2021_v11 = vpop.eup %2020 }
 0x148   : > { %v2023_v29 = vpop.eup %2022  ;;  %v901_v63 = vmul.f32 %v2021_v11, %v2019_v22 }
 0x149   : > { %v900_v13 = vmul.f32 %v2023_v29, %v899_v23  ;;  %v2025_v45 = vpop.eup %2024 }
 0x14b   : > { %v2648_v27 = vadd.f32 %v901_v63, %v900_v13 }
 0x14d   : > { %2026 = vtanh.f32 %v2648_v27 }
 0x157   : > { %v2027_v12 = vpop.eup %2026 }
 0x158   : > { %v904_v24 = vmul.f32 %v2027_v12, %v2025_v45 }
 0x15a   : > { %v907_v32 = vpack.c.bf16 %v904_v24, %v904_v24 }
 0x15c   : > { %908 = vst [vmem:[%s2223_s24] sm:$0xf] %v907_v32  ;;  %944 = vmatmul.mubr.bf16.vlgmr.msra.gmra.mrb[20].mxu0 %v907_v32  ;;  %985 = vmatmul.mubr.bf16.vlgmr.msra.gmra.mrb[20].mxu1 %v907_v32 }
 0x15d   : > { %1030 = vmatpush1.bf16.msra.mxu0 %v2337_v37  ;;  %1071 = vmatpush1.bf16.msra.mxu1 %v2342_v38 }
 0x15e   : > { %1031 = vmatprep.subr.bf16.mxu0 %v2349_v39  ;;  %1072 = vmatprep.subr.bf16.mxu1 %v2354_v40 }
 0x15f   : > { %1061 = vmatprep.mubr.bf16.mxu0 %v3077_v15  ;;  %1102 = vmatprep.mubr.bf16.mxu1 %v3077_v15 }
 0x161   : > { %1032 = vmatpush1.bf16.msra.mxu0 %v2359_v41  ;;  %1073 = vmatpush1.bf16.msra.mxu1 %v2366_v42 }
 0x162   : > { %1033 = vmatprep.subr.bf16.mxu0 %v2373_v43  ;;  %1074 = vmatprep.subr.bf16.mxu1 %v2378_v44 }
 0x165   : > { %1034 = vmatpush1.bf16.msra.mxu0 %v2386_v46  ;;  %1075 = vmatpush1.bf16.msra.mxu1 %v2391_v47 }
 0x166   : > { %1035 = vmatprep.subr.bf16.mxu0 %v2398_v48  ;;  %1076 = vmatprep.subr.bf16.mxu1 %v2405_v49 }
 0x169   : > { %1036 = vmatpush1.bf16.msra.mxu0 %v2410_v50  ;;  %1077 = vmatpush1.bf16.msra.mxu1 %v2415_v51 }
 0x16a   : > { %1037 = vmatprep.subr.bf16.mxu0 %v2422_v52  ;;  %1078 = vmatprep.subr.bf16.mxu1 %v2429_v53 }
 0x16d   : > { %1038 = vmatpush1.bf16.msra.mxu0 %v2439_v55  ;;  %1079 = vmatpush1.bf16.msra.mxu1 %v2444_v56 }
 0x16e   : > { %1039 = vmatprep.subr.bf16.mxu0 %v2451_v57  ;;  %1080 = vmatprep.subr.bf16.mxu1 %v2456_v58 }
 0x171   : > { %1040 = vmatpush1.bf16.msra.mxu0 %v2463_v59  ;;  %1081 = vmatpush1.bf16.msra.mxu1 %v2468_v60 }
 0x172   : > { %1041 = vmatprep.subr.bf16.mxu0 %v2475_v61  ;;  %1082 = vmatprep.subr.bf16.mxu1 %v2480_v62 }
 0x175   : > { %1042 = vmatpush1.bf16.msra.mxu0 %v2490_v0  ;;  %1083 = vmatpush1.bf16.msra.mxu1 %v2495_v1 }
 0x176   : > { %1043 = vmatprep.subr.bf16.mxu0 %v2502_v2  ;;  %1084 = vmatprep.subr.bf16.mxu1 %v2507_v4 }
 0x179   : > { %1044 = vmatpush1.bf16.msra.mxu0 %v2514_v5  ;;  %1085 = vmatpush1.bf16.msra.mxu1 %v2519_v6 }
 0x17a   : > { %1147 = vmatprep.subr.bf16.mxu0 %v2326_v34  ;;  %1188 = vmatprep.subr.bf16.mxu1 %v2331_v35 }
 0x22f   : > { %v945_v8 = vpop.f32.mrb[20].mxu0  ;;  %v986_v10 = vpop.f32.mrb[20].mxu1 }
 0x230   : > { %v993_v14 = vadd.f32 %v945_v8, %v2574_v26  ;;  %v995_v25 = vadd.f32 %v986_v10, %v2577_v28  ;;  %v947_v33 = vpop.f32.mrb[21].mxu0  ;;  %v988_v17 = vpop.f32.mrb[21].mxu1 }
 0x231   : > { %v994_v16 = vadd.f32 %v947_v33, %v2579_v30  ;;  %v996_v18 = vadd.f32 %v988_v17, %v2582_v31  ;;  %v949_v20 = vpop.f32.mrb[22].mxu0  ;;  %v990_v19 = vpop.f32.mrb[22].mxu1 }
 0x232   : > { %v1872_v21 = vmul.f32 -1.442695, %v993_v14  ;;  %v950_v3 = vpop.f32.mrb[23].mxu0  ;;  %v991_v22 = vpop.f32.mrb[23].mxu1 }
 0x233   : > { %v1873_v23 = vmul.f32 -1.442695, %v994_v16  ;;  %v1874_v11 = vmul.f32 -1.442695, %v996_v18 }
 0x234   : > { %2028 = vpow2.f32 %v1872_v21  ;;  %v3078_v21 = vld [vmem:[#allocation4_spill] sm:$0xff] }
 0x235   : > { %2030 = vpow2.f32 %v1873_v23 }
 0x236   : > { %2032 = vpow2.f32 %v1874_v11 }
 0x237   : > { %2034 = vtanh.f32 %v995_v25 }
 0x23e   : > { %v2029_v29 = vpop.eup %2028 }
 0x23f   : > { %v2031_v63 = vpop.eup %2030  ;;  %v1000_v26 = vadd.f32 1.0, %v2029_v29 }
 0x240   : > { %v1006_v28 = vadd.f32 1.0, %v2031_v63  ;;  %v2033_v30 = vpop.eup %2032 }
 0x241   : > { %2036 = vrcp.f32 %v1000_v26  ;;  %v2035_v31 = vpop.eup %2034  ;;  %v1013_v12 = vadd.f32 1.0, %v2033_v30 }
 0x242   : > { %2038 = vrcp.f32 %v1006_v28 }
 0x243   : > { %2040 = vrcp.f32 %v1013_v12 }
 0x24b   : > { %v2037_v9 = vpop.eup %2036 }
 0x24c   : > { %v2039_v13 = vpop.eup %2038  ;;  %v1018_v45 = vmul.f32 %v2037_v9, %v2035_v31 }
 0x24d   : > { %v1017_v24 = vmul.f32 %v2039_v13, %v2648_v27  ;;  %v2041_v8 = vpop.eup %2040 }
 0x24f   : > { %v2691_v32 = vadd.f32 %v1018_v45, %v1017_v24 }
 0x251   : > { %2042 = vtanh.f32 %v2691_v32 }
 0x25b   : > { %v2043_v10 = vpop.eup %2042 }
 0x25c   : > { %v1021_v14 = vmul.f32 %v2043_v10, %v2041_v8 }
 0x25e   : > { %v1024_v25 = vpack.c.bf16 %v1021_v14, %v1021_v14 }
 0x260   : > { %1875 = vst [vmem:[%s2223_s24 + $0x4] sm:$0xf] %v1024_v25  ;;  %1062 = vmatmul.mubr.bf16.vlgmr.msra.gmra.mrb[24].mxu0 %v1024_v25  ;;  %1103 = vmatmul.mubr.bf16.vlgmr.msra.gmra.mrb[24].mxu1 %v1024_v25 }
 0x261   : > { %1148 = vmatpush1.bf16.msra.mxu0 %v2337_v37  ;;  %1189 = vmatpush1.bf16.msra.mxu1 %v2342_v38 }
 0x262   : > { %1149 = vmatprep.subr.bf16.mxu0 %v2349_v39  ;;  %1190 = vmatprep.subr.bf16.mxu1 %v2354_v40 }
 0x263   : > { %1179 = vmatprep.mubr.bf16.mxu0 %v3077_v15  ;;  %1220 = vmatprep.mubr.bf16.mxu1 %v3077_v15 }
 0x265   : > { %1150 = vmatpush1.bf16.msra.mxu0 %v2359_v41  ;;  %1191 = vmatpush1.bf16.msra.mxu1 %v2366_v42 }
 0x266   : > { %1151 = vmatprep.subr.bf16.mxu0 %v2373_v43  ;;  %1192 = vmatprep.subr.bf16.mxu1 %v2378_v44 }
 0x269   : > { %1152 = vmatpush1.bf16.msra.mxu0 %v2386_v46  ;;  %1193 = vmatpush1.bf16.msra.mxu1 %v2391_v47 }
 0x26a   : > { %1153 = vmatprep.subr.bf16.mxu0 %v2398_v48  ;;  %1194 = vmatprep.subr.bf16.mxu1 %v2405_v49 }
 0x26d   : > { %1154 = vmatpush1.bf16.msra.mxu0 %v2410_v50  ;;  %1195 = vmatpush1.bf16.msra.mxu1 %v2415_v51 }
 0x26e   : > { %1155 = vmatprep.subr.bf16.mxu0 %v2422_v52  ;;  %1196 = vmatprep.subr.bf16.mxu1 %v2429_v53 }
 0x271   : > { %1156 = vmatpush1.bf16.msra.mxu0 %v2439_v55  ;;  %1197 = vmatpush1.bf16.msra.mxu1 %v2444_v56 }
 0x272   : > { %1157 = vmatprep.subr.bf16.mxu0 %v2451_v57  ;;  %1198 = vmatprep.subr.bf16.mxu1 %v2456_v58 }
 0x275   : > { %1158 = vmatpush1.bf16.msra.mxu0 %v2463_v59  ;;  %1199 = vmatpush1.bf16.msra.mxu1 %v2468_v60 }
 0x276   : > { %1159 = vmatprep.subr.bf16.mxu0 %v2475_v61  ;;  %1200 = vmatprep.subr.bf16.mxu1 %v2480_v62 }
 0x279   : > { %1160 = vmatpush1.bf16.msra.mxu0 %v2490_v0  ;;  %1201 = vmatpush1.bf16.msra.mxu1 %v2495_v1 }
 0x27a   : > { %1161 = vmatprep.subr.bf16.mxu0 %v2502_v2  ;;  %1202 = vmatprep.subr.bf16.mxu1 %v2507_v4 }
 0x27d   : > { %1162 = vmatpush1.bf16.msra.mxu0 %v2514_v5  ;;  %1203 = vmatpush1.bf16.msra.mxu1 %v2519_v6 }
 0x27e   : > { %1265 = vmatprep.subr.bf16.mxu0 %v2326_v34  ;;  %1306 = vmatprep.subr.bf16.mxu1 %v2331_v35 }
 0x333   : > { %v1063_v27 = vpop.f32.mrb[24].mxu0  ;;  %v1104_v33 = vpop.f32.mrb[24].mxu1 }
 0x334   : > { %v1111_v17 = vadd.f32 %v1063_v27, %v2584_v36  ;;  %v1113_v16 = vadd.f32 %v1104_v33, %v2587_v54  ;;  %v1065_v18 = vpop.f32.mrb[25].mxu0  ;;  %v1106_v20 = vpop.f32.mrb[25].mxu1 }
 0x335   : > { %v1112_v19 = vadd.f32 %v1065_v18, %v2589_v7  ;;  %v1114_v3 = vadd.f32 %v1106_v20, %v3078_v21  ;;  %v1067_v22 = vpop.f32.mrb[26].mxu0  ;;  %v1108_v23 = vpop.f32.mrb[26].mxu1  ;;  %v3080_v20 = vld [vmem:[#allocation6_spill] sm:$0xff] }
 0x336   : > { %v1876_v11 = vmul.f32 -1.442695, %v1111_v17  ;;  %v1068_v29 = vpop.f32.mrb[27].mxu0  ;;  %v1109_v63 = vpop.f32.mrb[27].mxu1  ;;  %v3081_v22 = vld [vmem:[#allocation7_spill] sm:$0xff] }
 0x337   : > { %v1877_v26 = vmul.f32 -1.442695, %v1112_v19  ;;  %v1878_v28 = vmul.f32 -1.442695, %v1114_v3 }
 0x338   : > { %2044 = vpow2.f32 %v1876_v11  ;;  %v3082_v11 = vld [vmem:[#allocation8_spill] sm:$0xff] }
 0x339   : > { %2046 = vpow2.f32 %v1877_v26 }
 0x33a   : > { %2048 = vpow2.f32 %v1878_v28 }
 0x33b   : > { %2050 = vtanh.f32 %v1113_v16  ;;  %v3079_v16 = vld [vmem:[#allocation5_spill] sm:$0xff] }
 0x342   : > { %v2045_v30 = vpop.eup %2044 }
 0x343   : > { %v2047_v31 = vpop.eup %2046  ;;  %v1118_v36 = vadd.f32 1.0, %v2045_v30 }
 0x344   : > { %v1124_v54 = vadd.f32 1.0, %v2047_v31  ;;  %v2049_v7 = vpop.eup %2048 }
 0x345   : > { %2052 = vrcp.f32 %v1118_v36  ;;  %v2051_v9 = vpop.eup %2050  ;;  %v1131_v24 = vadd.f32 1.0, %v2049_v7 }
 0x346   : > { %2054 = vrcp.f32 %v1124_v54 }
 0x347   : > { %2056 = vrcp.f32 %v1131_v24 }
 0x34f   : > { %v2053_v13 = vpop.eup %2052 }
 0x350   : > { %v2055_v45 = vpop.eup %2054  ;;  %v1136_v12 = vmul.f32 %v2053_v13, %v2051_v9 }
 0x351   : > { %v1135_v8 = vmul.f32 %v2055_v45, %v2691_v32  ;;  %v2057_v14 = vpop.eup %2056 }
 0x353   : > { %v2734_v10 = vadd.f32 %v1136_v12, %v1135_v8 }
 0x355   : > { %2058 = vtanh.f32 %v2734_v10 }
 0x35f   : > { %v2059_v25 = vpop.eup %2058 }
 0x360   : > { %v1139_v27 = vmul.f32 %v2059_v25, %v2057_v14 }
 0x362   : > { %v1142_v33 = vpack.c.bf16 %v1139_v27, %v1139_v27 }
 0x364   : > { %1879 = vst [vmem:[%s2223_s24 + $0x8] sm:$0xf] %v1142_v33  ;;  %1180 = vmatmul.mubr.bf16.vlgmr.msra.gmra.mrb[28].mxu0 %v1142_v33  ;;  %1221 = vmatmul.mubr.bf16.vlgmr.msra.gmra.mrb[28].mxu1 %v1142_v33 }
 0x365   : > { %1266 = vmatpush1.bf16.msra.mxu0 %v2337_v37  ;;  %1307 = vmatpush1.bf16.msra.mxu1 %v2342_v38 }
 0x366   : > { %1267 = vmatprep.subr.bf16.mxu0 %v2349_v39  ;;  %1308 = vmatprep.subr.bf16.mxu1 %v2354_v40 }
 0x367   : > { %1297 = vmatprep.mubr.bf16.mxu0 %v3077_v15  ;;  %1338 = vmatprep.mubr.bf16.mxu1 %v3077_v15 }
 0x369   : > { %1268 = vmatpush1.bf16.msra.mxu0 %v2359_v41  ;;  %1309 = vmatpush1.bf16.msra.mxu1 %v2366_v42 }
 0x36a   : > { %1269 = vmatprep.subr.bf16.mxu0 %v2373_v43  ;;  %1310 = vmatprep.subr.bf16.mxu1 %v2378_v44 }
 0x36d   : > { %1270 = vmatpush1.bf16.msra.mxu0 %v2386_v46  ;;  %1311 = vmatpush1.bf16.msra.mxu1 %v2391_v47 }
 0x36e   : > { %1271 = vmatprep.subr.bf16.mxu0 %v2398_v48  ;;  %1312 = vmatprep.subr.bf16.mxu1 %v2405_v49 }
 0x371   : > { %1272 = vmatpush1.bf16.msra.mxu0 %v2410_v50  ;;  %1313 = vmatpush1.bf16.msra.mxu1 %v2415_v51 }
 0x372   : > { %1273 = vmatprep.subr.bf16.mxu0 %v2422_v52  ;;  %1314 = vmatprep.subr.bf16.mxu1 %v2429_v53 }
 0x375   : > { %1274 = vmatpush1.bf16.msra.mxu0 %v2439_v55  ;;  %1315 = vmatpush1.bf16.msra.mxu1 %v2444_v56 }
 0x376   : > { %1275 = vmatprep.subr.bf16.mxu0 %v2451_v57  ;;  %1316 = vmatprep.subr.bf16.mxu1 %v2456_v58 }
 0x379   : > { %1276 = vmatpush1.bf16.msra.mxu0 %v2463_v59  ;;  %1317 = vmatpush1.bf16.msra.mxu1 %v2468_v60 }
 0x37a   : > { %1277 = vmatprep.subr.bf16.mxu0 %v2475_v61  ;;  %1318 = vmatprep.subr.bf16.mxu1 %v2480_v62 }
 0x37d   : > { %1278 = vmatpush1.bf16.msra.mxu0 %v2490_v0  ;;  %1319 = vmatpush1.bf16.msra.mxu1 %v2495_v1 }
 0x37e   : > { %1279 = vmatprep.subr.bf16.mxu0 %v2502_v2  ;;  %1320 = vmatprep.subr.bf16.mxu1 %v2507_v4 }
 0x381   : > { %1280 = vmatpush1.bf16.msra.mxu0 %v2514_v5  ;;  %1321 = vmatpush1.bf16.msra.mxu1 %v2519_v6 }
 0x382   : > { %1383 = vmatprep.subr.bf16.mxu0 %v2326_v34  ;;  %1424 = vmatprep.subr.bf16.mxu1 %v2331_v35 }
 0x437   : > { %v1181_v32 = vpop.f32.mrb[28].mxu0  ;;  %v1222_v17 = vpop.f32.mrb[28].mxu1 }
 0x438   : > { %v1229_v18 = vadd.f32 %v1181_v32, %v3079_v16  ;;  %v1231_v19 = vadd.f32 %v1222_v17, %v3080_v20  ;;  %v1183_v21 = vpop.f32.mrb[29].mxu0  ;;  %v1224_v3 = vpop.f32.mrb[29].mxu1 }
 0x439   : > { %v1230_v23 = vadd.f32 %v1183_v21, %v3081_v22  ;;  %v1232_v29 = vadd.f32 %v1224_v3, %v3082_v11  ;;  %v1185_v63 = vpop.f32.mrb[30].mxu0  ;;  %v1226_v26 = vpop.f32.mrb[30].mxu1 }
 0x43a   : > { %v1880_v28 = vmul.f32 -1.442695, %v1229_v18  ;;  %v1186_v30 = vpop.f32.mrb[31].mxu0  ;;  %v1227_v31 = vpop.f32.mrb[31].mxu1 }
 0x43b   : > { %v1881_v34 = vmul.f32 -1.442695, %v1230_v23  ;;  %v1882_v35 = vmul.f32 -1.442695, %v1232_v29 }
 0x43c   : > { %2060 = vpow2.f32 %v1880_v28 }
 0x43d   : > { %2062 = vpow2.f32 %v1881_v34  ;;  %v2837_v34 = vld [vmem:[%s3051_s2] ss:$16 sps:$4 sm:$0xff]  }
 0x43e   : > { %2064 = vpow2.f32 %v1882_v35  ;;  %v2843_v35 = vld [vmem:[%s3051_s2 + $0x8] ss:$16 sps:$4 sm:$0xff]  }
 0x43f   : > { %2066 = vtanh.f32 %v1231_v19 }
 0x446   : > { %v2061_v36 = vpop.eup %2060 }
 0x447   : > { %v2063_v54 = vpop.eup %2062  ;;  %v1236_v7 = vadd.f32 1.0, %v2061_v36  ;;  %v2849_v36 = vld [vmem:[%s3051_s2 + $0x24] ss:$16 sps:$4 sm:$0xff]  }
 0x448   : > { %v1242_v9 = vadd.f32 1.0, %v2063_v54  ;;  %v2065_v13 = vpop.eup %2064  ;;  %v2855_v54 = vld [vmem:[%s3051_s2 + $0x2c] ss:$16 sps:$4 sm:$0xff]  }
 0x449   : > { %2068 = vrcp.f32 %v1236_v7  ;;  %v2067_v45 = vpop.eup %2066  ;;  %v1249_v14 = vadd.f32 1.0, %v2065_v13  ;;  %v2863_v7 = vld [vmem:[%s3051_s2 + $0x20] ss:$16 sps:$4 sm:$0xff]   ;;  %v2875_v13 = vld [vmem:[%s3051_s2 + $0x44] ss:$16 sps:$4 sm:$0xff]  }
 0x44a   : > { %2070 = vrcp.f32 %v1242_v9  ;;  %v2869_v9 = vld [vmem:[%s3051_s2 + $0x28] ss:$16 sps:$4 sm:$0xff]  }
 0x44b   : > { %2072 = vrcp.f32 %v1249_v14  ;;  %v2905_v14 = vld [vmem:[%s3051_s2 + $0x6c] ss:$16 sps:$4 sm:$0xff]  }
 0x453   : > { %v2069_v12 = vpop.eup %2068 }
 0x454   : > { %v2071_v24 = vpop.eup %2070  ;;  %v1254_v8 = vmul.f32 %v2069_v12, %v2067_v45  ;;  %v2881_v45 = vld [vmem:[%s3051_s2 + $0x4c] ss:$16 sps:$4 sm:$0xff]   ;;  %v2887_v12 = vld [vmem:[%s3051_s2 + $0x40] ss:$16 sps:$4 sm:$0xff]  }
 0x455   : > { %v1253_v25 = vmul.f32 %v2071_v24, %v2734_v10  ;;  %v2073_v33 = vpop.eup %2072  ;;  %v2893_v24 = vld [vmem:[%s3051_s2 + $0x48] ss:$16 sps:$4 sm:$0xff]  }
 0x457   : > { %v2777_v27 = vadd.f32 %v1254_v8, %v1253_v25  ;;  %v2899_v8 = vld [vmem:[%s3051_s2 + $0x64] ss:$16 sps:$4 sm:$0xff]   ;;  %v2911_v25 = vld [vmem:[%s3051_s2 + $0x60] ss:$16 sps:$4 sm:$0xff]  }
 0x459   : > { %2074 = vtanh.f32 %v2777_v27 }
 0x463   : > { %v2075_v32 = vpop.eup %2074 }
 0x464   : > { %v1257_v17 = vmul.f32 %v2075_v32, %v2073_v33  ;;  %v2923_v33 = vld [vmem:[%s3051_s2 + $0x84] ss:$16 sps:$4 sm:$0xff]   ;;  %v2929_v32 = vld [vmem:[%s3051_s2 + $0x8c] ss:$16 sps:$4 sm:$0xff]  }
 0x466   : > { %v1260_v16 = vpack.c.bf16 %v1257_v17, %v1257_v17  ;;  %v2935_v17 = vld [vmem:[%s3051_s2 + $0x80] ss:$16 sps:$4 sm:$0xff]  }
 0x468   : > { %1883 = vst [vmem:[%s2223_s24 + $0xc] sm:$0xf] %v1260_v16  ;;  %1298 = vmatmul.mubr.bf16.vlgmr.msra.gmra.mrb[32].mxu0 %v1260_v16  ;;  %1339 = vmatmul.mubr.bf16.vlgmr.msra.gmra.mrb[32].mxu1 %v1260_v16  ;;  %v2941_v16 = vld [vmem:[%s3051_s2 + $0x88] ss:$16 sps:$4 sm:$0xff]  }
 0x469   : > { %1384 = vmatpush1.bf16.msra.mxu0 %v2337_v37  ;;  %1425 = vmatpush1.bf16.msra.mxu1 %v2342_v38  ;;  %v2816_v37 = vld [vmem:[%s3051_s2 + $0x4] ss:$16 sps:$4 sm:$0xff]   ;;  %v2822_v38 = vld [vmem:[%s3051_s2 + $0xc] ss:$16 sps:$4 sm:$0xff]  }
 0x46a   : > { %1385 = vmatprep.subr.bf16.mxu0 %v2349_v39  ;;  %1426 = vmatprep.subr.bf16.mxu1 %v2354_v40 }
 0x46b   : > { %1415 = vmatprep.mubr.bf16.mxu0 %v3077_v15  ;;  %1456 = vmatprep.mubr.bf16.mxu1 %v3077_v15 }
 0x46d   : > { %1386 = vmatpush1.bf16.msra.mxu0 %v2359_v41  ;;  %1427 = vmatpush1.bf16.msra.mxu1 %v2366_v42  ;;  %v3083_v41 = vld [vmem:[#allocation9_spill] sm:$0xff] }
 0x46e   : > { %1387 = vmatprep.subr.bf16.mxu0 %v2373_v43  ;;  %1428 = vmatprep.subr.bf16.mxu1 %v2378_v44  ;;  %v3084_v43 = vld [vmem:[#allocation10_spill] sm:$0xff] }
 0x471   : > { %1388 = vmatpush1.bf16.msra.mxu0 %v2386_v46  ;;  %1429 = vmatpush1.bf16.msra.mxu1 %v2391_v47 }
 0x472   : > { %1389 = vmatprep.subr.bf16.mxu0 %v2398_v48  ;;  %1430 = vmatprep.subr.bf16.mxu1 %v2405_v49  ;;  %v3085_v48 = vld [vmem:[#allocation11_spill] sm:$0xff] }
 0x475   : > { %1390 = vmatpush1.bf16.msra.mxu0 %v2410_v50  ;;  %1431 = vmatpush1.bf16.msra.mxu1 %v2415_v51  ;;  %v3086_v50 = vld [vmem:[#allocation12_spill] sm:$0xff] }
 0x476   : > { %1391 = vmatprep.subr.bf16.mxu0 %v2422_v52  ;;  %1432 = vmatprep.subr.bf16.mxu1 %v2429_v53 }
 0x479   : > { %1392 = vmatpush1.bf16.msra.mxu0 %v2439_v55  ;;  %1433 = vmatpush1.bf16.msra.mxu1 %v2444_v56 }
 0x47a   : > { %1393 = vmatprep.subr.bf16.mxu0 %v2451_v57  ;;  %1434 = vmatprep.subr.bf16.mxu1 %v2456_v58 }
 0x47d   : > { %1394 = vmatpush1.bf16.msra.mxu0 %v2463_v59  ;;  %1435 = vmatpush1.bf16.msra.mxu1 %v2468_v60 }
 0x47e   : > { %1395 = vmatprep.subr.bf16.mxu0 %v2475_v61  ;;  %1436 = vmatprep.subr.bf16.mxu1 %v2480_v62 }
 0x481   : > { %1396 = vmatpush1.bf16.msra.mxu0 %v2490_v0  ;;  %1437 = vmatpush1.bf16.msra.mxu1 %v2495_v1 }
 0x482   : > { %1397 = vmatprep.subr.bf16.mxu0 %v2502_v2  ;;  %1438 = vmatprep.subr.bf16.mxu1 %v2507_v4 }
 0x485   : > { %1398 = vmatpush1.bf16.msra.mxu0 %v2514_v5  ;;  %1439 = vmatpush1.bf16.msra.mxu1 %v2519_v6 }
 0x486   : > { %1501 = vmatprep.subr.bf16.mxu0 %v2816_v37  ;;  %1542 = vmatprep.subr.bf16.mxu1 %v2822_v38 }
 0x53b   : > { %v1299_v39 = vpop.f32.mrb[32].mxu0  ;;  %v1340_v40 = vpop.f32.mrb[32].mxu1 }
 0x53c   : > { %v1347_v42 = vadd.f32 %v1299_v39, %v3083_v41  ;;  %v1349_v44 = vadd.f32 %v1340_v40, %v3084_v43  ;;  %v1301_v46 = vpop.f32.mrb[33].mxu0  ;;  %v1342_v47 = vpop.f32.mrb[33].mxu1  ;;  %v2947_v39 = vld [vmem:[%s3051_s2 + $0xa4] ss:$16 sps:$4 sm:$0xff]   ;;  %v2953_v40 = vld [vmem:[%s3051_s2 + $0xac] ss:$16 sps:$4 sm:$0xff]  }
 0x53d   : > { %v1348_v49 = vadd.f32 %v1301_v46, %v3085_v48  ;;  %v1350_v51 = vadd.f32 %v1342_v47, %v3086_v50  ;;  %v1303_v52 = vpop.f32.mrb[34].mxu0  ;;  %v1344_v53 = vpop.f32.mrb[34].mxu1  ;;  %v2959_v41 = vld [vmem:[%s3051_s2 + $0xa0] ss:$16 sps:$4 sm:$0xff]   ;;  %v3089_v48 = vld [vmem:[#allocation15_spill] sm:$0xff] }
 0x53e   : > { %v1884_v55 = vmul.f32 -1.442695, %v1347_v42  ;;  %v1304_v56 = vpop.f32.mrb[35].mxu0  ;;  %v1345_v57 = vpop.f32.mrb[35].mxu1  ;;  %v2965_v42 = vld [vmem:[%s3051_s2 + $0xa8] ss:$16 sps:$4 sm:$0xff]  }
 0x53f   : > { %v1885_v58 = vmul.f32 -1.442695, %v1348_v49  ;;  %v1886_v59 = vmul.f32 -1.442695, %v1350_v51  ;;  %v3088_v46 = vld [vmem:[#allocation14_spill] sm:$0xff]  ;;  %v3090_v49 = vld [vmem:[#allocation16_spill] sm:$0xff] }
 0x540   : > { %2076 = vpow2.f32 %v1884_v55 }
 0x541   : > { %2078 = vpow2.f32 %v1885_v58 }
 0x542   : > { %2080 = vpow2.f32 %v1886_v59 }
 0x543   : > { %2082 = vtanh.f32 %v1349_v44  ;;  %v3087_v44 = vld [vmem:[#allocation13_spill] sm:$0xff] }
 0x54a   : > { %v2077_v60 = vpop.eup %2076 }
 0x54b   : > { %v2079_v10 = vpop.eup %2078  ;;  %v1354_v18 = vadd.f32 1.0, %v2077_v60 }
 0x54c   : > { %v1360_v20 = vadd.f32 1.0, %v2079_v10  ;;  %v2081_v19 = vpop.eup %2080 }
 0x54d   : > { %2084 = vrcp.f32 %v1354_v18  ;;  %v2083_v21 = vpop.eup %2082  ;;  %v1367_v11 = vadd.f32 1.0, %v2081_v19 }
 0x54e   : > { %2086 = vrcp.f32 %v1360_v20 }
 0x54f   : > { %2088 = vrcp.f32 %v1367_v11 }
 0x557   : > { %v2085_v3 = vpop.eup %2084 }
 0x558   : > { %v2087_v22 = vpop.eup %2086  ;;  %v1372_v23 = vmul.f32 %v2085_v3, %v2083_v21 }
 0x559   : > { %v1371_v29 = vmul.f32 %v2087_v22, %v2777_v27  ;;  %v2089_v26 = vpop.eup %2088  ;;  %v2917_v27 = vld [vmem:[%s3051_s2 + $0x68] ss:$16 sps:$4 sm:$0xff]  }
 0x55b   : > { %v2830_v63 = vadd.f32 %v1372_v23, %v1371_v29  ;;  %v2165_v29 = vld [vmem:[%s3051_s2 + $0xcc] ss:$16 sps:$4 sm:$0xff]  }
 0x55d   : > { %2090 = vtanh.f32 %v2830_v63 }
 0x567   : > { %v2091_v28 = vpop.eup %2090 }
 0x568   : > { %v1375_v30 = vmul.f32 %v2091_v28, %v2089_v26  ;;  %v2167_v26 = vld [vmem:[%s3051_s2 + $0xc8] ss:$16 sps:$4 sm:$0xff]   ;;  %v2168_v28 = vld [vmem:[%s3051_s2 + $0xe4] ss:$16 sps:$4 sm:$0xff]  }
 0x56a   : > { %v1378_v31 = vpack.c.bf16 %v1375_v30, %v1375_v30  ;;  %v2169_v30 = vld [vmem:[%s3051_s2 + $0xec] ss:$16 sps:$4 sm:$0xff]  }
 0x56c   : > { %1887 = vst [vmem:[%s2223_s24 + $0x10] sm:$0xf] %v1378_v31  ;;  %1416 = vmatmul.mubr.bf16.vlgmr.msra.gmra.mrb[36].mxu0 %v1378_v31  ;;  %1457 = vmatmul.mubr.bf16.vlgmr.msra.gmra.mrb[36].mxu1 %v1378_v31  ;;  %v2170_v31 = vld [vmem:[%s3051_s2 + $0xe0] ss:$16 sps:$4 sm:$0xff]  }
 0x56d   : > { %1502 = vmatpush1.bf16.msra.mxu0 %v2837_v34  ;;  %1543 = vmatpush1.bf16.msra.mxu1 %v2843_v35 }
 0x56e   : > { %1503 = vmatprep.subr.bf16.mxu0 %v2849_v36  ;;  %1544 = vmatprep.subr.bf16.mxu1 %v2855_v54 }
 0x56f   : > { %1533 = vmatprep.mubr.bf16.mxu0 %v3077_v15  ;;  %1574 = vmatprep.mubr.bf16.mxu1 %v3077_v15 }
 0x571   : > { %1504 = vmatpush1.bf16.msra.mxu0 %v2863_v7  ;;  %1545 = vmatpush1.bf16.msra.mxu1 %v2869_v9 }
 0x572   : > { %1505 = vmatprep.subr.bf16.mxu0 %v2875_v13  ;;  %1546 = vmatprep.subr.bf16.mxu1 %v2881_v45 }
 0x575   : > { %1506 = vmatpush1.bf16.msra.mxu0 %v2887_v12  ;;  %1547 = vmatpush1.bf16.msra.mxu1 %v2893_v24 }
 0x576   : > { %1507 = vmatprep.subr.bf16.mxu0 %v2899_v8  ;;  %1548 = vmatprep.subr.bf16.mxu1 %v2905_v14 }
 0x579   : > { %1508 = vmatpush1.bf16.msra.mxu0 %v2911_v25  ;;  %1549 = vmatpush1.bf16.msra.mxu1 %v2917_v27 }
 0x57a   : > { %1509 = vmatprep.subr.bf16.mxu0 %v2923_v33  ;;  %1550 = vmatprep.subr.bf16.mxu1 %v2929_v32 }
 0x57d   : > { %1510 = vmatpush1.bf16.msra.mxu0 %v2935_v17  ;;  %1551 = vmatpush1.bf16.msra.mxu1 %v2941_v16 }
 0x57e   : > { %1511 = vmatprep.subr.bf16.mxu0 %v2947_v39  ;;  %1552 = vmatprep.subr.bf16.mxu1 %v2953_v40 }
 0x581   : > { %1512 = vmatpush1.bf16.msra.mxu0 %v2959_v41  ;;  %1553 = vmatpush1.bf16.msra.mxu1 %v2965_v42 }
 0x582   : > { %1513 = vmatprep.subr.bf16.mxu0 %v2475_v61  ;;  %1554 = vmatprep.subr.bf16.mxu1 %v2480_v62 }
 0x585   : > { %1514 = vmatpush1.bf16.msra.mxu0 %v2490_v0  ;;  %1555 = vmatpush1.bf16.msra.mxu1 %v2495_v1 }
 0x586   : > { %1515 = vmatprep.subr.bf16.mxu0 %v2502_v2  ;;  %1556 = vmatprep.subr.bf16.mxu1 %v2507_v4 }
 0x589   : > { %1516 = vmatpush1.bf16.msra.mxu0 %v2514_v5  ;;  %1557 = vmatpush1.bf16.msra.mxu1 %v2519_v6 }
 0x58a   : > { %1619 = vmatprep.subr.bf16.mxu0 %v2816_v37  ;;  %1660 = vmatprep.subr.bf16.mxu1 %v2822_v38 }
 0x63f   : > { %v1417_v43 = vpop.f32.mrb[36].mxu0  ;;  %v1458_v61 = vpop.f32.mrb[36].mxu1 }
 0x640   : > { %v1465_v62 = vadd.f32 %v1417_v43, %v3087_v44  ;;  %v1467_v0 = vadd.f32 %v1458_v61, %v3088_v46  ;;  %v1419_v47 = vpop.f32.mrb[37].mxu0  ;;  %v1460_v1 = vpop.f32.mrb[37].mxu1 }
 0x641   : > { %v1466_v2 = vadd.f32 %v1419_v47, %v3089_v48  ;;  %v1468_v4 = vadd.f32 %v1460_v1, %v3090_v49  ;;  %v1421_v50 = vpop.f32.mrb[38].mxu0  ;;  %v1462_v5 = vpop.f32.mrb[38].mxu1 }
 0x642   : > { %v1888_v51 = vmul.f32 -1.442695, %v1465_v62  ;;  %v1422_v6 = vpop.f32.mrb[39].mxu0  ;;  %v1463_v52 = vpop.f32.mrb[39].mxu1 }
 0x643   : > { %v1889_v37 = vmul.f32 -1.442695, %v1466_v2  ;;  %v1890_v38 = vmul.f32 -1.442695, %v1468_v4  ;;  %v3095_v52 = vld [vmem:[#allocation21_spill] sm:$0xff] }
 0x644   : > { %2092 = vpow2.f32 %v1888_v51 }
 0x645   : > { %2094 = vpow2.f32 %v1889_v37 }
 0x646   : > { %2096 = vpow2.f32 %v1890_v38  ;;  %v3096_v38 = vld [vmem:[#allocation22_spill] sm:$0xff] }
 0x647   : > { %2098 = vtanh.f32 %v1467_v0 }
 0x64e   : > { %v2093_v53 = vpop.eup %2092 }
 0x64f   : > { %v2095_v55 = vpop.eup %2094  ;;  %v1472_v56 = vadd.f32 1.0, %v2093_v53 }
 0x650   : > { %v1478_v57 = vadd.f32 1.0, %v2095_v55  ;;  %v2097_v58 = vpop.eup %2096 }
 0x651   : > { %2100 = vrcp.f32 %v1472_v56  ;;  %v2099_v59 = vpop.eup %2098  ;;  %v1485_v20 = vadd.f32 1.0, %v2097_v58 }
 0x652   : > { %2102 = vrcp.f32 %v1478_v57  ;;  %v3097_v57 = vld [vmem:[#allocation23_spill] sm:$0xff] }
 0x653   : > { %2104 = vrcp.f32 %v1485_v20 }
 0x65b   : > { %v2101_v60 = vpop.eup %2100 }
 0x65c   : > { %v2103_v10 = vpop.eup %2102  ;;  %v1490_v18 = vmul.f32 %v2101_v60, %v2099_v59  ;;  %v3098_v59 = vld [vmem:[#allocation24_spill] sm:$0xff] }
 0x65d   : > { %v1489_v19 = vmul.f32 %v2103_v10, %v2830_v63  ;;  %v2105_v3 = vpop.eup %2104  ;;  %v2166_v63 = vld [vmem:[%s3051_s2 + $0xc0] ss:$16 sps:$4 sm:$0xff]  }
 0x65f   : > { %v2983_v21 = vadd.f32 %v1490_v18, %v1489_v19 }
 0x661   : > { %2106 = vtanh.f32 %v2983_v21 }
 0x66b   : > { %v2107_v22 = vpop.eup %2106 }
 0x66c   : > { %v1493_v23 = vmul.f32 %v2107_v22, %v2105_v3 }
 0x66e   : > { %v1496_v11 = vpack.c.bf16 %v1493_v23, %v1493_v23 }
 0x670   : > { %1891 = vst [vmem:[%s2223_s24 + $0x14] sm:$0xf] %v1496_v11  ;;  %1534 = vmatmul.mubr.bf16.vlgmr.msra.gmra.mrb[40].mxu0 %v1496_v11  ;;  %1575 = vmatmul.mubr.bf16.vlgmr.msra.gmra.mrb[40].mxu1 %v1496_v11 }
 0x671   : > { %1620 = vmatpush1.bf16.msra.mxu0 %v2837_v34  ;;  %1661 = vmatpush1.bf16.msra.mxu1 %v2843_v35  ;;  %v2171_v34 = vld [vmem:[%s3051_s2 + $0xe8] ss:$16 sps:$4 sm:$0xff]  }
 0x672   : > { %1621 = vmatprep.subr.bf16.mxu0 %v2849_v36  ;;  %1662 = vmatprep.subr.bf16.mxu1 %v2855_v54  ;;  %v3091_v54 = vld [vmem:[#allocation17_spill] sm:$0xff] }
 0x673   : > { %1651 = vmatprep.mubr.bf16.mxu0 %v3077_v15  ;;  %1692 = vmatprep.mubr.bf16.mxu1 %v3077_v15  ;;  %v2164_v15 = vld [vmem:[%s3051_s2 + $0xc4] ss:$16 sps:$4 sm:$0xff]  }
 0x675   : > { %1622 = vmatpush1.bf16.msra.mxu0 %v2863_v7  ;;  %1663 = vmatpush1.bf16.msra.mxu1 %v2869_v9  ;;  %v3092_v9 = vld [vmem:[#allocation18_spill] sm:$0xff] }
 0x676   : > { %1623 = vmatprep.subr.bf16.mxu0 %v2875_v13  ;;  %1664 = vmatprep.subr.bf16.mxu1 %v2881_v45 }
 0x679   : > { %1624 = vmatpush1.bf16.msra.mxu0 %v2887_v12  ;;  %1665 = vmatpush1.bf16.msra.mxu1 %v2893_v24  ;;  %v3093_v24 = vld [vmem:[#allocation19_spill] sm:$0xff] }
 0x67a   : > { %1625 = vmatprep.subr.bf16.mxu0 %v2899_v8  ;;  %1666 = vmatprep.subr.bf16.mxu1 %v2905_v14  ;;  %v3094_v14 = vld [vmem:[#allocation20_spill] sm:$0xff] }
 0x67d   : > { %1626 = vmatpush1.bf16.msra.mxu0 %v2911_v25  ;;  %1667 = vmatpush1.bf16.msra.mxu1 %v2917_v27 }
 0x67e   : > { %1627 = vmatprep.subr.bf16.mxu0 %v2923_v33  ;;  %1668 = vmatprep.subr.bf16.mxu1 %v2929_v32 }
 0x681   : > { %1628 = vmatpush1.bf16.msra.mxu0 %v2935_v17  ;;  %1669 = vmatpush1.bf16.msra.mxu1 %v2941_v16 }
 0x682   : > { %1629 = vmatprep.subr.bf16.mxu0 %v2947_v39  ;;  %1670 = vmatprep.subr.bf16.mxu1 %v2953_v40 }
 0x685   : > { %1630 = vmatpush1.bf16.msra.mxu0 %v2959_v41  ;;  %1671 = vmatpush1.bf16.msra.mxu1 %v2965_v42 }
 0x686   : > { %1631 = vmatprep.subr.bf16.mxu0 %v2164_v15  ;;  %1672 = vmatprep.subr.bf16.mxu1 %v2165_v29 }
 0x689   : > { %1632 = vmatpush1.bf16.msra.mxu0 %v2166_v63  ;;  %1673 = vmatpush1.bf16.msra.mxu1 %v2167_v26 }
 0x68a   : > { %1633 = vmatprep.subr.bf16.mxu0 %v2168_v28  ;;  %1674 = vmatprep.subr.bf16.mxu1 %v2169_v30 }
 0x68d   : > { %1634 = vmatpush1.bf16.msra.mxu0 %v2170_v31  ;;  %1675 = vmatpush1.bf16.msra.mxu1 %v2171_v34 }
 0x743   : > { %v1535_v35 = vpop.f32.mrb[40].mxu0  ;;  %v1576_v36 = vpop.f32.mrb[40].mxu1 }
 0x744   : > { %v1583_v7 = vadd.f32 %v1535_v35, %v3091_v54  ;;  %v1585_v13 = vadd.f32 %v1576_v36, %v3092_v9  ;;  %v1537_v45 = vpop.f32.mrb[41].mxu0  ;;  %v1578_v12 = vpop.f32.mrb[41].mxu1 }
 0x745   : > { %v1584_v8 = vadd.f32 %v1537_v45, %v3093_v24  ;;  %v1586_v25 = vadd.f32 %v1578_v12, %v3094_v14  ;;  %v1539_v27 = vpop.f32.mrb[42].mxu0  ;;  %v1580_v33 = vpop.f32.mrb[42].mxu1 }
 0x746   : > { %v1892_v32 = vmul.f32 -1.442695, %v1583_v7  ;;  %v1540_v17 = vpop.f32.mrb[43].mxu0  ;;  %v1581_v16 = vpop.f32.mrb[43].mxu1 }
 0x747   : > { %v1893_v39 = vmul.f32 -1.442695, %v1584_v8  ;;  %v1894_v40 = vmul.f32 -1.442695, %v1586_v25 }
 0x748   : > { %2108 = vpow2.f32 %v1892_v32 }
 0x749   : > { %2110 = vpow2.f32 %v1893_v39 }
 0x74a   : > { %2112 = vpow2.f32 %v1894_v40 }
 0x74b   : > { %2114 = vtanh.f32 %v1585_v13 }
 0x752   : > { %v2109_v41 = vpop.eup %2108 }
 0x753   : > { %v2111_v42 = vpop.eup %2110  ;;  %v1590_v43 = vadd.f32 1.0, %v2109_v41 }
 0x754   : > { %v1596_v61 = vadd.f32 1.0, %v2111_v42  ;;  %v2113_v44 = vpop.eup %2112 }
 0x755   : > { %2116 = vrcp.f32 %v1590_v43  ;;  %v2115_v62 = vpop.eup %2114  ;;  %v1603_v1 = vadd.f32 1.0, %v2113_v44 }
 0x756   : > { %2118 = vrcp.f32 %v1596_v61 }
 0x757   : > { %2120 = vrcp.f32 %v1603_v1 }
 0x75f   : > { %v2117_v46 = vpop.eup %2116 }
 0x760   : > { %v2119_v0 = vpop.eup %2118  ;;  %v1608_v47 = vmul.f32 %v2117_v46, %v2115_v62 }
 0x761   : > { %v1607_v48 = vmul.f32 %v2119_v0, %v2983_v21  ;;  %v2121_v49 = vpop.eup %2120 }
 0x763   : > { %v1609_v2 = vadd.f32 %v1608_v47, %v1607_v48 }
 0x765   : > { %2122 = vtanh.f32 %v1609_v2 }
 0x76f   : > { %v2123_v4 = vpop.eup %2122 }
 0x770   : > { %v1611_v50 = vmul.f32 %v2123_v4, %v2121_v49 }
 0x772   : > { %v1614_v5 = vpack.c.bf16 %v1611_v50, %v1611_v50 }
 0x774   : > { %1895 = vst [vmem:[%s2223_s24 + $0x18] sm:$0xf] %v1614_v5  ;;  %1652 = vmatmul.mubr.bf16.vlgmr.msra.gmra.mrb[44].mxu0 %v1614_v5  ;;  %1693 = vmatmul.mubr.bf16.vlgmr.msra.gmra.mrb[44].mxu1 %v1614_v5 }
 0x847   : > { %v1653_v51 = vpop.f32.mrb[44].mxu0  ;;  %v1694_v6 = vpop.f32.mrb[44].mxu1 }
 0x848   : > { %v1701_v37 = vadd.f32 %v1653_v51, %v3095_v52  ;;  %v1703_v53 = vadd.f32 %v1694_v6, %v3096_v38  ;;  %v1655_v55 = vpop.f32.mrb[45].mxu0  ;;  %v1696_v56 = vpop.f32.mrb[45].mxu1 }
 0x849   : > { %v1702_v58 = vadd.f32 %v1655_v55, %v3097_v57  ;;  %v1704_v60 = vadd.f32 %v1696_v56, %v3098_v59  ;;  %v1657_v10 = vpop.f32.mrb[46].mxu0  ;;  %v1698_v18 = vpop.f32.mrb[46].mxu1 }
 0x84a   : > { %v1896_v20 = vmul.f32 -1.442695, %v1701_v37  ;;  %v1658_v19 = vpop.f32.mrb[47].mxu0  ;;  %v1699_v21 = vpop.f32.mrb[47].mxu1 }
 0x84b   : > { %v1897_v3 = vmul.f32 -1.442695, %v1702_v58  ;;  %v1898_v22 = vmul.f32 -1.442695, %v1704_v60 }
 0x84c   : > { %2124 = vpow2.f32 %v1896_v20 }
 0x84d   : > { %2126 = vpow2.f32 %v1897_v3 }
 0x84e   : > { %2128 = vpow2.f32 %v1898_v22 }
 0x84f   : > { %2130 = vtanh.f32 %v1703_v53 }
 0x856   : > { %v2125_v23 = vpop.eup %2124 }
 0x857   : > { %v2127_v11 = vpop.eup %2126  ;;  %v1708_v15 = vadd.f32 1.0, %v2125_v23 }
 0x858   : > { %v1714_v29 = vadd.f32 1.0, %v2127_v11  ;;  %v2129_v63 = vpop.eup %2128 }
 0x859   : > { %2132 = vrcp.f32 %v1708_v15  ;;  %v2131_v26 = vpop.eup %2130  ;;  %v1721_v34 = vadd.f32 1.0, %v2129_v63 }
 0x85a   : > { %2134 = vrcp.f32 %v1714_v29 }
 0x85b   : > { %2136 = vrcp.f32 %v1721_v34 }
 0x863   : > { %v2133_v28 = vpop.eup %2132 }
 0x864   : > { %v2135_v30 = vpop.eup %2134  ;;  %v1726_v31 = vmul.f32 %v2133_v28, %v2131_v26 }
 0x865   : > { %v1725_v35 = vmul.f32 %v2135_v30, %v1609_v2  ;;  %v2137_v54 = vpop.eup %2136 }
 0x867   : > { %v1727_v36 = vadd.f32 %v1726_v31, %v1725_v35 }
 0x869   : > { %2138 = vtanh.f32 %v1727_v36  ;;  %1730 = vst [vmem:[#allocation3] sm:$0xff] %v1727_v36 }
 0x873   : > { %v2139_v7 = vpop.eup %2138 }
 0x874   : > { %v1729_v9 = vmul.f32 %v2139_v7, %v2137_v54 }
 0x876   : > { %1731 = vst [vmem:[#allocation2] sm:$0xff] %v1729_v9  ;;  %v1732_v13 = vpack.c.bf16 %v1729_v9, %v1729_v9 }
 0x878   : > { %1899 = vst [vmem:[%s2223_s24 + $0x1c] sm:$0xf] %v1732_v13 }
 0x879 PF: > { %s14_s15 = sadd.s32 1, %s2178_s15  }
 0x87a   : > { %p11_p5 = scmp.ge.s32.totalorder %s14_s15, 6  }
 0x87c   :  { %13 = sbr.rel (!%p11_p5) target bundleno = 1 (0x1), region = 77 }

// kernel: lm_lstm_forward.3
= control target key start
LH: loop header
LB: loop body
LE: loop exit
PB: predicated region body
PF: predicated region fallthrough
CT: control target
= control target key end

     0   :  { %v601_v1 = vmov 0   ;;  %v65_v33 = vlaneseq  ;;  %s997_s1 = inlined_call_operand.vmem [shape: bf16[128,256], index: 1, kind: input, shape index: {}]   ;;  %s998_s0 = inlined_call_operand.vmem [shape: bf16[256,128], index: 0, kind: input, shape index: {}]   ;;  %s999_s2 = inlined_call_operand.vmem [shape: f32[1,256], index: 2, kind: input, shape index: {}]   ;;  %s1000_s3 = inlined_call_operand.vmem [shape: f32[256,256], index: 3, kind: output, shape index: {}]  }
   0x1   :  { %v561_v0 = vld [vmem:[%s997_s1 + $0x4] ss:$8 sps:$4 sm:$0xff]   ;;  %283 = vmatprep.mubr.bf16.mxu0 %v601_v1  ;;  %363 = vmatprep.mubr.bf16.mxu1 %v601_v1  ;;  %v563_v2 = vld [vmem:[%s997_s1] ss:$8 sps:$4 sm:$0xff]   ;;  %v564_v3 = vld [vmem:[%s997_s1 + $0x14] ss:$8 sps:$4 sm:$0xff]  }
   0x2   :  { %251 = vmatprep.subr.bf16.mxu0 %v561_v0  ;;  %544 = vmatprep.subr.bf16.mxu1 %v561_v0  ;;  %v566_v4 = vld [vmem:[%s997_s1 + $0x10] ss:$8 sps:$4 sm:$0xff]   ;;  %v567_v5 = vld [vmem:[%s997_s1 + $0x24] ss:$8 sps:$4 sm:$0xff]   ;;  %v569_v6 = vld [vmem:[%s997_s1 + $0x20] ss:$8 sps:$4 sm:$0xff]  }
   0x3   :  { %252 = vmatpush1.bf16.msra.mxu0 %v563_v2  ;;  %552 = vmatpush1.bf16.msra.mxu1 %v563_v2  ;;  %v570_v7 = vld [vmem:[%s997_s1 + $0x34] ss:$8 sps:$4 sm:$0xff]   ;;  %v572_v8 = vld [vmem:[%s997_s1 + $0x30] ss:$8 sps:$4 sm:$0xff]   ;;  %v573_v9 = vld [vmem:[%s997_s1 + $0x44] ss:$8 sps:$4 sm:$0xff]  }
   0x4   :  { %253 = vmatprep.subr.bf16.mxu0 %v564_v3  ;;  %545 = vmatprep.subr.bf16.mxu1 %v564_v3  ;;  %v575_v10 = vld [vmem:[%s997_s1 + $0x40] ss:$8 sps:$4 sm:$0xff]   ;;  %v576_v11 = vld [vmem:[%s997_s1 + $0x54] ss:$8 sps:$4 sm:$0xff]   ;;  %v578_v12 = vld [vmem:[%s997_s1 + $0x50] ss:$8 sps:$4 sm:$0xff]  }
   0x5   :  { %v579_v13 = vld [vmem:[%s997_s1 + $0x64] ss:$8 sps:$4 sm:$0xff]   ;;  %v581_v14 = vld [vmem:[%s997_s1 + $0x60] ss:$8 sps:$4 sm:$0xff]   ;;  %v582_v15 = vld [vmem:[%s997_s1 + $0x74] ss:$8 sps:$4 sm:$0xff]  }
   0x6   :  { %v584_v16 = vld [vmem:[%s997_s1 + $0x70] ss:$8 sps:$4 sm:$0xff]   ;;  %v585_v17 = vld [vmem:[%s998_s0] sm:$0xff]   ;;  %v587_v19 = vld [vmem:[%s998_s0 + $0x8] sm:$0xff]   ;;  %v66_v34 = vshrl.u32 %v65_v33, 7 }
   0x7   :  { %254 = vmatpush1.bf16.msra.mxu0 %v566_v4  ;;  %553 = vmatpush1.bf16.msra.mxu1 %v566_v4  ;;  %v586_v18 = vld [vmem:[%s998_s0 + $0x40] sm:$0xff]   ;;  %v588_v20 = vld [vmem:[%s998_s0 + $0x48] sm:$0xff]   ;;  %v589_v21 = vld [vmem:[%s998_s0 + $0x10] sm:$0xff]  }
   0x8   :  { %255 = vmatprep.subr.bf16.mxu0 %v567_v5  ;;  %546 = vmatprep.subr.bf16.mxu1 %v567_v5  ;;  %v590_v22 = vld [vmem:[%s998_s0 + $0x50] sm:$0xff]   ;;  %v591_v23 = vld [vmem:[%s998_s0 + $0x18] sm:$0xff]   ;;  %v593_v25 = vld [vmem:[%s998_s0 + $0x20] sm:$0xff]   ;;  %v67_v35 = vsub.s32 0, %v66_v34  ;;  %v71_v37 = vsub.s32 1, %v66_v34 }
   0x9   :  { %v592_v24 = vld [vmem:[%s998_s0 + $0x58] sm:$0xff]   ;;  %v594_v26 = vld [vmem:[%s998_s0 + $0x60] sm:$0xff]   ;;  %v595_v27 = vld [vmem:[%s998_s0 + $0x28] sm:$0xff]  }
   0xa   :  { %v596_v28 = vld [vmem:[%s998_s0 + $0x68] sm:$0xff]   ;;  %v597_v29 = vld [vmem:[%s998_s0 + $0x30] sm:$0xff]   ;;  %v599_v31 = vld [vmem:[%s998_s0 + $0x38] sm:$0xff]  }
   0xb   :  { %256 = vmatpush1.bf16.msra.mxu0 %v569_v6  ;;  %554 = vmatpush1.bf16.msra.mxu1 %v569_v6  ;;  %v598_v30 = vld [vmem:[%s998_s0 + $0x70] sm:$0xff]   ;;  %v600_v32 = vld [vmem:[%s998_s0 + $0x78] sm:$0xff]   ;;  %v63_v36 = vld [vmem:[%s999_s2] sm:$0x3] }
   0xc   :  { %257 = vmatprep.subr.bf16.mxu0 %v570_v7  ;;  %547 = vmatprep.subr.bf16.mxu1 %v570_v7  ;;  %v737_v38 = vrot.slane %v63_v36, %v67_v35  ;;  %v739_v39 = vrot.slane %v63_v36, %v71_v37 }
   0xf   :  { %258 = vmatpush1.bf16.msra.mxu0 %v572_v8  ;;  %555 = vmatpush1.bf16.msra.mxu1 %v572_v8 }
  0x10   :  { %259 = vmatprep.subr.bf16.mxu0 %v573_v9  ;;  %548 = vmatprep.subr.bf16.mxu1 %v573_v9 }
  0x13   :  { %260 = vmatpush1.bf16.msra.mxu0 %v575_v10  ;;  %556 = vmatpush1.bf16.msra.mxu1 %v575_v10 }
  0x14   :  { %261 = vmatprep.subr.bf16.mxu0 %v576_v11  ;;  %549 = vmatprep.subr.bf16.mxu1 %v576_v11 }
  0x17   :  { %262 = vmatpush1.bf16.msra.mxu0 %v578_v12  ;;  %557 = vmatpush1.bf16.msra.mxu1 %v578_v12 }
  0x18   :  { %263 = vmatprep.subr.bf16.mxu0 %v579_v13  ;;  %550 = vmatprep.subr.bf16.mxu1 %v579_v13 }
  0x1b   :  { %264 = vmatpush1.bf16.msra.mxu0 %v581_v14  ;;  %558 = vmatpush1.bf16.msra.mxu1 %v581_v14 }
  0x1c   :  { %265 = vmatprep.subr.bf16.mxu0 %v582_v15  ;;  %551 = vmatprep.subr.bf16.mxu1 %v582_v15 }
  0x1f   :  { %266 = vmatpush1.bf16.msra.mxu0 %v584_v16  ;;  %559 = vmatpush1.bf16.msra.mxu1 %v584_v16 }
  0x22   :  { %284 = vmatmul.mubr.bf16.vlgmr.msra.gmra.mrb[0].mxu0 %v585_v17  ;;  %364 = vmatmul.mubr.bf16.vlgmr.msra.gmra.mrb[0].mxu1 %v586_v18 }
  0x23   :  { %293 = vmatprep.mubr.bf16.mxu0 %v601_v1  ;;  %373 = vmatprep.mubr.bf16.mxu1 %v601_v1 }
  0x2a   :  { %294 = vmatmul.mubr.bf16.gmra.mrb[4].mxu0 %v587_v19  ;;  %374 = vmatmul.mubr.bf16.gmra.mrb[4].mxu1 %v588_v20 }
  0x2b   :  { %303 = vmatprep.mubr.bf16.mxu0 %v601_v1  ;;  %383 = vmatprep.mubr.bf16.mxu1 %v601_v1 }
  0x32   :  { %304 = vmatmul.mubr.bf16.gmra.mrb[8].mxu0 %v589_v21  ;;  %384 = vmatmul.mubr.bf16.gmra.mrb[8].mxu1 %v590_v22 }
  0x33   :  { %313 = vmatprep.mubr.bf16.mxu0 %v601_v1  ;;  %393 = vmatprep.mubr.bf16.mxu1 %v601_v1 }
  0x3a   :  { %314 = vmatmul.mubr.bf16.gmra.mrb[12].mxu0 %v591_v23  ;;  %394 = vmatmul.mubr.bf16.gmra.mrb[12].mxu1 %v592_v24 }
  0x3b   :  { %323 = vmatprep.mubr.bf16.mxu0 %v601_v1  ;;  %403 = vmatprep.mubr.bf16.mxu1 %v601_v1 }
  0x42   :  { %324 = vmatmul.mubr.bf16.gmra.mrb[16].mxu0 %v593_v25  ;;  %404 = vmatmul.mubr.bf16.gmra.mrb[16].mxu1 %v594_v26 }
  0x43   :  { %333 = vmatprep.mubr.bf16.mxu0 %v601_v1  ;;  %413 = vmatprep.mubr.bf16.mxu1 %v601_v1 }
  0x4a   :  { %334 = vmatmul.mubr.bf16.gmra.mrb[20].mxu0 %v595_v27  ;;  %414 = vmatmul.mubr.bf16.gmra.mrb[20].mxu1 %v596_v28 }
  0x4b   :  { %343 = vmatprep.mubr.bf16.mxu0 %v601_v1  ;;  %423 = vmatprep.mubr.bf16.mxu1 %v601_v1 }
  0x52   :  { %344 = vmatmul.mubr.bf16.gmra.mrb[24].mxu0 %v597_v29  ;;  %424 = vmatmul.mubr.bf16.gmra.mrb[24].mxu1 %v598_v30 }
  0x53   :  { %353 = vmatprep.mubr.bf16.mxu0 %v601_v1  ;;  %433 = vmatprep.mubr.bf16.mxu1 %v601_v1 }
  0x5a   :  { %354 = vmatmul.mubr.bf16.gmra.mrb[28].mxu0 %v599_v31  ;;  %434 = vmatmul.mubr.bf16.gmra.mrb[28].mxu1 %v600_v32 }
  0xf5   :  { %v285_v40 = vpop.f32.mrb[0].mxu0  ;;  %v365_v41 = vpop.f32.mrb[0].mxu1 }
  0xf6   :  { %v286_v42 = vadd.f32 %v285_v40, %v737_v38  ;;  %v366_v43 = vadd.f32 %v365_v41, %v737_v38  ;;  %v287_v44 = vpop.f32.mrb[1].mxu0  ;;  %v367_v45 = vpop.f32.mrb[1].mxu1 }
  0xf7   :  { %v288_v46 = vadd.f32 %v287_v44, %v739_v39  ;;  %v368_v47 = vadd.f32 %v367_v45, %v739_v39  ;;  %v289_v48 = vpop.f32.mrb[2].mxu0  ;;  %v369_v49 = vpop.f32.mrb[2].mxu1 }
  0xf8   :  { %444 = vst [vmem:[%s1000_s3] sm:$0xff] %v286_v42  ;;  %476 = vst [vmem:[%s1000_s3 + $0x100] sm:$0xff] %v366_v43  ;;  %v290_v50 = vadd.f32 %v289_v48, %v737_v38  ;;  %v370_v51 = vadd.f32 %v369_v49, %v737_v38  ;;  %v291_v52 = vpop.f32.mrb[3].mxu0  ;;  %v371_v53 = vpop.f32.mrb[3].mxu1 }
  0xf9   :  { %445 = vst [vmem:[%s1000_s3 + $0x8] sm:$0xff] %v288_v46  ;;  %477 = vst [vmem:[%s1000_s3 + $0x108] sm:$0xff] %v368_v47  ;;  %v292_v54 = vadd.f32 %v291_v52, %v739_v39  ;;  %v372_v55 = vadd.f32 %v371_v53, %v739_v39 }
  0xfa   :  { %446 = vst [vmem:[%s1000_s3 + $0x10] sm:$0xff] %v290_v50  ;;  %478 = vst [vmem:[%s1000_s3 + $0x110] sm:$0xff] %v370_v51 }
  0xfb   :  { %447 = vst [vmem:[%s1000_s3 + $0x18] sm:$0xff] %v292_v54  ;;  %479 = vst [vmem:[%s1000_s3 + $0x118] sm:$0xff] %v372_v55 }
  0xfd   :  { %v295_v56 = vpop.f32.mrb[4].mxu0  ;;  %v375_v57 = vpop.f32.mrb[4].mxu1 }
  0xfe   :  { %v296_v58 = vadd.f32 %v295_v56, %v737_v38  ;;  %v376_v59 = vadd.f32 %v375_v57, %v737_v38  ;;  %v297_v60 = vpop.f32.mrb[5].mxu0  ;;  %v377_v61 = vpop.f32.mrb[5].mxu1 }
  0xff   :  { %v298_v62 = vadd.f32 %v297_v60, %v739_v39  ;;  %v378_v63 = vadd.f32 %v377_v61, %v739_v39  ;;  %v299_v0 = vpop.f32.mrb[6].mxu0  ;;  %v379_v1 = vpop.f32.mrb[6].mxu1 }
 0x100   :  { %448 = vst [vmem:[%s1000_s3 + $0x20] sm:$0xff] %v296_v58  ;;  %480 = vst [vmem:[%s1000_s3 + $0x120] sm:$0xff] %v376_v59  ;;  %v300_v2 = vadd.f32 %v299_v0, %v737_v38  ;;  %v380_v3 = vadd.f32 %v379_v1, %v737_v38  ;;  %v301_v4 = vpop.f32.mrb[7].mxu0  ;;  %v381_v5 = vpop.f32.mrb[7].mxu1 }
 0x101   :  { %449 = vst [vmem:[%s1000_s3 + $0x28] sm:$0xff] %v298_v62  ;;  %481 = vst [vmem:[%s1000_s3 + $0x128] sm:$0xff] %v378_v63  ;;  %v302_v6 = vadd.f32 %v301_v4, %v739_v39  ;;  %v382_v7 = vadd.f32 %v381_v5, %v739_v39 }
 0x102   :  { %450 = vst [vmem:[%s1000_s3 + $0x30] sm:$0xff] %v300_v2  ;;  %482 = vst [vmem:[%s1000_s3 + $0x130] sm:$0xff] %v380_v3 }
 0x103   :  { %451 = vst [vmem:[%s1000_s3 + $0x38] sm:$0xff] %v302_v6  ;;  %483 = vst [vmem:[%s1000_s3 + $0x138] sm:$0xff] %v382_v7 }
 0x105   :  { %v305_v8 = vpop.f32.mrb[8].mxu0  ;;  %v385_v9 = vpop.f32.mrb[8].mxu1 }
 0x106   :  { %v306_v10 = vadd.f32 %v305_v8, %v737_v38  ;;  %v386_v11 = vadd.f32 %v385_v9, %v737_v38  ;;  %v307_v12 = vpop.f32.mrb[9].mxu0  ;;  %v387_v13 = vpop.f32.mrb[9].mxu1 }
 0x107   :  { %v308_v14 = vadd.f32 %v307_v12, %v739_v39  ;;  %v388_v15 = vadd.f32 %v387_v13, %v739_v39  ;;  %v309_v16 = vpop.f32.mrb[10].mxu0  ;;  %v389_v17 = vpop.f32.mrb[10].mxu1 }
 0x108   :  { %452 = vst [vmem:[%s1000_s3 + $0x40] sm:$0xff] %v306_v10  ;;  %484 = vst [vmem:[%s1000_s3 + $0x140] sm:$0xff] %v386_v11  ;;  %v310_v18 = vadd.f32 %v309_v16, %v737_v38  ;;  %v390_v19 = vadd.f32 %v389_v17, %v737_v38  ;;  %v311_v20 = vpop.f32.mrb[11].mxu0  ;;  %v391_v21 = vpop.f32.mrb[11].mxu1 }
 0x109   :  { %453 = vst [vmem:[%s1000_s3 + $0x48] sm:$0xff] %v308_v14  ;;  %485 = vst [vmem:[%s1000_s3 + $0x148] sm:$0xff] %v388_v15  ;;  %v312_v22 = vadd.f32 %v311_v20, %v739_v39  ;;  %v392_v23 = vadd.f32 %v391_v21, %v739_v39 }
 0x10a   :  { %454 = vst [vmem:[%s1000_s3 + $0x50] sm:$0xff] %v310_v18  ;;  %486 = vst [vmem:[%s1000_s3 + $0x150] sm:$0xff] %v390_v19 }
 0x10b   :  { %455 = vst [vmem:[%s1000_s3 + $0x58] sm:$0xff] %v312_v22  ;;  %487 = vst [vmem:[%s1000_s3 + $0x158] sm:$0xff] %v392_v23 }
 0x10d   :  { %v315_v24 = vpop.f32.mrb[12].mxu0  ;;  %v395_v25 = vpop.f32.mrb[12].mxu1 }
 0x10e   :  { %v316_v26 = vadd.f32 %v315_v24, %v737_v38  ;;  %v396_v27 = vadd.f32 %v395_v25, %v737_v38  ;;  %v317_v28 = vpop.f32.mrb[13].mxu0  ;;  %v397_v29 = vpop.f32.mrb[13].mxu1 }
 0x10f   :  { %v318_v30 = vadd.f32 %v317_v28, %v739_v39  ;;  %v398_v31 = vadd.f32 %v397_v29, %v739_v39  ;;  %v319_v32 = vpop.f32.mrb[14].mxu0  ;;  %v399_v33 = vpop.f32.mrb[14].mxu1 }
 0x110   :  { %456 = vst [vmem:[%s1000_s3 + $0x60] sm:$0xff] %v316_v26  ;;  %488 = vst [vmem:[%s1000_s3 + $0x160] sm:$0xff] %v396_v27  ;;  %v320_v34 = vadd.f32 %v319_v32, %v737_v38  ;;  %v400_v35 = vadd.f32 %v399_v33, %v737_v38  ;;  %v321_v36 = vpop.f32.mrb[15].mxu0  ;;  %v401_v37 = vpop.f32.mrb[15].mxu1 }
 0x111   :  { %457 = vst [vmem:[%s1000_s3 + $0x68] sm:$0xff] %v318_v30  ;;  %489 = vst [vmem:[%s1000_s3 + $0x168] sm:$0xff] %v398_v31  ;;  %v322_v40 = vadd.f32 %v321_v36, %v739_v39  ;;  %v402_v41 = vadd.f32 %v401_v37, %v739_v39 }
 0x112   :  { %458 = vst [vmem:[%s1000_s3 + $0x70] sm:$0xff] %v320_v34  ;;  %490 = vst [vmem:[%s1000_s3 + $0x170] sm:$0xff] %v400_v35 }
 0x113   :  { %459 = vst [vmem:[%s1000_s3 + $0x78] sm:$0xff] %v322_v40  ;;  %491 = vst [vmem:[%s1000_s3 + $0x178] sm:$0xff] %v402_v41 }
 0x115   :  { %v325_v42 = vpop.f32.mrb[16].mxu0  ;;  %v405_v43 = vpop.f32.mrb[16].mxu1 }
 0x116   :  { %v326_v44 = vadd.f32 %v325_v42, %v737_v38  ;;  %v406_v45 = vadd.f32 %v405_v43, %v737_v38  ;;  %v327_v46 = vpop.f32.mrb[17].mxu0  ;;  %v407_v47 = vpop.f32.mrb[17].mxu1 }
 0x117   :  { %v328_v48 = vadd.f32 %v327_v46, %v739_v39  ;;  %v408_v49 = vadd.f32 %v407_v47, %v739_v39  ;;  %v329_v50 = vpop.f32.mrb[18].mxu0  ;;  %v409_v51 = vpop.f32.mrb[18].mxu1 }
 0x118   :  { %460 = vst [vmem:[%s1000_s3 + $0x80] sm:$0xff] %v326_v44  ;;  %492 = vst [vmem:[%s1000_s3 + $0x180] sm:$0xff] %v406_v45  ;;  %v330_v52 = vadd.f32 %v329_v50, %v737_v38  ;;  %v410_v53 = vadd.f32 %v409_v51, %v737_v38  ;;  %v331_v54 = vpop.f32.mrb[19].mxu0  ;;  %v411_v55 = vpop.f32.mrb[19].mxu1 }
 0x119   :  { %461 = vst [vmem:[%s1000_s3 + $0x88] sm:$0xff] %v328_v48  ;;  %493 = vst [vmem:[%s1000_s3 + $0x188] sm:$0xff] %v408_v49  ;;  %v332_v56 = vadd.f32 %v331_v54, %v739_v39  ;;  %v412_v57 = vadd.f32 %v411_v55, %v739_v39 }
 0x11a   :  { %462 = vst [vmem:[%s1000_s3 + $0x90] sm:$0xff] %v330_v52  ;;  %494 = vst [vmem:[%s1000_s3 + $0x190] sm:$0xff] %v410_v53 }
 0x11b   :  { %463 = vst [vmem:[%s1000_s3 + $0x98] sm:$0xff] %v332_v56  ;;  %495 = vst [vmem:[%s1000_s3 + $0x198] sm:$0xff] %v412_v57 }
 0x11d   :  { %v335_v58 = vpop.f32.mrb[20].mxu0  ;;  %v415_v59 = vpop.f32.mrb[20].mxu1 }
 0x11e   :  { %v336_v60 = vadd.f32 %v335_v58, %v737_v38  ;;  %v416_v61 = vadd.f32 %v415_v59, %v737_v38  ;;  %v337_v62 = vpop.f32.mrb[21].mxu0  ;;  %v417_v63 = vpop.f32.mrb[21].mxu1 }
 0x11f   :  { %v338_v0 = vadd.f32 %v337_v62, %v739_v39  ;;  %v418_v1 = vadd.f32 %v417_v63, %v739_v39  ;;  %v339_v2 = vpop.f32.mrb[22].mxu0  ;;  %v419_v3 = vpop.f32.mrb[22].mxu1 }
 0x120   :  { %464 = vst [vmem:[%s1000_s3 + $0xa0] sm:$0xff] %v336_v60  ;;  %496 = vst [vmem:[%s1000_s3 + $0x1a0] sm:$0xff] %v416_v61  ;;  %v340_v4 = vadd.f32 %v339_v2, %v737_v38  ;;  %v420_v5 = vadd.f32 %v419_v3, %v737_v38  ;;  %v341_v6 = vpop.f32.mrb[23].mxu0  ;;  %v421_v7 = vpop.f32.mrb[23].mxu1 }
 0x121   :  { %465 = vst [vmem:[%s1000_s3 + $0xa8] sm:$0xff] %v338_v0  ;;  %497 = vst [vmem:[%s1000_s3 + $0x1a8] sm:$0xff] %v418_v1  ;;  %v342_v8 = vadd.f32 %v341_v6, %v739_v39  ;;  %v422_v9 = vadd.f32 %v421_v7, %v739_v39 }
 0x122   :  { %466 = vst [vmem:[%s1000_s3 + $0xb0] sm:$0xff] %v340_v4  ;;  %498 = vst [vmem:[%s1000_s3 + $0x1b0] sm:$0xff] %v420_v5 }
 0x123   :  { %467 = vst [vmem:[%s1000_s3 + $0xb8] sm:$0xff] %v342_v8  ;;  %499 = vst [vmem:[%s1000_s3 + $0x1b8] sm:$0xff] %v422_v9 }
 0x125   :  { %v345_v10 = vpop.f32.mrb[24].mxu0  ;;  %v425_v11 = vpop.f32.mrb[24].mxu1 }
 0x126   :  { %v346_v12 = vadd.f32 %v345_v10, %v737_v38  ;;  %v426_v13 = vadd.f32 %v425_v11, %v737_v38  ;;  %v347_v14 = vpop.f32.mrb[25].mxu0  ;;  %v427_v15 = vpop.f32.mrb[25].mxu1 }
 0x127   :  { %v348_v16 = vadd.f32 %v347_v14, %v739_v39  ;;  %v428_v17 = vadd.f32 %v427_v15, %v739_v39  ;;  %v349_v18 = vpop.f32.mrb[26].mxu0  ;;  %v429_v19 = vpop.f32.mrb[26].mxu1 }
 0x128   :  { %468 = vst [vmem:[%s1000_s3 + $0xc0] sm:$0xff] %v346_v12  ;;  %500 = vst [vmem:[%s1000_s3 + $0x1c0] sm:$0xff] %v426_v13  ;;  %v350_v20 = vadd.f32 %v349_v18, %v737_v38  ;;  %v430_v21 = vadd.f32 %v429_v19, %v737_v38  ;;  %v351_v22 = vpop.f32.mrb[27].mxu0  ;;  %v431_v23 = vpop.f32.mrb[27].mxu1 }
 0x129   :  { %469 = vst [vmem:[%s1000_s3 + $0xc8] sm:$0xff] %v348_v16  ;;  %501 = vst [vmem:[%s1000_s3 + $0x1c8] sm:$0xff] %v428_v17  ;;  %v352_v24 = vadd.f32 %v351_v22, %v739_v39  ;;  %v432_v25 = vadd.f32 %v431_v23, %v739_v39 }
 0x12a   :  { %470 = vst [vmem:[%s1000_s3 + $0xd0] sm:$0xff] %v350_v20  ;;  %502 = vst [vmem:[%s1000_s3 + $0x1d0] sm:$0xff] %v430_v21 }
 0x12b   :  { %471 = vst [vmem:[%s1000_s3 + $0xd8] sm:$0xff] %v352_v24  ;;  %503 = vst [vmem:[%s1000_s3 + $0x1d8] sm:$0xff] %v432_v25 }
 0x12d   :  { %v355_v26 = vpop.f32.mrb[28].mxu0  ;;  %v435_v27 = vpop.f32.mrb[28].mxu1 }
 0x12e   :  { %v356_v28 = vadd.f32 %v355_v26, %v737_v38  ;;  %v436_v29 = vadd.f32 %v435_v27, %v737_v38  ;;  %v357_v30 = vpop.f32.mrb[29].mxu0  ;;  %v437_v31 = vpop.f32.mrb[29].mxu1 }
 0x12f   :  { %v358_v32 = vadd.f32 %v357_v30, %v739_v39  ;;  %v438_v33 = vadd.f32 %v437_v31, %v739_v39  ;;  %v359_v34 = vpop.f32.mrb[30].mxu0  ;;  %v439_v35 = vpop.f32.mrb[30].mxu1 }
 0x130   :  { %472 = vst [vmem:[%s1000_s3 + $0xe0] sm:$0xff] %v356_v28  ;;  %504 = vst [vmem:[%s1000_s3 + $0x1e0] sm:$0xff] %v436_v29  ;;  %v360_v36 = vadd.f32 %v359_v34, %v737_v38  ;;  %v440_v37 = vadd.f32 %v439_v35, %v737_v38  ;;  %v361_v40 = vpop.f32.mrb[31].mxu0  ;;  %v441_v41 = vpop.f32.mrb[31].mxu1 }
 0x131   :  { %473 = vst [vmem:[%s1000_s3 + $0xe8] sm:$0xff] %v358_v32  ;;  %505 = vst [vmem:[%s1000_s3 + $0x1e8] sm:$0xff] %v438_v33  ;;  %v362_v42 = vadd.f32 %v361_v40, %v739_v39  ;;  %v442_v43 = vadd.f32 %v441_v41, %v739_v39 }
 0x132   :  { %474 = vst [vmem:[%s1000_s3 + $0xf0] sm:$0xff] %v360_v36  ;;  %506 = vst [vmem:[%s1000_s3 + $0x1f0] sm:$0xff] %v440_v37 }
 0x133   :  { %475 = vst [vmem:[%s1000_s3 + $0xf8] sm:$0xff] %v362_v42  ;;  %507 = vst [vmem:[%s1000_s3 + $0x1f8] sm:$0xff] %v442_v43 }

// kernel: lm_lstm_forward.2
= control target key start
LH: loop header
LB: loop body
LE: loop exit
PB: predicated region body
PF: predicated region fallthrough
CT: control target
= control target key end

     0   :  { %s2207_s15 = smov 0   ;;  %s3049_s0 = inlined_call_operand.vmem [shape: bf16[32,8,128], index: 0, kind: input, shape index: {}]   ;;  %s3050_s1 = inlined_call_operand.vmem [shape: bf16[128,512], index: 1, kind: input, shape index: {}]   ;;  %s3051_s2 = inlined_call_operand.vmem [shape: bf16[128,512], index: 2, kind: input, shape index: {}]   ;;  %s3052_s3 = inlined_call_operand.vmem [shape: f32[1,512], index: 3, kind: input, shape index: {}]   ;;  %s3053_s4 = inlined_call_operand.vmem [shape: bf16[32,8,128], index: 4, kind: output, shape index: {}]  }
   0x1 LB: > { %s1791_s16 = sadd.s32 4294967295, %s2178_s15   ;;  %p1795_p0 = scmp.ge.s32.totalorder %s2178_s15, 1  ;;  %s2178_s15 = sphi %s2207_s15, %s14_s15  }
   0x2   : > { %p163_p1 = scmp.lt.s32.totalorder %s2178_s15, 5 }
   0x4   : > { %p164_p2 = pnand %p1795_p0, %p163_p1 }
   0x6   : > { %167 = sbr.rel (%p164_p2) target bundleno = 2169 (0x879), region = 36 }
   0xd   : > { %s1796_s17 = sshll.u32 %s1791_s16, 3  ;;  %p1800_p4 = scmp.ne.s32.totalorder %s1791_s16, 0 }
   0xe   : > { %p190_p3 = scmp.lt.s32.totalorder %s1796_s17, 31  ;;  %v2180_v0 = vmov (!%p1800_p4), 0.0  }
   0xf   : > { %205 = sbr.rel (%p1800_p4) target bundleno = 22 (0x16), region = 40  ;;  %206 = vst [vmem:[#allocation2] sm:$0xff] (!%p1800_p4), %v2180_v0  ;;  %207 = vst [vmem:[#allocation3] sm:$0xff] (!%p1800_p4), %v2180_v0 }
  0x10   : > { %s3100_s17 = smov (!%p190_p3, %s1796_s17), 31 }
  0x11   : > { %s1797_s18 = sshll.u32 %s3100_s17, 2 }
  0x12   : > { %s2218_s21 = scalar_lea.vmem %s3049_s0, %s1797_s18  ;;  %s2223_s24 = scalar_lea.vmem %s3053_s4, %s1797_s18 }
  0x16 PF: > { %v1912_v1 = vld [vmem:[%s3050_s1 + $0x4] ss:$16 sps:$4 sm:$0xff]   ;;  %v1914_v2 = vld [vmem:[%s3050_s1 + $0xc] ss:$16 sps:$4 sm:$0xff]   ;;  %v3054_v3 = vmov 0  }
  0x17   : > { %486 = vmatprep.mubr.bf16.mxu0 %v3054_v3  ;;  %559 = vmatprep.mubr.bf16.mxu1 %v3054_v3  ;;  %v1916_v4 = vld [vmem:[%s3050_s1] ss:$16 sps:$4 sm:$0xff]   ;;  %v1917_v5 = vld [vmem:[%s3050_s1 + $0x8] ss:$16 sps:$4 sm:$0xff]   ;;  %v1918_v6 = vld [vmem:[%s3050_s1 + $0x24] ss:$16 sps:$4 sm:$0xff]  }
  0x18   : > { %454 = vmatprep.subr.bf16.mxu0 %v1912_v1  ;;  %527 = vmatprep.subr.bf16.mxu1 %v1914_v2  ;;  %v1920_v7 = vld [vmem:[%s3050_s1 + $0x2c] ss:$16 sps:$4 sm:$0xff]   ;;  %v1922_v8 = vld [vmem:[%s3050_s1 + $0x20] ss:$16 sps:$4 sm:$0xff]   ;;  %v1923_v9 = vld [vmem:[%s3050_s1 + $0x28] ss:$16 sps:$4 sm:$0xff]  }
  0x19   : > { %455 = vmatpush1.bf16.msra.mxu0 %v1916_v4  ;;  %528 = vmatpush1.bf16.msra.mxu1 %v1917_v5  ;;  %v1924_v10 = vld [vmem:[%s3050_s1 + $0x44] ss:$16 sps:$4 sm:$0xff]   ;;  %v1926_v11 = vld [vmem:[%s3050_s1 + $0x4c] ss:$16 sps:$4 sm:$0xff]   ;;  %v1928_v12 = vld [vmem:[%s3050_s1 + $0x40] ss:$16 sps:$4 sm:$0xff]  }
  0x1a   : > { %456 = vmatprep.subr.bf16.mxu0 %v1918_v6  ;;  %529 = vmatprep.subr.bf16.mxu1 %v1920_v7  ;;  %v1929_v13 = vld [vmem:[%s3050_s1 + $0x48] ss:$16 sps:$4 sm:$0xff]   ;;  %v1930_v14 = vld [vmem:[%s3050_s1 + $0x64] ss:$16 sps:$4 sm:$0xff]   ;;  %v1932_v15 = vld [vmem:[%s3050_s1 + $0x6c] ss:$16 sps:$4 sm:$0xff]  }
  0x1b   : > { %v1934_v16 = vld [vmem:[%s3050_s1 + $0x60] ss:$16 sps:$4 sm:$0xff]   ;;  %v1935_v17 = vld [vmem:[%s3050_s1 + $0x68] ss:$16 sps:$4 sm:$0xff]   ;;  %v1936_v18 = vld [vmem:[%s3050_s1 + $0x84] ss:$16 sps:$4 sm:$0xff]  }
  0x1c   : > { %v1938_v19 = vld [vmem:[%s3050_s1 + $0x8c] ss:$16 sps:$4 sm:$0xff]   ;;  %v1940_v20 = vld [vmem:[%s3050_s1 + $0x80] ss:$16 sps:$4 sm:$0xff]   ;;  %v1941_v21 = vld [vmem:[%s3050_s1 + $0x88] ss:$16 sps:$4 sm:$0xff]  }
  0x1d   : > { %457 = vmatpush1.bf16.msra.mxu0 %v1922_v8  ;;  %530 = vmatpush1.bf16.msra.mxu1 %v1923_v9  ;;  %v1942_v22 = vld [vmem:[%s3050_s1 + $0xa4] ss:$16 sps:$4 sm:$0xff]   ;;  %v1944_v23 = vld [vmem:[%s3050_s1 + $0xac] ss:$16 sps:$4 sm:$0xff]   ;;  %v1946_v24 = vld [vmem:[%s3050_s1 + $0xa0] ss:$16 sps:$4 sm:$0xff]   ;;  %v250_v9 = vlaneseq }
  0x1e   : > { %458 = vmatprep.subr.bf16.mxu0 %v1924_v10  ;;  %531 = vmatprep.subr.bf16.mxu1 %v1926_v11  ;;  %v1947_v25 = vld [vmem:[%s3050_s1 + $0xa8] ss:$16 sps:$4 sm:$0xff]   ;;  %v1948_v26 = vld [vmem:[%s3050_s1 + $0xc4] ss:$16 sps:$4 sm:$0xff]   ;;  %v1950_v27 = vld [vmem:[%s3050_s1 + $0xcc] ss:$16 sps:$4 sm:$0xff]  }
  0x1f   : > { %v1952_v28 = vld [vmem:[%s3050_s1 + $0xc0] ss:$16 sps:$4 sm:$0xff]   ;;  %v1953_v29 = vld [vmem:[%s3050_s1 + $0xc8] ss:$16 sps:$4 sm:$0xff]   ;;  %v1954_v30 = vld [vmem:[%s3050_s1 + $0xe4] ss:$16 sps:$4 sm:$0xff]  }
  0x20   : > { %v1956_v31 = vld [vmem:[%s3050_s1 + $0xec] ss:$16 sps:$4 sm:$0xff]   ;;  %v1958_v32 = vld [vmem:[%s3050_s1 + $0xe0] ss:$16 sps:$4 sm:$0xff]   ;;  %v1959_v33 = vld [vmem:[%s3050_s1 + $0xe8] ss:$16 sps:$4 sm:$0xff]  }
  0x21   : > { %459 = vmatpush1.bf16.msra.mxu0 %v1928_v12  ;;  %532 = vmatpush1.bf16.msra.mxu1 %v1929_v13  ;;  %v2326_v34 = vld [vmem:[%s3051_s2 + $0x4] ss:$16 sps:$4 sm:$0xff]   ;;  %v2331_v35 = vld [vmem:[%s3051_s2 + $0xc] ss:$16 sps:$4 sm:$0xff]   ;;  %v2337_v37 = vld [vmem:[%s3051_s2] ss:$16 sps:$4 sm:$0xff]  }
  0x22   : > { %460 = vmatprep.subr.bf16.mxu0 %v1930_v14  ;;  %533 = vmatprep.subr.bf16.mxu1 %v1932_v15  ;;  %v1960_v36 = vld [vmem:[%s2218_s21] sm:$0xff]   ;;  %v2342_v38 = vld [vmem:[%s3051_s2 + $0x8] ss:$16 sps:$4 sm:$0xff]   ;;  %v2354_v40 = vld [vmem:[%s3051_s2 + $0x2c] ss:$16 sps:$4 sm:$0xff]   ;;  %v251_v10 = vshrl.u32 %v250_v9, 7 }
  0x23   : > { %v2349_v39 = vld [vmem:[%s3051_s2 + $0x24] ss:$16 sps:$4 sm:$0xff]   ;;  %v2359_v41 = vld [vmem:[%s3051_s2 + $0x20] ss:$16 sps:$4 sm:$0xff]   ;;  %v2366_v42 = vld [vmem:[%s3051_s2 + $0x28] ss:$16 sps:$4 sm:$0xff]  }
  0x24   : > { %v2373_v43 = vld [vmem:[%s3051_s2 + $0x44] ss:$16 sps:$4 sm:$0xff]   ;;  %v2378_v44 = vld [vmem:[%s3051_s2 + $0x4c] ss:$16 sps:$4 sm:$0xff]   ;;  %v2386_v46 = vld [vmem:[%s3051_s2 + $0x40] ss:$16 sps:$4 sm:$0xff]  }
  0x25   : > { %461 = vmatpush1.bf16.msra.mxu0 %v1934_v16  ;;  %534 = vmatpush1.bf16.msra.mxu1 %v1935_v17  ;;  %v1973_v45 = vld [vmem:[%s2218_s21 + $0x8] sm:$0xff]   ;;  %v2398_v48 = vld [vmem:[%s3051_s2 + $0x64] ss:$16 sps:$4 sm:$0xff]   ;;  %v2410_v50 = vld [vmem:[%s3051_s2 + $0x60] ss:$16 sps:$4 sm:$0xff]   ;;  %v260_v11 = vsub.s32 2, %v251_v10 }
  0x26   : > { %462 = vmatprep.subr.bf16.mxu0 %v1936_v18  ;;  %535 = vmatprep.subr.bf16.mxu1 %v1938_v19  ;;  %v2391_v47 = vld [vmem:[%s3051_s2 + $0x48] ss:$16 sps:$4 sm:$0xff]   ;;  %v2405_v49 = vld [vmem:[%s3051_s2 + $0x6c] ss:$16 sps:$4 sm:$0xff]   ;;  %v2422_v52 = vld [vmem:[%s3051_s2 + $0x84] ss:$16 sps:$4 sm:$0xff]  }
  0x27   : > { %v2415_v51 = vld [vmem:[%s3051_s2 + $0x68] ss:$16 sps:$4 sm:$0xff]   ;;  %v2429_v53 = vld [vmem:[%s3051_s2 + $0x8c] ss:$16 sps:$4 sm:$0xff]   ;;  %v1986_v54 = vld [vmem:[%s2218_s21 + $0x10] sm:$0xff]   ;;  %v264_v12 = vsub.s32 3, %v251_v10 }
  0x28   : > { %v2439_v55 = vld [vmem:[%s3051_s2 + $0x80] ss:$16 sps:$4 sm:$0xff]   ;;  %v2444_v56 = vld [vmem:[%s3051_s2 + $0x88] ss:$16 sps:$4 sm:$0xff]   ;;  %v2451_v57 = vld [vmem:[%s3051_s2 + $0xa4] ss:$16 sps:$4 sm:$0xff]  }
  0x29   : > { %463 = vmatpush1.bf16.msra.mxu0 %v1940_v20  ;;  %536 = vmatpush1.bf16.msra.mxu1 %v1941_v21  ;;  %v2456_v58 = vld [vmem:[%s3051_s2 + $0xac] ss:$16 sps:$4 sm:$0xff]   ;;  %v2463_v59 = vld [vmem:[%s3051_s2 + $0xa0] ss:$16 sps:$4 sm:$0xff]   ;;  %v2468_v60 = vld [vmem:[%s3051_s2 + $0xa8] ss:$16 sps:$4 sm:$0xff]  }
  0x2a   : > { %464 = vmatprep.subr.bf16.mxu0 %v1942_v22  ;;  %537 = vmatprep.subr.bf16.mxu1 %v1944_v23  ;;  %v2475_v61 = vld [vmem:[%s3051_s2 + $0xc4] ss:$16 sps:$4 sm:$0xff]   ;;  %v2480_v62 = vld [vmem:[%s3051_s2 + $0xcc] ss:$16 sps:$4 sm:$0xff]   ;;  %v2490_v0 = vld [vmem:[%s3051_s2 + $0xc0] ss:$16 sps:$4 sm:$0xff]  }
  0x2b   : > { %v1999_v63 = vld [vmem:[%s2218_s21 + $0x18] sm:$0xff]   ;;  %v2502_v2 = vld [vmem:[%s3051_s2 + $0xe4] ss:$16 sps:$4 sm:$0xff]   ;;  %v2514_v5 = vld [vmem:[%s3051_s2 + $0xe0] ss:$16 sps:$4 sm:$0xff]   ;;  %v252_v13 = vsub.s32 0, %v251_v10 }
  0x2c   : > { %v2495_v1 = vld [vmem:[%s3051_s2 + $0xc8] ss:$16 sps:$4 sm:$0xff]   ;;  %v2507_v4 = vld [vmem:[%s3051_s2 + $0xec] ss:$16 sps:$4 sm:$0xff]   ;;  %v632_v7 = vld [vmem:[#allocation2] sm:$0xff]  ;;  %v256_v15 = vsub.s32 1, %v251_v10 }
  0x2d   : > { %465 = vmatpush1.bf16.msra.mxu0 %v1946_v24  ;;  %538 = vmatpush1.bf16.msra.mxu1 %v1947_v25  ;;  %v2519_v6 = vld [vmem:[%s3051_s2 + $0xe8] ss:$16 sps:$4 sm:$0xff]   ;;  %v633_v8 = vpack.c.bf16 %v632_v7, %v632_v7  ;;  %v248_v14 = vld [vmem:[%s3052_s3] sm:$0xf] }
  0x2e   : > { %466 = vmatprep.subr.bf16.mxu0 %v1948_v26  ;;  %539 = vmatprep.subr.bf16.mxu1 %v1950_v27  ;;  %v2566_v16 = vrot.slane %v248_v14, %v260_v11  ;;  %v2572_v19 = vrot.slane %v248_v14, %v264_v12  ;;  %v253_v20 = vrot.slane %v248_v14, %v252_v13 }
  0x2f   : > { %v257_v23 = vrot.slane %v248_v14, %v256_v15 }
  0x31   : > { %467 = vmatpush1.bf16.msra.mxu0 %v1952_v28  ;;  %540 = vmatpush1.bf16.msra.mxu1 %v1953_v29 }
  0x32   : > { %468 = vmatprep.subr.bf16.mxu0 %v1954_v30  ;;  %541 = vmatprep.subr.bf16.mxu1 %v1956_v31 }
  0x35   : > { %469 = vmatpush1.bf16.msra.mxu0 %v1958_v32  ;;  %542 = vmatpush1.bf16.msra.mxu1 %v1959_v33 }
  0x36   : > { %794 = vmatprep.subr.bf16.mxu0 %v2326_v34  ;;  %835 = vmatprep.subr.bf16.mxu1 %v2331_v35 }
  0x38   : > { %487 = vmatmul.mubr.bf16.vlgmr.msra.gmra.mrb[0].mxu0 %v1960_v36  ;;  %560 = vmatmul.mubr.bf16.vlgmr.msra.gmra.mrb[0].mxu1 %v1960_v36 }
  0x39   : > { %795 = vmatpush1.bf16.msra.mxu0 %v2337_v37  ;;  %836 = vmatpush1.bf16.msra.mxu1 %v2342_v38 }
  0x3a   : > { %796 = vmatprep.subr.bf16.mxu0 %v2349_v39  ;;  %837 = vmatprep.subr.bf16.mxu1 %v2354_v40 }
  0x3b   : > { %496 = vmatprep.mubr.bf16.mxu0 %v3054_v3  ;;  %569 = vmatprep.mubr.bf16.mxu1 %v3054_v3 }
  0x3d   : > { %797 = vmatpush1.bf16.msra.mxu0 %v2359_v41  ;;  %838 = vmatpush1.bf16.msra.mxu1 %v2366_v42 }
  0x3e   : > { %798 = vmatprep.subr.bf16.mxu0 %v2373_v43  ;;  %839 = vmatprep.subr.bf16.mxu1 %v2378_v44 }
  0x40   : > { %497 = vmatmul.mubr.bf16.gmra.mrb[4].mxu0 %v1973_v45  ;;  %570 = vmatmul.mubr.bf16.gmra.mrb[4].mxu1 %v1973_v45 }
  0x41   : > { %799 = vmatpush1.bf16.msra.mxu0 %v2386_v46  ;;  %840 = vmatpush1.bf16.msra.mxu1 %v2391_v47 }
  0x42   : > { %800 = vmatprep.subr.bf16.mxu0 %v2398_v48  ;;  %841 = vmatprep.subr.bf16.mxu1 %v2405_v49 }
  0x43   : > { %506 = vmatprep.mubr.bf16.mxu0 %v3054_v3  ;;  %579 = vmatprep.mubr.bf16.mxu1 %v3054_v3 }
  0x45   : > { %801 = vmatpush1.bf16.msra.mxu0 %v2410_v50  ;;  %842 = vmatpush1.bf16.msra.mxu1 %v2415_v51 }
  0x46   : > { %802 = vmatprep.subr.bf16.mxu0 %v2422_v52  ;;  %843 = vmatprep.subr.bf16.mxu1 %v2429_v53 }
  0x48   : > { %507 = vmatmul.mubr.bf16.gmra.mrb[8].mxu0 %v1986_v54  ;;  %580 = vmatmul.mubr.bf16.gmra.mrb[8].mxu1 %v1986_v54 }
  0x49   : > { %803 = vmatpush1.bf16.msra.mxu0 %v2439_v55  ;;  %844 = vmatpush1.bf16.msra.mxu1 %v2444_v56 }
  0x4a   : > { %804 = vmatprep.subr.bf16.mxu0 %v2451_v57  ;;  %845 = vmatprep.subr.bf16.mxu1 %v2456_v58 }
  0x4b   : > { %516 = vmatprep.mubr.bf16.mxu0 %v3054_v3  ;;  %589 = vmatprep.mubr.bf16.mxu1 %v3054_v3 }
  0x4d   : > { %805 = vmatpush1.bf16.msra.mxu0 %v2463_v59  ;;  %846 = vmatpush1.bf16.msra.mxu1 %v2468_v60 }
  0x4e   : > { %806 = vmatprep.subr.bf16.mxu0 %v2475_v61  ;;  %847 = vmatprep.subr.bf16.mxu1 %v2480_v62 }
  0x50   : > { %517 = vmatmul.mubr.bf16.gmra.mrb[12].mxu0 %v1999_v63  ;;  %590 = vmatmul.mubr.bf16.gmra.mrb[12].mxu1 %v1999_v63 }
  0x51   : > { %807 = vmatpush1.bf16.msra.mxu0 %v2490_v0  ;;  %848 = vmatpush1.bf16.msra.mxu1 %v2495_v1 }
  0x52   : > { %808 = vmatprep.subr.bf16.mxu0 %v2502_v2  ;;  %849 = vmatprep.subr.bf16.mxu1 %v2507_v4 }
  0x53   : > { %826 = vmatprep.mubr.bf16.mxu0 %v3054_v3  ;;  %867 = vmatprep.mubr.bf16.mxu1 %v3054_v3 }
  0x55   : > { %809 = vmatpush1.bf16.msra.mxu0 %v2514_v5  ;;  %850 = vmatpush1.bf16.msra.mxu1 %v2519_v6 }
  0x56   : > { %911 = vmatprep.subr.bf16.mxu0 %v2326_v34  ;;  %952 = vmatprep.subr.bf16.mxu1 %v2331_v35 }
  0x58   : > { %827 = vmatmul.mubr.bf16.vlgmr.msra.gmra.mrb[16].mxu0 %v633_v8  ;;  %868 = vmatmul.mubr.bf16.vlgmr.msra.gmra.mrb[16].mxu1 %v633_v8 }
  0x59   : > { %912 = vmatpush1.bf16.msra.mxu0 %v2337_v37  ;;  %953 = vmatpush1.bf16.msra.mxu1 %v2342_v38 }
  0x5a   : > { %913 = vmatprep.subr.bf16.mxu0 %v2349_v39  ;;  %954 = vmatprep.subr.bf16.mxu1 %v2354_v40 }
  0x5b   : > { %943 = vmatprep.mubr.bf16.mxu0 %v3054_v3  ;;  %984 = vmatprep.mubr.bf16.mxu1 %v3054_v3 }
  0x5d   : > { %914 = vmatpush1.bf16.msra.mxu0 %v2359_v41  ;;  %955 = vmatpush1.bf16.msra.mxu1 %v2366_v42 }
  0x5e   : > { %915 = vmatprep.subr.bf16.mxu0 %v2373_v43  ;;  %956 = vmatprep.subr.bf16.mxu1 %v2378_v44 }
  0x61   : > { %916 = vmatpush1.bf16.msra.mxu0 %v2386_v46  ;;  %957 = vmatpush1.bf16.msra.mxu1 %v2391_v47 }
  0x62   : > { %917 = vmatprep.subr.bf16.mxu0 %v2398_v48  ;;  %958 = vmatprep.subr.bf16.mxu1 %v2405_v49 }
  0x65   : > { %918 = vmatpush1.bf16.msra.mxu0 %v2410_v50  ;;  %959 = vmatpush1.bf16.msra.mxu1 %v2415_v51 }
  0x66   : > { %919 = vmatprep.subr.bf16.mxu0 %v2422_v52  ;;  %960 = vmatprep.subr.bf16.mxu1 %v2429_v53 }
  0x69   : > { %920 = vmatpush1.bf16.msra.mxu0 %v2439_v55  ;;  %961 = vmatpush1.bf16.msra.mxu1 %v2444_v56 }
  0x6a   : > { %921 = vmatprep.subr.bf16.mxu0 %v2451_v57  ;;  %962 = vmatprep.subr.bf16.mxu1 %v2456_v58 }
  0x6d   : > { %922 = vmatpush1.bf16.msra.mxu0 %v2463_v59  ;;  %963 = vmatpush1.bf16.msra.mxu1 %v2468_v60 }
  0x6e   : > { %923 = vmatprep.subr.bf16.mxu0 %v2475_v61  ;;  %964 = vmatprep.subr.bf16.mxu1 %v2480_v62 }
  0x71   : > { %924 = vmatpush1.bf16.msra.mxu0 %v2490_v0  ;;  %965 = vmatpush1.bf16.msra.mxu1 %v2495_v1 }
  0x72   : > { %925 = vmatprep.subr.bf16.mxu0 %v2502_v2  ;;  %966 = vmatprep.subr.bf16.mxu1 %v2507_v4 }
  0x75   : > { %926 = vmatpush1.bf16.msra.mxu0 %v2514_v5  ;;  %967 = vmatpush1.bf16.msra.mxu1 %v2519_v6 }
  0x76   : > { %1029 = vmatprep.subr.bf16.mxu0 %v2326_v34  ;;  %1070 = vmatprep.subr.bf16.mxu1 %v2331_v35 }
 0x10b   : > { %v2568_v17 = vpop.f32.mrb[0].mxu0  ;;  %v2570_v18 = vpop.f32.mrb[0].mxu1 }
 0x10c   : > { %v490_v21 = vpop.f32.mrb[1].mxu0  ;;  %v563_v22 = vpop.f32.mrb[1].mxu1 }
 0x10d   : > { %v492_v24 = vpop.f32.mrb[2].mxu0  ;;  %v565_v25 = vpop.f32.mrb[2].mxu1 }
 0x10e   : > { %v2574_v26 = vadd.f32 %v492_v24, %v253_v20  ;;  %v494_v27 = vpop.f32.mrb[3].mxu0  ;;  %v2577_v28 = vadd.f32 %v565_v25, %v2566_v16  ;;  %v567_v29 = vpop.f32.mrb[3].mxu1 }
 0x10f   : > { %v2579_v30 = vadd.f32 %v494_v27, %v257_v23  ;;  %v2582_v31 = vadd.f32 %v567_v29, %v2572_v19 }
 0x113   : > { %v498_v32 = vpop.f32.mrb[4].mxu0  ;;  %v571_v33 = vpop.f32.mrb[4].mxu1 }
 0x114   : > { %v2584_v36 = vadd.f32 %v498_v32, %v253_v20  ;;  %v500_v45 = vpop.f32.mrb[5].mxu0  ;;  %v2587_v54 = vadd.f32 %v571_v33, %v2566_v16  ;;  %v573_v63 = vpop.f32.mrb[5].mxu1 }
 0x115   : > { %v2589_v7 = vadd.f32 %v500_v45, %v257_v23  ;;  %v502_v8 = vpop.f32.mrb[6].mxu0  ;;  %v2592_v9 = vadd.f32 %v573_v63, %v2572_v19  ;;  %v575_v10 = vpop.f32.mrb[6].mxu1 }
 0x116   : > { %v2594_v11 = vadd.f32 %v502_v8, %v253_v20  ;;  %v504_v12 = vpop.f32.mrb[7].mxu0  ;;  %v2597_v13 = vadd.f32 %v575_v10, %v2566_v16  ;;  %v577_v14 = vpop.f32.mrb[7].mxu1 }
 0x117   : > { %3056 = vst [vmem:[#allocation4_spill] sm:$0xff] %v2592_v9  ;;  %v2599_v15 = vadd.f32 %v504_v12, %v257_v23  ;;  %v2602_v24 = vadd.f32 %v577_v14, %v2572_v19 }
 0x118   : > { %3057 = vst [vmem:[#allocation5_spill] sm:$0xff] %v2594_v11  ;;  %3058 = vst [vmem:[#allocation6_spill] sm:$0xff] %v2597_v13 }
 0x119   : > { %3059 = vst [vmem:[#allocation7_spill] sm:$0xff] %v2599_v15  ;;  %3060 = vst [vmem:[#allocation8_spill] sm:$0xff] %v2602_v24 }
 0x11b   : > { %v508_v25 = vpop.f32.mrb[8].mxu0  ;;  %v581_v27 = vpop.f32.mrb[8].mxu1 }
 0x11c   : > { %v2604_v29 = vadd.f32 %v508_v25, %v253_v20  ;;  %v510_v32 = vpop.f32.mrb[9].mxu0  ;;  %v2607_v33 = vadd.f32 %v581_v27, %v2566_v16  ;;  %v583_v45 = vpop.f32.mrb[9].mxu1 }
 0x11d   : > { %v2609_v63 = vadd.f32 %v510_v32, %v257_v23  ;;  %v512_v8 = vpop.f32.mrb[10].mxu0  ;;  %v2612_v10 = vadd.f32 %v583_v45, %v2572_v19  ;;  %v585_v12 = vpop.f32.mrb[10].mxu1 }
 0x11e   : > { %3061 = vst [vmem:[#allocation9_spill] sm:$0xff] %v2604_v29  ;;  %3062 = vst [vmem:[#allocation10_spill] sm:$0xff] %v2607_v33  ;;  %v2614_v3 = vadd.f32 %v512_v8, %v253_v20  ;;  %v514_v14 = vpop.f32.mrb[11].mxu0  ;;  %v2617_v24 = vadd.f32 %v585_v12, %v2566_v16  ;;  %v587_v25 = vpop.f32.mrb[11].mxu1 }
 0x11f   : > { %3063 = vst [vmem:[#allocation11_spill] sm:$0xff] %v2609_v63  ;;  %3064 = vst [vmem:[#allocation12_spill] sm:$0xff] %v2612_v10  ;;  %v2619_v29 = vadd.f32 %v514_v14, %v257_v23  ;;  %v2622_v27 = vadd.f32 %v587_v25, %v2572_v19 }
 0x120   : > { %3065 = vst [vmem:[#allocation13_spill] sm:$0xff] %v2614_v3  ;;  %3066 = vst [vmem:[#allocation14_spill] sm:$0xff] %v2617_v24 }
 0x121   : > { %3067 = vst [vmem:[#allocation15_spill] sm:$0xff] %v2619_v29  ;;  %3068 = vst [vmem:[#allocation16_spill] sm:$0xff] %v2622_v27 }
 0x123   : > { %v518_v33 = vpop.f32.mrb[12].mxu0  ;;  %v591_v32 = vpop.f32.mrb[12].mxu1 }
 0x124   : > { %v2624_v63 = vadd.f32 %v518_v33, %v253_v20  ;;  %v520_v15 = vpop.f32.mrb[13].mxu0  ;;  %v2627_v45 = vadd.f32 %v591_v32, %v2566_v16  ;;  %v593_v8 = vpop.f32.mrb[13].mxu1 }
 0x125   : > { %v2629_v3 = vadd.f32 %v520_v15, %v257_v23  ;;  %v522_v10 = vpop.f32.mrb[14].mxu0  ;;  %v2632_v12 = vadd.f32 %v593_v8, %v2572_v19  ;;  %v595_v14 = vpop.f32.mrb[14].mxu1  ;;  %v489_v15 = vadd.f32 %v2568_v17, %v253_v20  ;;  %v491_v8 = vadd.f32 %v490_v21, %v257_v23 }
 0x126   : > { %3069 = vst [vmem:[#allocation17_spill] sm:$0xff] %v2624_v63  ;;  %3070 = vst [vmem:[#allocation18_spill] sm:$0xff] %v2627_v45  ;;  %v2634_v29 = vadd.f32 %v522_v10, %v253_v20  ;;  %v524_v25 = vpop.f32.mrb[15].mxu0  ;;  %v2637_v27 = vadd.f32 %v595_v14, %v2566_v16  ;;  %v597_v33 = vpop.f32.mrb[15].mxu1 }
 0x127   : > { %3071 = vst [vmem:[#allocation19_spill] sm:$0xff] %v2629_v3  ;;  %3072 = vst [vmem:[#allocation20_spill] sm:$0xff] %v2632_v12  ;;  %v2639_v63 = vadd.f32 %v524_v25, %v257_v23  ;;  %v2642_v32 = vadd.f32 %v597_v33, %v2572_v19  ;;  %v562_v3 = vadd.f32 %v2570_v18, %v2566_v16  ;;  %v899_v23 = vld [vmem:[#allocation3] sm:$0xff] }
 0x128   : > { %3073 = vst [vmem:[#allocation21_spill] sm:$0xff] %v2634_v29  ;;  %3074 = vst [vmem:[#allocation22_spill] sm:$0xff] %v2637_v27  ;;  %v564_v12 = vadd.f32 %v563_v22, %v2572_v19 }
 0x129   : > { %3075 = vst [vmem:[#allocation23_spill] sm:$0xff] %v2639_v63  ;;  %3076 = vst [vmem:[#allocation24_spill] sm:$0xff] %v2642_v32 }
 0x12b   : > { %v828_v10 = vpop.f32.mrb[16].mxu0  ;;  %v869_v29 = vpop.f32.mrb[16].mxu1 }
 0x12c   : > { %v876_v45 = vadd.f32 %v828_v10, %v489_v15  ;;  %v878_v24 = vadd.f32 %v869_v29, %v562_v3  ;;  %v830_v14 = vpop.f32.mrb[17].mxu0  ;;  %v871_v27 = vpop.f32.mrb[17].mxu1  ;;  %v3077_v15 = vmov 0  }
 0x12d   : > { %v877_v13 = vadd.f32 %v830_v14, %v491_v8  ;;  %v879_v25 = vadd.f32 %v871_v27, %v564_v12  ;;  %v832_v63 = vpop.f32.mrb[18].mxu0  ;;  %v873_v11 = vpop.f32.mrb[18].mxu1 }
 0x12e   : > { %v1869_v33 = vmul.f32 -1.442695, %v876_v45  ;;  %v833_v32 = vpop.f32.mrb[19].mxu0  ;;  %v874_v9 = vpop.f32.mrb[19].mxu1 }
 0x12f   : > { %v1870_v17 = vmul.f32 -1.442695, %v877_v13  ;;  %v1871_v16 = vmul.f32 -1.442695, %v879_v25 }
 0x130   : > { %2012 = vpow2.f32 %v1869_v33 }
 0x131   : > { %2014 = vpow2.f32 %v1870_v17 }
 0x132   : > { %2016 = vpow2.f32 %v1871_v16 }
 0x133   : > { %2018 = vtanh.f32 %v878_v24 }
 0x13a   : > { %v2013_v18 = vpop.eup %2012 }
 0x13b   : > { %v2015_v20 = vpop.eup %2014  ;;  %v883_v19 = vadd.f32 1.0, %v2013_v18 }
 0x13c   : > { %v889_v21 = vadd.f32 1.0, %v2015_v20  ;;  %v2017_v3 = vpop.eup %2016 }
 0x13d   : > { %2020 = vrcp.f32 %v883_v19  ;;  %v2019_v22 = vpop.eup %2018  ;;  %v896_v9 = vadd.f32 1.0, %v2017_v3 }
 0x13e   : > { %2022 = vrcp.f32 %v889_v21 }
 0x13f   : > { %2024 = vrcp.f32 %v896_v9 }
 0x147   : > { %v2021_v11 = vpop.eup %2020 }
 0x148   : > { %v2023_v29 = vpop.eup %2022  ;;  %v901_v63 = vmul.f32 %v2021_v11, %v2019_v22 }
 0x149   : > { %v900_v13 = vmul.f32 %v2023_v29, %v899_v23  ;;  %v2025_v45 = vpop.eup %2024 }
 0x14b   : > { %v2648_v27 = vadd.f32 %v901_v63, %v900_v13 }
 0x14d   : > { %2026 = vtanh.f32 %v2648_v27 }
 0x157   : > { %v2027_v12 = vpop.eup %2026 }
 0x158   : > { %v904_v24 = vmul.f32 %v2027_v12, %v2025_v45 }
 0x15a   : > { %v907_v32 = vpack.c.bf16 %v904_v24, %v904_v24 }
 0x15c   : > { %908 = vst [vmem:[%s2223_s24] sm:$0xf] %v907_v32  ;;  %944 = vmatmul.mubr.bf16.vlgmr.msra.gmra.mrb[20].mxu0 %v907_v32  ;;  %985 = vmatmul.mubr.bf16.vlgmr.msra.gmra.mrb[20].mxu1 %v907_v32 }
 0x15d   : > { %1030 = vmatpush1.bf16.msra.mxu0 %v2337_v37  ;;  %1071 = vmatpush1.bf16.msra.mxu1 %v2342_v38 }
 0x15e   : > { %1031 = vmatprep.subr.bf16.mxu0 %v2349_v39  ;;  %1072 = vmatprep.subr.bf16.mxu1 %v2354_v40 }
 0x15f   : > { %1061 = vmatprep.mubr.bf16.mxu0 %v3077_v15  ;;  %1102 = vmatprep.mubr.bf16.mxu1 %v3077_v15 }
 0x161   : > { %1032 = vmatpush1.bf16.msra.mxu0 %v2359_v41  ;;  %1073 = vmatpush1.bf16.msra.mxu1 %v2366_v42 }
 0x162   : > { %1033 = vmatprep.subr.bf16.mxu0 %v2373_v43  ;;  %1074 = vmatprep.subr.bf16.mxu1 %v2378_v44 }
 0x165   : > { %1034 = vmatpush1.bf16.msra.mxu0 %v2386_v46  ;;  %1075 = vmatpush1.bf16.msra.mxu1 %v2391_v47 }
 0x166   : > { %1035 = vmatprep.subr.bf16.mxu0 %v2398_v48  ;;  %1076 = vmatprep.subr.bf16.mxu1 %v2405_v49 }
 0x169   : > { %1036 = vmatpush1.bf16.msra.mxu0 %v2410_v50  ;;  %1077 = vmatpush1.bf16.msra.mxu1 %v2415_v51 }
 0x16a   : > { %1037 = vmatprep.subr.bf16.mxu0 %v2422_v52  ;;  %1078 = vmatprep.subr.bf16.mxu1 %v2429_v53 }
 0x16d   : > { %1038 = vmatpush1.bf16.msra.mxu0 %v2439_v55  ;;  %1079 = vmatpush1.bf16.msra.mxu1 %v2444_v56 }
 0x16e   : > { %1039 = vmatprep.subr.bf16.mxu0 %v2451_v57  ;;  %1080 = vmatprep.subr.bf16.mxu1 %v2456_v58 }
 0x171   : > { %1040 = vmatpush1.bf16.msra.mxu0 %v2463_v59  ;;  %1081 = vmatpush1.bf16.msra.mxu1 %v2468_v60 }
 0x172   : > { %1041 = vmatprep.subr.bf16.mxu0 %v2475_v61  ;;  %1082 = vmatprep.subr.bf16.mxu1 %v2480_v62 }
 0x175   : > { %1042 = vmatpush1.bf16.msra.mxu0 %v2490_v0  ;;  %1083 = vmatpush1.bf16.msra.mxu1 %v2495_v1 }
 0x176   : > { %1043 = vmatprep.subr.bf16.mxu0 %v2502_v2  ;;  %1084 = vmatprep.subr.bf16.mxu1 %v2507_v4 }
 0x179   : > { %1044 = vmatpush1.bf16.msra.mxu0 %v2514_v5  ;;  %1085 = vmatpush1.bf16.msra.mxu1 %v2519_v6 }
 0x17a   : > { %1147 = vmatprep.subr.bf16.mxu0 %v2326_v34  ;;  %1188 = vmatprep.subr.bf16.mxu1 %v2331_v35 }
 0x22f   : > { %v945_v8 = vpop.f32.mrb[20].mxu0  ;;  %v986_v10 = vpop.f32.mrb[20].mxu1 }
 0x230   : > { %v993_v14 = vadd.f32 %v945_v8, %v2574_v26  ;;  %v995_v25 = vadd.f32 %v986_v10, %v2577_v28  ;;  %v947_v33 = vpop.f32.mrb[21].mxu0  ;;  %v988_v17 = vpop.f32.mrb[21].mxu1 }
 0x231   : > { %v994_v16 = vadd.f32 %v947_v33, %v2579_v30  ;;  %v996_v18 = vadd.f32 %v988_v17, %v2582_v31  ;;  %v949_v20 = vpop.f32.mrb[22].mxu0  ;;  %v990_v19 = vpop.f32.mrb[22].mxu1 }
 0x232   : > { %v1872_v21 = vmul.f32 -1.442695, %v993_v14  ;;  %v950_v3 = vpop.f32.mrb[23].mxu0  ;;  %v991_v22 = vpop.f32.mrb[23].mxu1 }
 0x233   : > { %v1873_v23 = vmul.f32 -1.442695, %v994_v16  ;;  %v1874_v11 = vmul.f32 -1.442695, %v996_v18 }
 0x234   : > { %2028 = vpow2.f32 %v1872_v21  ;;  %v3078_v21 = vld [vmem:[#allocation4_spill] sm:$0xff] }
 0x235   : > { %2030 = vpow2.f32 %v1873_v23 }
 0x236   : > { %2032 = vpow2.f32 %v1874_v11 }
 0x237   : > { %2034 = vtanh.f32 %v995_v25 }
 0x23e   : > { %v2029_v29 = vpop.eup %2028 }
 0x23f   : > { %v2031_v63 = vpop.eup %2030  ;;  %v1000_v26 = vadd.f32 1.0, %v2029_v29 }
 0x240   : > { %v1006_v28 = vadd.f32 1.0, %v2031_v63  ;;  %v2033_v30 = vpop.eup %2032 }
 0x241   : > { %2036 = vrcp.f32 %v1000_v26  ;;  %v2035_v31 = vpop.eup %2034  ;;  %v1013_v12 = vadd.f32 1.0, %v2033_v30 }
 0x242   : > { %2038 = vrcp.f32 %v1006_v28 }
 0x243   : > { %2040 = vrcp.f32 %v1013_v12 }
 0x24b   : > { %v2037_v9 = vpop.eup %2036 }
 0x24c   : > { %v2039_v13 = vpop.eup %2038  ;;  %v1018_v45 = vmul.f32 %v2037_v9, %v2035_v31 }
 0x24d   : > { %v1017_v24 = vmul.f32 %v2039_v13, %v2648_v27  ;;  %v2041_v8 = vpop.eup %2040 }
 0x24f   : > { %v2691_v32 = vadd.f32 %v1018_v45, %v1017_v24 }
 0x251   : > { %2042 = vtanh.f32 %v2691_v32 }
 0x25b   : > { %v2043_v10 = vpop.eup %2042 }
 0x25c   : > { %v1021_v14 = vmul.f32 %v2043_v10, %v2041_v8 }
 0x25e   : > { %v1024_v25 = vpack.c.bf16 %v1021_v14, %v1021_v14 }
 0x260   : > { %1875 = vst [vmem:[%s2223_s24 + $0x4] sm:$0xf] %v1024_v25  ;;  %1062 = vmatmul.mubr.bf16.vlgmr.msra.gmra.mrb[24].mxu0 %v1024_v25  ;;  %1103 = vmatmul.mubr.bf16.vlgmr.msra.gmra.mrb[24].mxu1 %v1024_v25 }
 0x261   : > { %1148 = vmatpush1.bf16.msra.mxu0 %v2337_v37  ;;  %1189 = vmatpush1.bf16.msra.mxu1 %v2342_v38 }
 0x262   : > { %1149 = vmatprep.subr.bf16.mxu0 %v2349_v39  ;;  %1190 = vmatprep.subr.bf16.mxu1 %v2354_v40 }
 0x263   : > { %1179 = vmatprep.mubr.bf16.mxu0 %v3077_v15  ;;  %1220 = vmatprep.mubr.bf16.mxu1 %v3077_v15 }
 0x265   : > { %1150 = vmatpush1.bf16.msra.mxu0 %v2359_v41  ;;  %1191 = vmatpush1.bf16.msra.mxu1 %v2366_v42 }
 0x266   : > { %1151 = vmatprep.subr.bf16.mxu0 %v2373_v43  ;;  %1192 = vmatprep.subr.bf16.mxu1 %v2378_v44 }
 0x269   : > { %1152 = vmatpush1.bf16.msra.mxu0 %v2386_v46  ;;  %1193 = vmatpush1.bf16.msra.mxu1 %v2391_v47 }
 0x26a   : > { %1153 = vmatprep.subr.bf16.mxu0 %v2398_v48  ;;  %1194 = vmatprep.subr.bf16.mxu1 %v2405_v49 }
 0x26d   : > { %1154 = vmatpush1.bf16.msra.mxu0 %v2410_v50  ;;  %1195 = vmatpush1.bf16.msra.mxu1 %v2415_v51 }
 0x26e   : > { %1155 = vmatprep.subr.bf16.mxu0 %v2422_v52  ;;  %1196 = vmatprep.subr.bf16.mxu1 %v2429_v53 }
 0x271   : > { %1156 = vmatpush1.bf16.msra.mxu0 %v2439_v55  ;;  %1197 = vmatpush1.bf16.msra.mxu1 %v2444_v56 }
 0x272   : > { %1157 = vmatprep.subr.bf16.mxu0 %v2451_v57  ;;  %1198 = vmatprep.subr.bf16.mxu1 %v2456_v58 }
 0x275   : > { %1158 = vmatpush1.bf16.msra.mxu0 %v2463_v59  ;;  %1199 = vmatpush1.bf16.msra.mxu1 %v2468_v60 }
 0x276   : > { %1159 = vmatprep.subr.bf16.mxu0 %v2475_v61  ;;  %1200 = vmatprep.subr.bf16.mxu1 %v2480_v62 }
 0x279   : > { %1160 = vmatpush1.bf16.msra.mxu0 %v2490_v0  ;;  %1201 = vmatpush1.bf16.msra.mxu1 %v2495_v1 }
 0x27a   : > { %1161 = vmatprep.subr.bf16.mxu0 %v2502_v2  ;;  %1202 = vmatprep.subr.bf16.mxu1 %v2507_v4 }
 0x27d   : > { %1162 = vmatpush1.bf16.msra.mxu0 %v2514_v5  ;;  %1203 = vmatpush1.bf16.msra.mxu1 %v2519_v6 }
 0x27e   : > { %1265 = vmatprep.subr.bf16.mxu0 %v2326_v34  ;;  %1306 = vmatprep.subr.bf16.mxu1 %v2331_v35 }
 0x333   : > { %v1063_v27 = vpop.f32.mrb[24].mxu0  ;;  %v1104_v33 = vpop.f32.mrb[24].mxu1 }
 0x334   : > { %v1111_v17 = vadd.f32 %v1063_v27, %v2584_v36  ;;  %v1113_v16 = vadd.f32 %v1104_v33, %v2587_v54  ;;  %v1065_v18 = vpop.f32.mrb[25].mxu0  ;;  %v1106_v20 = vpop.f32.mrb[25].mxu1 }
 0x335   : > { %v1112_v19 = vadd.f32 %v1065_v18, %v2589_v7  ;;  %v1114_v3 = vadd.f32 %v1106_v20, %v3078_v21  ;;  %v1067_v22 = vpop.f32.mrb[26].mxu0  ;;  %v1108_v23 = vpop.f32.mrb[26].mxu1  ;;  %v3080_v20 = vld [vmem:[#allocation6_spill] sm:$0xff] }
 0x336   : > { %v1876_v11 = vmul.f32 -1.442695, %v1111_v17  ;;  %v1068_v29 = vpop.f32.mrb[27].mxu0  ;;  %v1109_v63 = vpop.f32.mrb[27].mxu1  ;;  %v3081_v22 = vld [vmem:[#allocation7_spill] sm:$0xff] }
 0x337   : > { %v1877_v26 = vmul.f32 -1.442695, %v1112_v19  ;;  %v1878_v28 = vmul.f32 -1.442695, %v1114_v3 }
 0x338   : > { %2044 = vpow2.f32 %v1876_v11  ;;  %v3082_v11 = vld [vmem:[#allocation8_spill] sm:$0xff] }
 0x339   : > { %2046 = vpow2.f32 %v1877_v26 }
 0x33a   : > { %2048 = vpow2.f32 %v1878_v28 }
 0x33b   : > { %2050 = vtanh.f32 %v1113_v16  ;;  %v3079_v16 = vld [vmem:[#allocation5_spill] sm:$0xff] }
 0x342   : > { %v2045_v30 = vpop.eup %2044 }
 0x343   : > { %v2047_v31 = vpop.eup %2046  ;;  %v1118_v36 = vadd.f32 1.0, %v2045_v30 }
 0x344   : > { %v1124_v54 = vadd.f32 1.0, %v2047_v31  ;;  %v2049_v7 = vpop.eup %2048 }
 0x345   : > { %2052 = vrcp.f32 %v1118_v36  ;;  %v2051_v9 = vpop.eup %2050  ;;  %v1131_v24 = vadd.f32 1.0, %v2049_v7 }
 0x346   : > { %2054 = vrcp.f32 %v1124_v54 }
 0x347   : > { %2056 = vrcp.f32 %v1131_v24 }
 0x34f   : > { %v2053_v13 = vpop.eup %2052 }
 0x350   : > { %v2055_v45 = vpop.eup %2054  ;;  %v1136_v12 = vmul.f32 %v2053_v13, %v2051_v9 }
 0x351   : > { %v1135_v8 = vmul.f32 %v2055_v45, %v2691_v32  ;;  %v2057_v14 = vpop.eup %2056 }
 0x353   : > { %v2734_v10 = vadd.f32 %v1136_v12, %v1135_v8 }
 0x355   : > { %2058 = vtanh.f32 %v2734_v10 }
 0x35f   : > { %v2059_v25 = vpop.eup %2058 }
 0x360   : > { %v1139_v27 = vmul.f32 %v2059_v25, %v2057_v14 }
 0x362   : > { %v1142_v33 = vpack.c.bf16 %v1139_v27, %v1139_v27 }
 0x364   : > { %1879 = vst [vmem:[%s2223_s24 + $0x8] sm:$0xf] %v1142_v33  ;;  %1180 = vmatmul.mubr.bf16.vlgmr.msra.gmra.mrb[28].mxu0 %v1142_v33  ;;  %1221 = vmatmul.mubr.bf16.vlgmr.msra.gmra.mrb[28].mxu1 %v1142_v33 }
 0x365   : > { %1266 = vmatpush1.bf16.msra.mxu0 %v2337_v37  ;;  %1307 = vmatpush1.bf16.msra.mxu1 %v2342_v38 }
 0x366   : > { %1267 = vmatprep.subr.bf16.mxu0 %v2349_v39  ;;  %1308 = vmatprep.subr.bf16.mxu1 %v2354_v40 }
 0x367   : > { %1297 = vmatprep.mubr.bf16.mxu0 %v3077_v15  ;;  %1338 = vmatprep.mubr.bf16.mxu1 %v3077_v15 }
 0x369   : > { %1268 = vmatpush1.bf16.msra.mxu0 %v2359_v41  ;;  %1309 = vmatpush1.bf16.msra.mxu1 %v2366_v42 }
 0x36a   : > { %1269 = vmatprep.subr.bf16.mxu0 %v2373_v43  ;;  %1310 = vmatprep.subr.bf16.mxu1 %v2378_v44 }
 0x36d   : > { %1270 = vmatpush1.bf16.msra.mxu0 %v2386_v46  ;;  %1311 = vmatpush1.bf16.msra.mxu1 %v2391_v47 }
 0x36e   : > { %1271 = vmatprep.subr.bf16.mxu0 %v2398_v48  ;;  %1312 = vmatprep.subr.bf16.mxu1 %v2405_v49 }
 0x371   : > { %1272 = vmatpush1.bf16.msra.mxu0 %v2410_v50  ;;  %1313 = vmatpush1.bf16.msra.mxu1 %v2415_v51 }
 0x372   : > { %1273 = vmatprep.subr.bf16.mxu0 %v2422_v52  ;;  %1314 = vmatprep.subr.bf16.mxu1 %v2429_v53 }
 0x375   : > { %1274 = vmatpush1.bf16.msra.mxu0 %v2439_v55  ;;  %1315 = vmatpush1.bf16.msra.mxu1 %v2444_v56 }
 0x376   : > { %1275 = vmatprep.subr.bf16.mxu0 %v2451_v57  ;;  %1316 = vmatprep.subr.bf16.mxu1 %v2456_v58 }
 0x379   : > { %1276 = vmatpush1.bf16.msra.mxu0 %v2463_v59  ;;  %1317 = vmatpush1.bf16.msra.mxu1 %v2468_v60 }
 0x37a   : > { %1277 = vmatprep.subr.bf16.mxu0 %v2475_v61  ;;  %1318 = vmatprep.subr.bf16.mxu1 %v2480_v62 }
 0x37d   : > { %1278 = vmatpush1.bf16.msra.mxu0 %v2490_v0  ;;  %1319 = vmatpush1.bf16.msra.mxu1 %v2495_v1 }
 0x37e   : > { %1279 = vmatprep.subr.bf16.mxu0 %v2502_v2  ;;  %1320 = vmatprep.subr.bf16.mxu1 %v2507_v4 }
 0x381   : > { %1280 = vmatpush1.bf16.msra.mxu0 %v2514_v5  ;;  %1321 = vmatpush1.bf16.msra.mxu1 %v2519_v6 }
 0x382   : > { %1383 = vmatprep.subr.bf16.mxu0 %v2326_v34  ;;  %1424 = vmatprep.subr.bf16.mxu1 %v2331_v35 }
 0x437   : > { %v1181_v32 = vpop.f32.mrb[28].mxu0  ;;  %v1222_v17 = vpop.f32.mrb[28].mxu1 }
 0x438   : > { %v1229_v18 = vadd.f32 %v1181_v32, %v3079_v16  ;;  %v1231_v19 = vadd.f32 %v1222_v17, %v3080_v20  ;;  %v1183_v21 = vpop.f32.mrb[29].mxu0  ;;  %v1224_v3 = vpop.f32.mrb[29].mxu1 }
 0x439   : > { %v1230_v23 = vadd.f32 %v1183_v21, %v3081_v22  ;;  %v1232_v29 = vadd.f32 %v1224_v3, %v3082_v11  ;;  %v1185_v63 = vpop.f32.mrb[30].mxu0  ;;  %v1226_v26 = vpop.f32.mrb[30].mxu1 }
 0x43a   : > { %v1880_v28 = vmul.f32 -1.442695, %v1229_v18  ;;  %v1186_v30 = vpop.f32.mrb[31].mxu0  ;;  %v1227_v31 = vpop.f32.mrb[31].mxu1 }
 0x43b   : > { %v1881_v34 = vmul.f32 -1.442695, %v1230_v23  ;;  %v1882_v35 = vmul.f32 -1.442695, %v1232_v29 }
 0x43c   : > { %2060 = vpow2.f32 %v1880_v28 }
 0x43d   : > { %2062 = vpow2.f32 %v1881_v34  ;;  %v2837_v34 = vld [vmem:[%s3051_s2] ss:$16 sps:$4 sm:$0xff]  }
 0x43e   : > { %2064 = vpow2.f32 %v1882_v35  ;;  %v2843_v35 = vld [vmem:[%s3051_s2 + $0x8] ss:$16 sps:$4 sm:$0xff]  }
 0x43f   : > { %2066 = vtanh.f32 %v1231_v19 }
 0x446   : > { %v2061_v36 = vpop.eup %2060 }
 0x447   : > { %v2063_v54 = vpop.eup %2062  ;;  %v1236_v7 = vadd.f32 1.0, %v2061_v36  ;;  %v2849_v36 = vld [vmem:[%s3051_s2 + $0x24] ss:$16 sps:$4 sm:$0xff]  }
 0x448   : > { %v1242_v9 = vadd.f32 1.0, %v2063_v54  ;;  %v2065_v13 = vpop.eup %2064  ;;  %v2855_v54 = vld [vmem:[%s3051_s2 + $0x2c] ss:$16 sps:$4 sm:$0xff]  }
 0x449   : > { %2068 = vrcp.f32 %v1236_v7  ;;  %v2067_v45 = vpop.eup %2066  ;;  %v1249_v14 = vadd.f32 1.0, %v2065_v13  ;;  %v2863_v7 = vld [vmem:[%s3051_s2 + $0x20] ss:$16 sps:$4 sm:$0xff]   ;;  %v2875_v13 = vld [vmem:[%s3051_s2 + $0x44] ss:$16 sps:$4 sm:$0xff]  }
 0x44a   : > { %2070 = vrcp.f32 %v1242_v9  ;;  %v2869_v9 = vld [vmem:[%s3051_s2 + $0x28] ss:$16 sps:$4 sm:$0xff]  }
 0x44b   : > { %2072 = vrcp.f32 %v1249_v14  ;;  %v2905_v14 = vld [vmem:[%s3051_s2 + $0x6c] ss:$16 sps:$4 sm:$0xff]  }
 0x453   : > { %v2069_v12 = vpop.eup %2068 }
 0x454   : > { %v2071_v24 = vpop.eup %2070  ;;  %v1254_v8 = vmul.f32 %v2069_v12, %v2067_v45  ;;  %v2881_v45 = vld [vmem:[%s3051_s2 + $0x4c] ss:$16 sps:$4 sm:$0xff]   ;;  %v2887_v12 = vld [vmem:[%s3051_s2 + $0x40] ss:$16 sps:$4 sm:$0xff]  }
 0x455   : > { %v1253_v25 = vmul.f32 %v2071_v24, %v2734_v10  ;;  %v2073_v33 = vpop.eup %2072  ;;  %v2893_v24 = vld [vmem:[%s3051_s2 + $0x48] ss:$16 sps:$4 sm:$0xff]  }
 0x457   : > { %v2777_v27 = vadd.f32 %v1254_v8, %v1253_v25  ;;  %v2899_v8 = vld [vmem:[%s3051_s2 + $0x64] ss:$16 sps:$4 sm:$0xff]   ;;  %v2911_v25 = vld [vmem:[%s3051_s2 + $0x60] ss:$16 sps:$4 sm:$0xff]  }
 0x459   : > { %2074 = vtanh.f32 %v2777_v27 }
 0x463   : > { %v2075_v32 = vpop.eup %2074 }
 0x464   : > { %v1257_v17 = vmul.f32 %v2075_v32, %v2073_v33  ;;  %v2923_v33 = vld [vmem:[%s3051_s2 + $0x84] ss:$16 sps:$4 sm:$0xff]   ;;  %v2929_v32 = vld [vmem:[%s3051_s2 + $0x8c] ss:$16 sps:$4 sm:$0xff]  }
 0x466   : > { %v1260_v16 = vpack.c.bf16 %v1257_v17, %v1257_v17  ;;  %v2935_v17 = vld [vmem:[%s3051_s2 + $0x80] ss:$16 sps:$4 sm:$0xff]  }
 0x468   : > { %1883 = vst [vmem:[%s2223_s24 + $0xc] sm:$0xf] %v1260_v16  ;;  %1298 = vmatmul.mubr.bf16.vlgmr.msra.gmra.mrb[32].mxu0 %v1260_v16  ;;  %1339 = vmatmul.mubr.bf16.vlgmr.msra.gmra.mrb[32].mxu1 %v1260_v16  ;;  %v2941_v16 = vld [vmem:[%s3051_s2 + $0x88] ss:$16 sps:$4 sm:$0xff]  }
 0x469   : > { %1384 = vmatpush1.bf16.msra.mxu0 %v2337_v37  ;;  %1425 = vmatpush1.bf16.msra.mxu1 %v2342_v38  ;;  %v2816_v37 = vld [vmem:[%s3051_s2 + $0x4] ss:$16 sps:$4 sm:$0xff]   ;;  %v2822_v38 = vld [vmem:[%s3051_s2 + $0xc] ss:$16 sps:$4 sm:$0xff]  }
 0x46a   : > { %1385 = vmatprep.subr.bf16.mxu0 %v2349_v39  ;;  %1426 = vmatprep.subr.bf16.mxu1 %v2354_v40 }
 0x46b   : > { %1415 = vmatprep.mubr.bf16.mxu0 %v3077_v15  ;;  %1456 = vmatprep.mubr.bf16.mxu1 %v3077_v15 }
 0x46d   : > { %1386 = vmatpush1.bf16.msra.mxu0 %v2359_v41  ;;  %1427 = vmatpush1.bf16.msra.mxu1 %v2366_v42  ;;  %v3083_v41 = vld [vmem:[#allocation9_spill] sm:$0xff] }
 0x46e   : > { %1387 = vmatprep.subr.bf16.mxu0 %v2373_v43  ;;  %1428 = vmatprep.subr.bf16.mxu1 %v2378_v44  ;;  %v3084_v43 = vld [vmem:[#allocation10_spill] sm:$0xff] }
 0x471   : > { %1388 = vmatpush1.bf16.msra.mxu0 %v2386_v46  ;;  %1429 = vmatpush1.bf16.msra.mxu1 %v2391_v47 }
 0x472   : > { %1389 = vmatprep.subr.bf16.mxu0 %v2398_v48  ;;  %1430 = vmatprep.subr.bf16.mxu1 %v2405_v49  ;;  %v3085_v48 = vld [vmem:[#allocation11_spill] sm:$0xff] }
 0x475   : > { %1390 = vmatpush1.bf16.msra.mxu0 %v2410_v50  ;;  %1431 = vmatpush1.bf16.msra.mxu1 %v2415_v51  ;;  %v3086_v50 = vld [vmem:[#allocation12_spill] sm:$0xff] }
 0x476   : > { %1391 = vmatprep.subr.bf16.mxu0 %v2422_v52  ;;  %1432 = vmatprep.subr.bf16.mxu1 %v2429_v53 }
 0x479   : > { %1392 = vmatpush1.bf16.msra.mxu0 %v2439_v55  ;;  %1433 = vmatpush1.bf16.msra.mxu1 %v2444_v56 }
 0x47a   : > { %1393 = vmatprep.subr.bf16.mxu0 %v2451_v57  ;;  %1434 = vmatprep.subr.bf16.mxu1 %v2456_v58 }
 0x47d   : > { %1394 = vmatpush1.bf16.msra.mxu0 %v2463_v59  ;;  %1435 = vmatpush1.bf16.msra.mxu1 %v2468_v60 }
 0x47e   : > { %1395 = vmatprep.subr.bf16.mxu0 %v2475_v61  ;;  %1436 = vmatprep.subr.bf16.mxu1 %v2480_v62 }
 0x481   : > { %1396 = vmatpush1.bf16.msra.mxu0 %v2490_v0  ;;  %1437 = vmatpush1.bf16.msra.mxu1 %v2495_v1 }
 0x482   : > { %1397 = vmatprep.subr.bf16.mxu0 %v2502_v2  ;;  %1438 = vmatprep.subr.bf16.mxu1 %v2507_v4 }
 0x485   : > { %1398 = vmatpush1.bf16.msra.mxu0 %v2514_v5  ;;  %1439 = vmatpush1.bf16.msra.mxu1 %v2519_v6 }
 0x486   : > { %1501 = vmatprep.subr.bf16.mxu0 %v2816_v37  ;;  %1542 = vmatprep.subr.bf16.mxu1 %v2822_v38 }
 0x53b   : > { %v1299_v39 = vpop.f32.mrb[32].mxu0  ;;  %v1340_v40 = vpop.f32.mrb[32].mxu1 }
 0x53c   : > { %v1347_v42 = vadd.f32 %v1299_v39, %v3083_v41  ;;  %v1349_v44 = vadd.f32 %v1340_v40, %v3084_v43  ;;  %v1301_v46 = vpop.f32.mrb[33].mxu0  ;;  %v1342_v47 = vpop.f32.mrb[33].mxu1  ;;  %v2947_v39 = vld [vmem:[%s3051_s2 + $0xa4] ss:$16 sps:$4 sm:$0xff]   ;;  %v2953_v40 = vld [vmem:[%s3051_s2 + $0xac] ss:$16 sps:$4 sm:$0xff]  }
 0x53d   : > { %v1348_v49 = vadd.f32 %v1301_v46, %v3085_v48  ;;  %v1350_v51 = vadd.f32 %v1342_v47, %v3086_v50  ;;  %v1303_v52 = vpop.f32.mrb[34].mxu0  ;;  %v1344_v53 = vpop.f32.mrb[34].mxu1  ;;  %v2959_v41 = vld [vmem:[%s3051_s2 + $0xa0] ss:$16 sps:$4 sm:$0xff]   ;;  %v3089_v48 = vld [vmem:[#allocation15_spill] sm:$0xff] }
 0x53e   : > { %v1884_v55 = vmul.f32 -1.442695, %v1347_v42  ;;  %v1304_v56 = vpop.f32.mrb[35].mxu0  ;;  %v1345_v57 = vpop.f32.mrb[35].mxu1  ;;  %v2965_v42 = vld [vmem:[%s3051_s2 + $0xa8] ss:$16 sps:$4 sm:$0xff]  }
 0x53f   : > { %v1885_v58 = vmul.f32 -1.442695, %v1348_v49  ;;  %v1886_v59 = vmul.f32 -1.442695, %v1350_v51  ;;  %v3088_v46 = vld [vmem:[#allocation14_spill] sm:$0xff]  ;;  %v3090_v49 = vld [vmem:[#allocation16_spill] sm:$0xff] }
 0x540   : > { %2076 = vpow2.f32 %v1884_v55 }
 0x541   : > { %2078 = vpow2.f32 %v1885_v58 }
 0x542   : > { %2080 = vpow2.f32 %v1886_v59 }
 0x543   : > { %2082 = vtanh.f32 %v1349_v44  ;;  %v3087_v44 = vld [vmem:[#allocation13_spill] sm:$0xff] }
 0x54a   : > { %v2077_v60 = vpop.eup %2076 }
 0x54b   : > { %v2079_v10 = vpop.eup %2078  ;;  %v1354_v18 = vadd.f32 1.0, %v2077_v60 }
 0x54c   : > { %v1360_v20 = vadd.f32 1.0, %v2079_v10  ;;  %v2081_v19 = vpop.eup %2080 }
 0x54d   : > { %2084 = vrcp.f32 %v1354_v18  ;;  %v2083_v21 = vpop.eup %2082  ;;  %v1367_v11 = vadd.f32 1.0, %v2081_v19 }
 0x54e   : > { %2086 = vrcp.f32 %v1360_v20 }
 0x54f   : > { %2088 = vrcp.f32 %v1367_v11 }
 0x557   : > { %v2085_v3 = vpop.eup %2084 }
 0x558   : > { %v2087_v22 = vpop.eup %2086  ;;  %v1372_v23 = vmul.f32 %v2085_v3, %v2083_v21 }
 0x559   : > { %v1371_v29 = vmul.f32 %v2087_v22, %v2777_v27  ;;  %v2089_v26 = vpop.eup %2088  ;;  %v2917_v27 = vld [vmem:[%s3051_s2 + $0x68] ss:$16 sps:$4 sm:$0xff]  }
 0x55b   : > { %v2830_v63 = vadd.f32 %v1372_v23, %v1371_v29  ;;  %v2165_v29 = vld [vmem:[%s3051_s2 + $0xcc] ss:$16 sps:$4 sm:$0xff]  }
 0x55d   : > { %2090 = vtanh.f32 %v2830_v63 }
 0x567   : > { %v2091_v28 = vpop.eup %2090 }
 0x568   : > { %v1375_v30 = vmul.f32 %v2091_v28, %v2089_v26  ;;  %v2167_v26 = vld [vmem:[%s3051_s2 + $0xc8] ss:$16 sps:$4 sm:$0xff]   ;;  %v2168_v28 = vld [vmem:[%s3051_s2 + $0xe4] ss:$16 sps:$4 sm:$0xff]  }
 0x56a   : > { %v1378_v31 = vpack.c.bf16 %v1375_v30, %v1375_v30  ;;  %v2169_v30 = vld [vmem:[%s3051_s2 + $0xec] ss:$16 sps:$4 sm:$0xff]  }
 0x56c   : > { %1887 = vst [vmem:[%s2223_s24 + $0x10] sm:$0xf] %v1378_v31  ;;  %1416 = vmatmul.mubr.bf16.vlgmr.msra.gmra.mrb[36].mxu0 %v1378_v31  ;;  %1457 = vmatmul.mubr.bf16.vlgmr.msra.gmra.mrb[36].mxu1 %v1378_v31  ;;  %v2170_v31 = vld [vmem:[%s3051_s2 + $0xe0] ss:$16 sps:$4 sm:$0xff]  }
 0x56d   : > { %1502 = vmatpush1.bf16.msra.mxu0 %v2837_v34  ;;  %1543 = vmatpush1.bf16.msra.mxu1 %v2843_v35 }
 0x56e   : > { %1503 = vmatprep.subr.bf16.mxu0 %v2849_v36  ;;  %1544 = vmatprep.subr.bf16.mxu1 %v2855_v54 }
 0x56f   : > { %1533 = vmatprep.mubr.bf16.mxu0 %v3077_v15  ;;  %1574 = vmatprep.mubr.bf16.mxu1 %v3077_v15 }
 0x571   : > { %1504 = vmatpush1.bf16.msra.mxu0 %v2863_v7  ;;  %1545 = vmatpush1.bf16.msra.mxu1 %v2869_v9 }
 0x572   : > { %1505 = vmatprep.subr.bf16.mxu0 %v2875_v13  ;;  %1546 = vmatprep.subr.bf16.mxu1 %v2881_v45 }
 0x575   : > { %1506 = vmatpush1.bf16.msra.mxu0 %v2887_v12  ;;  %1547 = vmatpush1.bf16.msra.mxu1 %v2893_v24 }
 0x576   : > { %1507 = vmatprep.subr.bf16.mxu0 %v2899_v8  ;;  %1548 = vmatprep.subr.bf16.mxu1 %v2905_v14 }
 0x579   : > { %1508 = vmatpush1.bf16.msra.mxu0 %v2911_v25  ;;  %1549 = vmatpush1.bf16.msra.mxu1 %v2917_v27 }
 0x57a   : > { %1509 = vmatprep.subr.bf16.mxu0 %v2923_v33  ;;  %1550 = vmatprep.subr.bf16.mxu1 %v2929_v32 }
 0x57d   : > { %1510 = vmatpush1.bf16.msra.mxu0 %v2935_v17  ;;  %1551 = vmatpush1.bf16.msra.mxu1 %v2941_v16 }
 0x57e   : > { %1511 = vmatprep.subr.bf16.mxu0 %v2947_v39  ;;  %1552 = vmatprep.subr.bf16.mxu1 %v2953_v40 }
 0x581   : > { %1512 = vmatpush1.bf16.msra.mxu0 %v2959_v41  ;;  %1553 = vmatpush1.bf16.msra.mxu1 %v2965_v42 }
 0x582   : > { %1513 = vmatprep.subr.bf16.mxu0 %v2475_v61  ;;  %1554 = vmatprep.subr.bf16.mxu1 %v2480_v62 }
 0x585   : > { %1514 = vmatpush1.bf16.msra.mxu0 %v2490_v0  ;;  %1555 = vmatpush1.bf16.msra.mxu1 %v2495_v1 }
 0x586   : > { %1515 = vmatprep.subr.bf16.mxu0 %v2502_v2  ;;  %1556 = vmatprep.subr.bf16.mxu1 %v2507_v4 }
 0x589   : > { %1516 = vmatpush1.bf16.msra.mxu0 %v2514_v5  ;;  %1557 = vmatpush1.bf16.msra.mxu1 %v2519_v6 }
 0x58a   : > { %1619 = vmatprep.subr.bf16.mxu0 %v2816_v37  ;;  %1660 = vmatprep.subr.bf16.mxu1 %v2822_v38 }
 0x63f   : > { %v1417_v43 = vpop.f32.mrb[36].mxu0  ;;  %v1458_v61 = vpop.f32.mrb[36].mxu1 }
 0x640   : > { %v1465_v62 = vadd.f32 %v1417_v43, %v3087_v44  ;;  %v1467_v0 = vadd.f32 %v1458_v61, %v3088_v46  ;;  %v1419_v47 = vpop.f32.mrb[37].mxu0  ;;  %v1460_v1 = vpop.f32.mrb[37].mxu1 }
 0x641   : > { %v1466_v2 = vadd.f32 %v1419_v47, %v3089_v48  ;;  %v1468_v4 = vadd.f32 %v1460_v1, %v3090_v49  ;;  %v1421_v50 = vpop.f32.mrb[38].mxu0  ;;  %v1462_v5 = vpop.f32.mrb[38].mxu1 }
 0x642   : > { %v1888_v51 = vmul.f32 -1.442695, %v1465_v62  ;;  %v1422_v6 = vpop.f32.mrb[39].mxu0  ;;  %v1463_v52 = vpop.f32.mrb[39].mxu1 }
 0x643   : > { %v1889_v37 = vmul.f32 -1.442695, %v1466_v2  ;;  %v1890_v38 = vmul.f32 -1.442695, %v1468_v4  ;;  %v3095_v52 = vld [vmem:[#allocation21_spill] sm:$0xff] }
 0x644   : > { %2092 = vpow2.f32 %v1888_v51 }
 0x645   : > { %2094 = vpow2.f32 %v1889_v37 }
 0x646   : > { %2096 = vpow2.f32 %v1890_v38  ;;  %v3096_v38 = vld [vmem:[#allocation22_spill] sm:$0xff] }
 0x647   : > { %2098 = vtanh.f32 %v1467_v0 }
 0x64e   : > { %v2093_v53 = vpop.eup %2092 }
 0x64f   : > { %v2095_v55 = vpop.eup %2094  ;;  %v1472_v56 = vadd.f32 1.0, %v2093_v53 }
 0x650   : > { %v1478_v57 = vadd.f32 1.0, %v2095_v55  ;;  %v2097_v58 = vpop.eup %2096 }
 0x651   : > { %2100 = vrcp.f32 %v1472_v56  ;;  %v2099_v59 = vpop.eup %2098  ;;  %v1485_v20 = vadd.f32 1.0, %v2097_v58 }
 0x652   : > { %2102 = vrcp.f32 %v1478_v57  ;;  %v3097_v57 = vld [vmem:[#allocation23_spill] sm:$0xff] }
 0x653   : > { %2104 = vrcp.f32 %v1485_v20 }
 0x65b   : > { %v2101_v60 = vpop.eup %2100 }
 0x65c   : > { %v2103_v10 = vpop.eup %2102  ;;  %v1490_v18 = vmul.f32 %v2101_v60, %v2099_v59  ;;  %v3098_v59 = vld [vmem:[#allocation24_spill] sm:$0xff] }
 0x65d   : > { %v1489_v19 = vmul.f32 %v2103_v10, %v2830_v63  ;;  %v2105_v3 = vpop.eup %2104  ;;  %v2166_v63 = vld [vmem:[%s3051_s2 + $0xc0] ss:$16 sps:$4 sm:$0xff]  }
 0x65f   : > { %v2983_v21 = vadd.f32 %v1490_v18, %v1489_v19 }
 0x661   : > { %2106 = vtanh.f32 %v2983_v21 }
 0x66b   : > { %v2107_v22 = vpop.eup %2106 }
 0x66c   : > { %v1493_v23 = vmul.f32 %v2107_v22, %v2105_v3 }
 0x66e   : > { %v1496_v11 = vpack.c.bf16 %v1493_v23, %v1493_v23 }
 0x670   : > { %1891 = vst [vmem:[%s2223_s24 + $0x14] sm:$0xf] %v1496_v11  ;;  %1534 = vmatmul.mubr.bf16.vlgmr.msra.gmra.mrb[40].mxu0 %v1496_v11  ;;  %1575 = vmatmul.mubr.bf16.vlgmr.msra.gmra.mrb[40].mxu1 %v1496_v11 }
 0x671   : > { %1620 = vmatpush1.bf16.msra.mxu0 %v2837_v34  ;;  %1661 = vmatpush1.bf16.msra.mxu1 %v2843_v35  ;;  %v2171_v34 = vld [vmem:[%s3051_s2 + $0xe8] ss:$16 sps:$4 sm:$0xff]  }
 0x672   : > { %1621 = vmatprep.subr.bf16.mxu0 %v2849_v36  ;;  %1662 = vmatprep.subr.bf16.mxu1 %v2855_v54  ;;  %v3091_v54 = vld [vmem:[#allocation17_spill] sm:$0xff] }
 0x673   : > { %1651 = vmatprep.mubr.bf16.mxu0 %v3077_v15  ;;  %1692 = vmatprep.mubr.bf16.mxu1 %v3077_v15  ;;  %v2164_v15 = vld [vmem:[%s3051_s2 + $0xc4] ss:$16 sps:$4 sm:$0xff]  }
 0x675   : > { %1622 = vmatpush1.bf16.msra.mxu0 %v2863_v7  ;;  %1663 = vmatpush1.bf16.msra.mxu1 %v2869_v9  ;;  %v3092_v9 = vld [vmem:[#allocation18_spill] sm:$0xff] }
 0x676   : > { %1623 = vmatprep.subr.bf16.mxu0 %v2875_v13  ;;  %1664 = vmatprep.subr.bf16.mxu1 %v2881_v45 }
 0x679   : > { %1624 = vmatpush1.bf16.msra.mxu0 %v2887_v12  ;;  %1665 = vmatpush1.bf16.msra.mxu1 %v2893_v24  ;;  %v3093_v24 = vld [vmem:[#allocation19_spill] sm:$0xff] }
 0x67a   : > { %1625 = vmatprep.subr.bf16.mxu0 %v2899_v8  ;;  %1666 = vmatprep.subr.bf16.mxu1 %v2905_v14  ;;  %v3094_v14 = vld [vmem:[#allocation20_spill] sm:$0xff] }
 0x67d   : > { %1626 = vmatpush1.bf16.msra.mxu0 %v2911_v25  ;;  %1667 = vmatpush1.bf16.msra.mxu1 %v2917_v27 }
 0x67e   : > { %1627 = vmatprep.subr.bf16.mxu0 %v2923_v33  ;;  %1668 = vmatprep.subr.bf16.mxu1 %v2929_v32 }
 0x681   : > { %1628 = vmatpush1.bf16.msra.mxu0 %v2935_v17  ;;  %1669 = vmatpush1.bf16.msra.mxu1 %v2941_v16 }
 0x682   : > { %1629 = vmatprep.subr.bf16.mxu0 %v2947_v39  ;;  %1670 = vmatprep.subr.bf16.mxu1 %v2953_v40 }
 0x685   : > { %1630 = vmatpush1.bf16.msra.mxu0 %v2959_v41  ;;  %1671 = vmatpush1.bf16.msra.mxu1 %v2965_v42 }
 0x686   : > { %1631 = vmatprep.subr.bf16.mxu0 %v2164_v15  ;;  %1672 = vmatprep.subr.bf16.mxu1 %v2165_v29 }
 0x689   : > { %1632 = vmatpush1.bf16.msra.mxu0 %v2166_v63  ;;  %1673 = vmatpush1.bf16.msra.mxu1 %v2167_v26 }
 0x68a   : > { %1633 = vmatprep.subr.bf16.mxu0 %v2168_v28  ;;  %1674 = vmatprep.subr.bf16.mxu1 %v2169_v30 }
 0x68d   : > { %1634 = vmatpush1.bf16.msra.mxu0 %v2170_v31  ;;  %1675 = vmatpush1.bf16.msra.mxu1 %v2171_v34 }
 0x743   : > { %v1535_v35 = vpop.f32.mrb[40].mxu0  ;;  %v1576_v36 = vpop.f32.mrb[40].mxu1 }
 0x744   : > { %v1583_v7 = vadd.f32 %v1535_v35, %v3091_v54  ;;  %v1585_v13 = vadd.f32 %v1576_v36, %v3092_v9  ;;  %v1537_v45 = vpop.f32.mrb[41].mxu0  ;;  %v1578_v12 = vpop.f32.mrb[41].mxu1 }
 0x745   : > { %v1584_v8 = vadd.f32 %v1537_v45, %v3093_v24  ;;  %v1586_v25 = vadd.f32 %v1578_v12, %v3094_v14  ;;  %v1539_v27 = vpop.f32.mrb[42].mxu0  ;;  %v1580_v33 = vpop.f32.mrb[42].mxu1 }
 0x746   : > { %v1892_v32 = vmul.f32 -1.442695, %v1583_v7  ;;  %v1540_v17 = vpop.f32.mrb[43].mxu0  ;;  %v1581_v16 = vpop.f32.mrb[43].mxu1 }
 0x747   : > { %v1893_v39 = vmul.f32 -1.442695, %v1584_v8  ;;  %v1894_v40 = vmul.f32 -1.442695, %v1586_v25 }
 0x748   : > { %2108 = vpow2.f32 %v1892_v32 }
 0x749   : > { %2110 = vpow2.f32 %v1893_v39 }
 0x74a   : > { %2112 = vpow2.f32 %v1894_v40 }
 0x74b   : > { %2114 = vtanh.f32 %v1585_v13 }
 0x752   : > { %v2109_v41 = vpop.eup %2108 }
 0x753   : > { %v2111_v42 = vpop.eup %2110  ;;  %v1590_v43 = vadd.f32 1.0, %v2109_v41 }
 0x754   : > { %v1596_v61 = vadd.f32 1.0, %v2111_v42  ;;  %v2113_v44 = vpop.eup %2112 }
 0x755   : > { %2116 = vrcp.f32 %v1590_v43  ;;  %v2115_v62 = vpop.eup %2114  ;;  %v1603_v1 = vadd.f32 1.0, %v2113_v44 }
 0x756   : > { %2118 = vrcp.f32 %v1596_v61 }
 0x757   : > { %2120 = vrcp.f32 %v1603_v1 }
 0x75f   : > { %v2117_v46 = vpop.eup %2116 }
 0x760   : > { %v2119_v0 = vpop.eup %2118  ;;  %v1608_v47 = vmul.f32 %v2117_v46, %v2115_v62 }
 0x761   : > { %v1607_v48 = vmul.f32 %v2119_v0, %v2983_v21  ;;  %v2121_v49 = vpop.eup %2120 }
 0x763   : > { %v1609_v2 = vadd.f32 %v1608_v47, %v1607_v48 }
 0x765   : > { %2122 = vtanh.f32 %v1609_v2 }
 0x76f   : > { %v2123_v4 = vpop.eup %2122 }
 0x770   : > { %v1611_v50 = vmul.f32 %v2123_v4, %v2121_v49 }
 0x772   : > { %v1614_v5 = vpack.c.bf16 %v1611_v50, %v1611_v50 }
 0x774   : > { %1895 = vst [vmem:[%s2223_s24 + $0x18] sm:$0xf] %v1614_v5  ;;  %1652 = vmatmul.mubr.bf16.vlgmr.msra.gmra.mrb[44].mxu0 %v1614_v5  ;;  %1693 = vmatmul.mubr.bf16.vlgmr.msra.gmra.mrb[44].mxu1 %v1614_v5 }
 0x847   : > { %v1653_v51 = vpop.f32.mrb[44].mxu0  ;;  %v1694_v6 = vpop.f32.mrb[44].mxu1 }
 0x848   : > { %v1701_v37 = vadd.f32 %v1653_v51, %v3095_v52  ;;  %v1703_v53 = vadd.f32 %v1694_v6, %v3096_v38  ;;  %v1655_v55 = vpop.f32.mrb[45].mxu0  ;;  %v1696_v56 = vpop.f32.mrb[45].mxu1 }
 0x849   : > { %v1702_v58 = vadd.f32 %v1655_v55, %v3097_v57  ;;  %v1704_v60 = vadd.f32 %v1696_v56, %v3098_v59  ;;  %v1657_v10 = vpop.f32.mrb[46].mxu0  ;;  %v1698_v18 = vpop.f32.mrb[46].mxu1 }
 0x84a   : > { %v1896_v20 = vmul.f32 -1.442695, %v1701_v37  ;;  %v1658_v19 = vpop.f32.mrb[47].mxu0  ;;  %v1699_v21 = vpop.f32.mrb[47].mxu1 }
 0x84b   : > { %v1897_v3 = vmul.f32 -1.442695, %v1702_v58  ;;  %v1898_v22 = vmul.f32 -1.442695, %v1704_v60 }
 0x84c   : > { %2124 = vpow2.f32 %v1896_v20 }
 0x84d   : > { %2126 = vpow2.f32 %v1897_v3 }
 0x84e   : > { %2128 = vpow2.f32 %v1898_v22 }
 0x84f   : > { %2130 = vtanh.f32 %v1703_v53 }
 0x856   : > { %v2125_v23 = vpop.eup %2124 }
 0x857   : > { %v2127_v11 = vpop.eup %2126  ;;  %v1708_v15 = vadd.f32 1.0, %v2125_v23 }
 0x858   : > { %v1714_v29 = vadd.f32 1.0, %v2127_v11  ;;  %v2129_v63 = vpop.eup %2128 }
 0x859   : > { %2132 = vrcp.f32 %v1708_v15  ;;  %v2131_v26 = vpop.eup %2130  ;;  %v1721_v34 = vadd.f32 1.0, %v2129_v63 }
 0x85a   : > { %2134 = vrcp.f32 %v1714_v29 }
 0x85b   : > { %2136 = vrcp.f32 %v1721_v34 }
 0x863   : > { %v2133_v28 = vpop.eup %2132 }
 0x864   : > { %v2135_v30 = vpop.eup %2134  ;;  %v1726_v31 = vmul.f32 %v2133_v28, %v2131_v26 }
 0x865   : > { %v1725_v35 = vmul.f32 %v2135_v30, %v1609_v2  ;;  %v2137_v54 = vpop.eup %2136 }
 0x867   : > { %v1727_v36 = vadd.f32 %v1726_v31, %v1725_v35 }
 0x869   : > { %2138 = vtanh.f32 %v1727_v36  ;;  %1730 = vst [vmem:[#allocation3] sm:$0xff] %v1727_v36 }
 0x873   : > { %v2139_v7 = vpop.eup %2138 }
 0x874   : > { %v1729_v9 = vmul.f32 %v2139_v7, %v2137_v54 }
 0x876   : > { %1731 = vst [vmem:[#allocation2] sm:$0xff] %v1729_v9  ;;  %v1732_v13 = vpack.c.bf16 %v1729_v9, %v1729_v9 }
 0x878   : > { %1899 = vst [vmem:[%s2223_s24 + $0x1c] sm:$0xf] %v1732_v13 }
 0x879 PF: > { %s14_s15 = sadd.s32 1, %s2178_s15  }
 0x87a   : > { %p11_p5 = scmp.ge.s32.totalorder %s14_s15, 6  }
 0x87c   :  { %13 = sbr.rel (!%p11_p5) target bundleno = 1 (0x1), region = 77 }

</bundles_post_ra>
